<compile_context>
chip_gen: v7x
topology: tpu7x:2x2x1
jax: 0.10.0
libtpu: 0.0.40
codegen_flags: <defaults>
</compile_context>

<pallas_src>
from functools import partial

import jax
import jax.numpy as jnp
from jax import lax
from jax.experimental import pallas as pl
from jax.experimental.pallas import tpu as pltpu

LANE = 128
_PREC = jax.lax.Precision.HIGHEST   # explicit, local; keeps kernel == f32 reference


def _round_up(x, m):
    return ((x + m - 1) // m) * m


def _make_kernel(T, S_total, needs_mask):
    """Builds the recurrence kernel; T / S_total / needs_mask are static Python values."""

    def kernel(gx_ref, whh_ref, bhn_ref, wl_ref, bl_ref, o_ref, h_ref):
        # gx_ref : (T, B, 3*Hp)  precomputed input-gate preactivations (r/z biases folded)
        # whh_ref: (Hp, 3*Hp)    hidden->gates weights [r | z | n], lane-dense, resident
        # bhn_ref: (1, Hp)       b_hn (applied inside r*(.) per PyTorch GRU)
        # wl_ref : (Hp, O_pad)   final linear weight (lane-dense padded), resident
        # bl_ref : (1, O_pad)
        # o_ref  : (B, O_pad)    output, written once at the last grid step
        # h_ref  : (B, Hp) f32   hidden-state carry (VMEM scratch, persists over grid)
        blk = pl.program_id(0)
        Hp = h_ref.shape[-1]

        @pl.when(blk == 0)
        def _init():
            h_ref[...] = jnp.zeros_like(h_ref)        # PyTorch default h0 = 0

        whh = whh_ref[...]                            # hoisted out of the time loop
        bhn = bhn_ref[...]

        def step(t, h):
            gx = gx_ref[t]                            # (B, 3*Hp)
            gh = jnp.dot(h, whh, precision=_PREC,
                         preferred_element_type=jnp.float32)
            # 128-lane-aligned gate slices (no masked sub-lane extraction)
            r = jax.nn.sigmoid(gx[:, 0:Hp] + gh[:, 0:Hp])
            z = jax.nn.sigmoid(gx[:, Hp:2 * Hp] + gh[:, Hp:2 * Hp])
            n = jnp.tanh(gx[:, 2 * Hp:3 * Hp] + r * (gh[:, 2 * Hp:3 * Hp] + bhn))
            h_new = n + z * (h - n)                   # == (1-z)*n + z*h
            if needs_mask:                            # ragged last time-block only
                h_new = jnp.where(blk * T + t < S_total, h_new, h)
            return h_new

        h = lax.fori_loop(0, T, step, h_ref[...], unroll=True)
        h_ref[...] = h

        @pl.when(blk == pl.num_programs(0) - 1)
        def _finalize():
            # eval-mode dropout == identity; final linear, single cast at the store
            out = jnp.dot(h, wl_ref[...], precision=_PREC,
                          preferred_element_type=jnp.float32) + bl_ref[...]
            o_ref[...] = out.astype(o_ref.dtype)

    return kernel


def prepare_params(w_ih, w_hh, b_ih, b_hh, w_lin, b_lin):
    """One-time (weight-stationary) layout prep: lane-dense, gate-major, bias-folded.

    PyTorch layouts in:  w_ih (3H, D), w_hh (3H, H), b_ih/b_hh (3H,),
                         w_lin (O, H), b_lin (O,)
    Kernel layouts out:  gxw (D, 3*Hp), gxb (1, 1, 3*Hp)   [b_ih all gates + b_hh r/z]
                         whh (Hp, 3*Hp), bhn (1, Hp), wl (Hp, O_pad), bl (1, O_pad)
    with Hp = roundup(H, 128), O_pad = roundup(O, 128): every per-gate slice and the
    output store is 128-lane aligned; padded lanes stay exactly zero in the recurrence.
    """
    H = w_hh.shape[1]
    D = w_ih.shape[1]
    O = w_lin.shape[0]
    Hp = _round_up(H, LANE)
    Op = _round_up(O, LANE)
    G = 3 * Hp

    w_ih = jnp.asarray(w_ih, jnp.float32)
    w_hh = jnp.asarray(w_hh, jnp.float32)
    b_ih = jnp.asarray(b_ih, jnp.float32)
    b_hh = jnp.asarray(b_hh, jnp.float32)
    w_lin = jnp.asarray(w_lin, jnp.float32)
    b_lin = jnp.asarray(b_lin, jnp.float32)

    gxw = jnp.zeros((D, G), jnp.float32)
    whh = jnp.zeros((Hp, G), jnp.float32)
    gxb = jnp.zeros((G,), jnp.float32)
    for g in range(3):
        gxw = gxw.at[:, g * Hp:g * Hp + H].set(w_ih[g * H:(g + 1) * H, :].T)
        whh = whh.at[:H, g * Hp:g * Hp + H].set(w_hh[g * H:(g + 1) * H, :].T)
        gxb = gxb.at[g * Hp:g * Hp + H].set(b_ih[g * H:(g + 1) * H])
    for g in range(2):   # fold b_hh into gx for the r and z gates (n keeps b_hn per step)
        gxb = gxb.at[g * Hp:g * Hp + H].add(b_hh[g * H:(g + 1) * H])

    bhn = jnp.zeros((1, Hp), jnp.float32).at[0, :H].set(b_hh[2 * H:3 * H])
    wl = jnp.zeros((Hp, Op), jnp.float32).at[:H, :O].set(w_lin.T)
    bl = jnp.zeros((1, Op), jnp.float32).at[0, :O].set(b_lin)
    return gxw, gxb.reshape(1, 1, G), whh, bhn, wl, bl


@partial(jax.jit, static_argnames=("output_size",))
def gru_linear_forward(data, params, output_size):
    """data: (B, S, D) f32; params from prepare_params. Returns (B, output_size)."""
    gxw, gxb, whh, bhn, wl, bl = params
    B, S, D = data.shape
    Hp = whh.shape[0]
    G = whh.shape[1]          # 3*Hp
    Op = wl.shape[1]

    if S == 0:                # empty sequence: hidden stays h0 = 0 -> linear bias only
        return jnp.broadcast_to(bl[0, :output_size], (B, output_size))

    # Hoisted input projection: ONE large matmul over all timesteps, written directly
    # time-major (fuses the (B,S,D)->(S,B,*) transpose into the matmul output layout),
    # with the r/z biases folded in.
    gx_all = jnp.einsum("bsd,dg->sbg", data.astype(jnp.float32), gxw,
                        precision=_PREC,
                        preferred_element_type=jnp.float32) + gxb    # (S, B, 3*Hp)

    # Time blocking: T steps per grid invocation (single invocation for small S).
    T = min(S, 16)
    n_blocks = pl.cdiv(S, T)
    needs_mask = (S % T) != 0

    flops = 2 * S * B * Hp * G + 2 * B * Hp * Op
    transcendentals = S * B * G
    bytes_accessed = 4 * (S * B * G + Hp * G + Hp + Hp * Op + Op + B * Op)

    vmem_est = 4 * (2 * T * B * G + Hp * G + Hp + Hp * Op + Op + 2 * B * Op + B * Hp)
    vmem_limit = int(min(max(2 * vmem_est, 32 * 1024 * 1024), 100 * 1024 * 1024))

    out_padded = pl.pallas_call(
        _make_kernel(T, S, needs_mask),
        out_shape=jax.ShapeDtypeStruct((B, Op), data.dtype),
        grid=(n_blocks,),
        in_specs=[
            # per-block (T, B, 3*Hp) gx tile, auto double-buffered by the pipeline
            pl.BlockSpec((T, B, G), lambda i: (i, 0, 0)),
            # weight/bias blocks: constant index map -> fetched once, VMEM-resident
            pl.BlockSpec((Hp, G), lambda i: (0, 0)),
            pl.BlockSpec((1, Hp), lambda i: (0, 0)),
            pl.BlockSpec((Hp, Op), lambda i: (0, 0)),
            pl.BlockSpec((1, Op), lambda i: (0, 0)),
        ],
        out_specs=pl.BlockSpec((B, Op), lambda i: (0, 0)),
        scratch_shapes=[pltpu.VMEM((B, Hp), jnp.float32)],   # hidden-state carry
        compiler_params=pltpu.CompilerParams(
            dimension_semantics=("arbitrary",),              # true recurrence in time
            vmem_limit_bytes=vmem_limit,
        ),
        cost_estimate=pl.CostEstimate(
            flops=flops,
            transcendentals=transcendentals,
            bytes_accessed=bytes_accessed,
        ),
    )(gx_all, whh, bhn, wl, bl)

    return out_padded[:, :output_size]


def _gru_linear_ref(data, w_ih, w_hh, b_ih, b_hh, w_lin, b_lin):
    """Pure-JAX reference matching torch.nn.GRU (1 layer, unidirectional) + Linear."""
    B, S, D = data.shape
    H = w_hh.shape[1]

    def dot(a, b):
        return jnp.dot(a, b, precision=_PREC, preferred_element_type=jnp.float32)

    h = jnp.zeros((B, H), jnp.float32)
    for t in range(S):
        x_t = data[:, t, :]
        gx = dot(x_t, w_ih.T) + b_ih
        gh = dot(h, w_hh.T) + b_hh
        r = jax.nn.sigmoid(gx[:, :H] + gh[:, :H])
        z = jax.nn.sigmoid(gx[:, H:2 * H] + gh[:, H:2 * H])
        n = jnp.tanh(gx[:, 2 * H:] + r * gh[:, 2 * H:])
        h = (1.0 - z) * n + z * h
    return dot(h, w_lin.T) + b_lin


if __name__ == "__main__":
    # Small shapes consistent with the module:
    # batch=2, seq=8, input_size=32, hidden_size=32, output_size=16,
    # n_layers=1, bidirectional=False, dropout in eval mode.
    B, S, D, H, O = 2, 8, 32, 32, 16

    key = jax.random.PRNGKey(0)
    k = jax.random.split(key, 7)
    data = jax.random.normal(k[0], (B, S, D), dtype=jnp.float32)

    bound = 1.0 / (H ** 0.5)   # mimic PyTorch GRU/Linear uniform init
    w_ih = jax.random.uniform(k[1], (3 * H, D), minval=-bound, maxval=bound, dtype=jnp.float32)
    w_hh = jax.random.uniform(k[2], (3 * H, H), minval=-bound, maxval=bound, dtype=jnp.float32)
    b_ih = jax.random.uniform(k[3], (3 * H,), minval=-bound, maxval=bound, dtype=jnp.float32)
    b_hh = jax.random.uniform(k[4], (3 * H,), minval=-bound, maxval=bound, dtype=jnp.float32)
    w_lin = jax.random.uniform(k[5], (O, H), minval=-bound, maxval=bound, dtype=jnp.float32)
    b_lin = jax.random.uniform(k[6], (O,), minval=-bound, maxval=bound, dtype=jnp.float32)

    params = prepare_params(w_ih, w_hh, b_ih, b_hh, w_lin, b_lin)

    out = gru_linear_forward(data, params, O)
    out = jax.block_until_ready(out)

    ref = _gru_linear_ref(data, w_ih, w_hh, b_ih, b_hh, w_lin, b_lin)
    assert out.shape == (B, O)
    assert jnp.allclose(out, ref, atol=1e-4, rtol=1e-4), float(jnp.max(jnp.abs(out - ref)))

    print("KERNEL_OK")
</pallas_src>

<mosaic_0001>
module attributes {stable_mosaic.version = 11 : i64} {
  func.func @kernel(%arg0: i32, %arg1: memref<8x2x384xf32, #tpu.memory_space<vmem>>, %arg2: memref<128x384xf32, #tpu.memory_space<vmem>>, %arg3: memref<1x128xf32, #tpu.memory_space<vmem>>, %arg4: memref<128x128xf32, #tpu.memory_space<vmem>>, %arg5: memref<1x128xf32, #tpu.memory_space<vmem>>, %arg6: memref<2x128xf32, #tpu.memory_space<vmem>>, %arg7: memref<2x128xf32, #tpu.memory_space<vmem>>) attributes {dimension_semantics = [#tpu.dimension_semantics<arbitrary>], iteration_bounds = array<i64: 1>, scalar_prefetch = 0 : i64, scratch_operands = 1 : i64, tpu.core_type = #tpu.core_type<tc>, window_params = [{transform_indices = @transform_0, window_bounds = array<i64: 8, 2, 384>}, {pipeline_mode = #tpu.pipeline_mode<synchronous>, transform_indices = @transform_1, window_bounds = array<i64: 128, 384>}, {pipeline_mode = #tpu.pipeline_mode<synchronous>, transform_indices = @transform_2, window_bounds = array<i64: 1, 128>}, {pipeline_mode = #tpu.pipeline_mode<synchronous>, transform_indices = @transform_3, window_bounds = array<i64: 128, 128>}, {pipeline_mode = #tpu.pipeline_mode<synchronous>, transform_indices = @transform_4, window_bounds = array<i64: 1, 128>}, {pipeline_mode = #tpu.pipeline_mode<synchronous>, transform_indices = @transform_5, window_bounds = array<i64: 2, 128>}]} {
    %c0_i32 = arith.constant 0 : i32
    %0 = arith.cmpi eq, %arg0, %c0_i32 : i32
    %1 = arith.extui %0 : i1 to i32
    %c0_i32_0 = arith.constant 0 : i32
    %2 = arith.cmpi ne, %1, %c0_i32_0 : i32
    scf.if %2 {
      %cst_50 = arith.constant 0.000000e+00 : f32
      %250 = vector.broadcast %cst_50 : f32 to vector<2x128xf32>
      %c0_51 = arith.constant 0 : index
      %c0_52 = arith.constant 0 : index
      %251 = vector.load %arg7[%c0_51, %c0_52] : memref<2x128xf32, #tpu.memory_space<vmem>>, vector<2x128xf32>
      tpu.vector_store %arg7[%c0_51, %c0_52], %250 {strides = array<i32>} : memref<2x128xf32, #tpu.memory_space<vmem>>, vector<2x128xf32>,
    } else {
    }
    %c0 = arith.constant 0 : index
    %c0_1 = arith.constant 0 : index
    %3 = vector.load %arg2[%c0, %c0_1] : memref<128x384xf32, #tpu.memory_space<vmem>>, vector<128x384xf32>
    %c0_2 = arith.constant 0 : index
    %c0_3 = arith.constant 0 : index
    %4 = vector.load %arg3[%c0_2, %c0_3] : memref<1x128xf32, #tpu.memory_space<vmem>>, vector<1x128xf32>
    %c0_4 = arith.constant 0 : index
    %c0_5 = arith.constant 0 : index
    %5 = vector.load %arg7[%c0_4, %c0_5] : memref<2x128xf32, #tpu.memory_space<vmem>>, vector<2x128xf32>
    %c0_i32_6 = arith.constant 0 : i32
    %6 = arith.index_cast %c0_i32_6 : i32 to index
    %c0_7 = arith.constant 0 : index
    %c0_8 = arith.constant 0 : index
    %7 = vector.load %arg1[%6, %c0_7, %c0_8] : memref<8x2x384xf32, #tpu.memory_space<vmem>>, vector<1x2x384xf32>
    %8 = vector.shape_cast %7 : vector<1x2x384xf32> to vector<2x384xf32>
    %cst = arith.constant dense<0.000000e+00> : vector<2x384xf32>
    %9 = tpu.matmul %5, %3, %cst {dimension_numbers = #tpu.dot_dimension_numbers<[1], [0], [0], [1], [0, 0, 1, 1], [], []>, precision = #tpu.contract_precision<fp32>} : vector<2x128xf32>, vector<128x384xf32>, vector<2x384xf32> -> vector<2x384xf32>
    %10 = vector.extract_strided_slice %8 {offsets = [0, 0], sizes = [2, 128], strides = [1, 1]} : vector<2x384xf32> to vector<2x128xf32>
    %11 = vector.extract_strided_slice %9 {offsets = [0, 0], sizes = [2, 128], strides = [1, 1]} : vector<2x384xf32> to vector<2x128xf32>
    %12 = arith.addf %10, %11 : vector<2x128xf32>
    %13 = arith.negf %12 : vector<2x128xf32>
    %14 = math.exp %13 : vector<2x128xf32>
    %cst_9 = arith.constant 1.000000e+00 : f32
    %15 = vector.broadcast %cst_9 : f32 to vector<2x128xf32>
    %16 = arith.addf %15, %14 : vector<2x128xf32>
    %17 = arith.divf %15, %16 : vector<2x128xf32>
    %18 = vector.extract_strided_slice %8 {offsets = [0, 128], sizes = [2, 128], strides = [1, 1]} : vector<2x384xf32> to vector<2x128xf32>
    %19 = vector.extract_strided_slice %9 {offsets = [0, 128], sizes = [2, 128], strides = [1, 1]} : vector<2x384xf32> to vector<2x128xf32>
    %20 = arith.addf %18, %19 : vector<2x128xf32>
    %21 = arith.negf %20 : vector<2x128xf32>
    %22 = math.exp %21 : vector<2x128xf32>
    %cst_10 = arith.constant 1.000000e+00 : f32
    %23 = vector.broadcast %cst_10 : f32 to vector<2x128xf32>
    %24 = arith.addf %23, %22 : vector<2x128xf32>
    %25 = arith.divf %23, %24 : vector<2x128xf32>
    %26 = vector.extract_strided_slice %8 {offsets = [0, 256], sizes = [2, 128], strides = [1, 1]} : vector<2x384xf32> to vector<2x128xf32>
    %27 = vector.extract_strided_slice %9 {offsets = [0, 256], sizes = [2, 128], strides = [1, 1]} : vector<2x384xf32> to vector<2x128xf32>
    %28 = vector.broadcast %4 : vector<1x128xf32> to vector<2x128xf32>
    %29 = arith.addf %27, %28 : vector<2x128xf32>
    %30 = arith.mulf %17, %29 : vector<2x128xf32>
    %31 = arith.addf %26, %30 : vector<2x128xf32>
    %32 = math.tanh %31 : vector<2x128xf32>
    %33 = arith.subf %5, %32 : vector<2x128xf32>
    %34 = arith.mulf %25, %33 : vector<2x128xf32>
    %35 = arith.addf %32, %34 : vector<2x128xf32>
    %c1_i32 = arith.constant 1 : i32
    %36 = arith.index_cast %c1_i32 : i32 to index
    %c0_11 = arith.constant 0 : index
    %c0_12 = arith.constant 0 : index
    %37 = vector.load %arg1[%36, %c0_11, %c0_12] : memref<8x2x384xf32, #tpu.memory_space<vmem>>, vector<1x2x384xf32>
    %38 = vector.shape_cast %37 : vector<1x2x384xf32> to vector<2x384xf32>
    %cst_13 = arith.constant dense<0.000000e+00> : vector<2x384xf32>
    %39 = tpu.matmul %35, %3, %cst_13 {dimension_numbers = #tpu.dot_dimension_numbers<[1], [0], [0], [1], [0, 0, 1, 1], [], []>, precision = #tpu.contract_precision<fp32>} : vector<2x128xf32>, vector<128x384xf32>, vector<2x384xf32> -> vector<2x384xf32>
    %40 = vector.extract_strided_slice %38 {offsets = [0, 0], sizes = [2, 128], strides = [1, 1]} : vector<2x384xf32> to vector<2x128xf32>
    %41 = vector.extract_strided_slice %39 {offsets = [0, 0], sizes = [2, 128], strides = [1, 1]} : vector<2x384xf32> to vector<2x128xf32>
    %42 = arith.addf %40, %41 : vector<2x128xf32>
    %43 = arith.negf %42 : vector<2x128xf32>
    %44 = math.exp %43 : vector<2x128xf32>
    %cst_14 = arith.constant 1.000000e+00 : f32
    %45 = vector.broadcast %cst_14 : f32 to vector<2x128xf32>
    %46 = arith.addf %45, %44 : vector<2x128xf32>
    %47 = arith.divf %45, %46 : vector<2x128xf32>
    %48 = vector.extract_strided_slice %38 {offsets = [0, 128], sizes = [2, 128], strides = [1, 1]} : vector<2x384xf32> to vector<2x128xf32>
    %49 = vector.extract_strided_slice %39 {offsets = [0, 128], sizes = [2, 128], strides = [1, 1]} : vector<2x384xf32> to vector<2x128xf32>
    %50 = arith.addf %48, %49 : vector<2x128xf32>
    %51 = arith.negf %50 : vector<2x128xf32>
    %52 = math.exp %51 : vector<2x128xf32>
    %cst_15 = arith.constant 1.000000e+00 : f32
    %53 = vector.broadcast %cst_15 : f32 to vector<2x128xf32>
    %54 = arith.addf %53, %52 : vector<2x128xf32>
    %55 = arith.divf %53, %54 : vector<2x128xf32>
    %56 = vector.extract_strided_slice %38 {offsets = [0, 256], sizes = [2, 128], strides = [1, 1]} : vector<2x384xf32> to vector<2x128xf32>
    %57 = vector.extract_strided_slice %39 {offsets = [0, 256], sizes = [2, 128], strides = [1, 1]} : vector<2x384xf32> to vector<2x128xf32>
    %58 = vector.broadcast %4 : vector<1x128xf32> to vector<2x128xf32>
    %59 = arith.addf %57, %58 : vector<2x128xf32>
    %60 = arith.mulf %47, %59 : vector<2x128xf32>
    %61 = arith.addf %56, %60 : vector<2x128xf32>
    %62 = math.tanh %61 : vector<2x128xf32>
    %63 = arith.subf %35, %62 : vector<2x128xf32>
    %64 = arith.mulf %55, %63 : vector<2x128xf32>
    %65 = arith.addf %62, %64 : vector<2x128xf32>
    %c2_i32 = arith.constant 2 : i32
    %66 = arith.index_cast %c2_i32 : i32 to index
    %c0_16 = arith.constant 0 : index
    %c0_17 = arith.constant 0 : index
    %67 = vector.load %arg1[%66, %c0_16, %c0_17] : memref<8x2x384xf32, #tpu.memory_space<vmem>>, vector<1x2x384xf32>
    %68 = vector.shape_cast %67 : vector<1x2x384xf32> to vector<2x384xf32>
    %cst_18 = arith.constant dense<0.000000e+00> : vector<2x384xf32>
    %69 = tpu.matmul %65, %3, %cst_18 {dimension_numbers = #tpu.dot_dimension_numbers<[1], [0], [0], [1], [0, 0, 1, 1], [], []>, precision = #tpu.contract_precision<fp32>} : vector<2x128xf32>, vector<128x384xf32>, vector<2x384xf32> -> vector<2x384xf32>
    %70 = vector.extract_strided_slice %68 {offsets = [0, 0], sizes = [2, 128], strides = [1, 1]} : vector<2x384xf32> to vector<2x128xf32>
    %71 = vector.extract_strided_slice %69 {offsets = [0, 0], sizes = [2, 128], strides = [1, 1]} : vector<2x384xf32> to vector<2x128xf32>
    %72 = arith.addf %70, %71 : vector<2x128xf32>
    %73 = arith.negf %72 : vector<2x128xf32>
    %74 = math.exp %73 : vector<2x128xf32>
    %cst_19 = arith.constant 1.000000e+00 : f32
    %75 = vector.broadcast %cst_19 : f32 to vector<2x128xf32>
    %76 = arith.addf %75, %74 : vector<2x128xf32>
    %77 = arith.divf %75, %76 : vector<2x128xf32>
    %78 = vector.extract_strided_slice %68 {offsets = [0, 128], sizes = [2, 128], strides = [1, 1]} : vector<2x384xf32> to vector<2x128xf32>
    %79 = vector.extract_strided_slice %69 {offsets = [0, 128], sizes = [2, 128], strides = [1, 1]} : vector<2x384xf32> to vector<2x128xf32>
    %80 = arith.addf %78, %79 : vector<2x128xf32>
    %81 = arith.negf %80 : vector<2x128xf32>
    %82 = math.exp %81 : vector<2x128xf32>
    %cst_20 = arith.constant 1.000000e+00 : f32
    %83 = vector.broadcast %cst_20 : f32 to vector<2x128xf32>
    %84 = arith.addf %83, %82 : vector<2x128xf32>
    %85 = arith.divf %83, %84 : vector<2x128xf32>
    %86 = vector.extract_strided_slice %68 {offsets = [0, 256], sizes = [2, 128], strides = [1, 1]} : vector<2x384xf32> to vector<2x128xf32>
    %87 = vector.extract_strided_slice %69 {offsets = [0, 256], sizes = [2, 128], strides = [1, 1]} : vector<2x384xf32> to vector<2x128xf32>
    %88 = vector.broadcast %4 : vector<1x128xf32> to vector<2x128xf32>
    %89 = arith.addf %87, %88 : vector<2x128xf32>
    %90 = arith.mulf %77, %89 : vector<2x128xf32>
    %91 = arith.addf %86, %90 : vector<2x128xf32>
    %92 = math.tanh %91 : vector<2x128xf32>
    %93 = arith.subf %65, %92 : vector<2x128xf32>
    %94 = arith.mulf %85, %93 : vector<2x128xf32>
    %95 = arith.addf %92, %94 : vector<2x128xf32>
    %c3_i32 = arith.constant 3 : i32
    %96 = arith.index_cast %c3_i32 : i32 to index
    %c0_21 = arith.constant 0 : index
    %c0_22 = arith.constant 0 : index
    %97 = vector.load %arg1[%96, %c0_21, %c0_22] : memref<8x2x384xf32, #tpu.memory_space<vmem>>, vector<1x2x384xf32>
    %98 = vector.shape_cast %97 : vector<1x2x384xf32> to vector<2x384xf32>
    %cst_23 = arith.constant dense<0.000000e+00> : vector<2x384xf32>
    %99 = tpu.matmul %95, %3, %cst_23 {dimension_numbers = #tpu.dot_dimension_numbers<[1], [0], [0], [1], [0, 0, 1, 1], [], []>, precision = #tpu.contract_precision<fp32>} : vector<2x128xf32>, vector<128x384xf32>, vector<2x384xf32> -> vector<2x384xf32>
    %100 = vector.extract_strided_slice %98 {offsets = [0, 0], sizes = [2, 128], strides = [1, 1]} : vector<2x384xf32> to vector<2x128xf32>
    %101 = vector.extract_strided_slice %99 {offsets = [0, 0], sizes = [2, 128], strides = [1, 1]} : vector<2x384xf32> to vector<2x128xf32>
    %102 = arith.addf %100, %101 : vector<2x128xf32>
    %103 = arith.negf %102 : vector<2x128xf32>
    %104 = math.exp %103 : vector<2x128xf32>
    %cst_24 = arith.constant 1.000000e+00 : f32
    %105 = vector.broadcast %cst_24 : f32 to vector<2x128xf32>
    %106 = arith.addf %105, %104 : vector<2x128xf32>
    %107 = arith.divf %105, %106 : vector<2x128xf32>
    %108 = vector.extract_strided_slice %98 {offsets = [0, 128], sizes = [2, 128], strides = [1, 1]} : vector<2x384xf32> to vector<2x128xf32>
    %109 = vector.extract_strided_slice %99 {offsets = [0, 128], sizes = [2, 128], strides = [1, 1]} : vector<2x384xf32> to vector<2x128xf32>
    %110 = arith.addf %108, %109 : vector<2x128xf32>
    %111 = arith.negf %110 : vector<2x128xf32>
    %112 = math.exp %111 : vector<2x128xf32>
    %cst_25 = arith.constant 1.000000e+00 : f32
    %113 = vector.broadcast %cst_25 : f32 to vector<2x128xf32>
    %114 = arith.addf %113, %112 : vector<2x128xf32>
    %115 = arith.divf %113, %114 : vector<2x128xf32>
    %116 = vector.extract_strided_slice %98 {offsets = [0, 256], sizes = [2, 128], strides = [1, 1]} : vector<2x384xf32> to vector<2x128xf32>
    %117 = vector.extract_strided_slice %99 {offsets = [0, 256], sizes = [2, 128], strides = [1, 1]} : vector<2x384xf32> to vector<2x128xf32>
    %118 = vector.broadcast %4 : vector<1x128xf32> to vector<2x128xf32>
    %119 = arith.addf %117, %118 : vector<2x128xf32>
    %120 = arith.mulf %107, %119 : vector<2x128xf32>
    %121 = arith.addf %116, %120 : vector<2x128xf32>
    %122 = math.tanh %121 : vector<2x128xf32>
    %123 = arith.subf %95, %122 : vector<2x128xf32>
    %124 = arith.mulf %115, %123 : vector<2x128xf32>
    %125 = arith.addf %122, %124 : vector<2x128xf32>
    %c4_i32 = arith.constant 4 : i32
    %126 = arith.index_cast %c4_i32 : i32 to index
    %c0_26 = arith.constant 0 : index
    %c0_27 = arith.constant 0 : index
    %127 = vector.load %arg1[%126, %c0_26, %c0_27] : memref<8x2x384xf32, #tpu.memory_space<vmem>>, vector<1x2x384xf32>
    %128 = vector.shape_cast %127 : vector<1x2x384xf32> to vector<2x384xf32>
    %cst_28 = arith.constant dense<0.000000e+00> : vector<2x384xf32>
    %129 = tpu.matmul %125, %3, %cst_28 {dimension_numbers = #tpu.dot_dimension_numbers<[1], [0], [0], [1], [0, 0, 1, 1], [], []>, precision = #tpu.contract_precision<fp32>} : vector<2x128xf32>, vector<128x384xf32>, vector<2x384xf32> -> vector<2x384xf32>
    %130 = vector.extract_strided_slice %128 {offsets = [0, 0], sizes = [2, 128], strides = [1, 1]} : vector<2x384xf32> to vector<2x128xf32>
    %131 = vector.extract_strided_slice %129 {offsets = [0, 0], sizes = [2, 128], strides = [1, 1]} : vector<2x384xf32> to vector<2x128xf32>
    %132 = arith.addf %130, %131 : vector<2x128xf32>
    %133 = arith.negf %132 : vector<2x128xf32>
    %134 = math.exp %133 : vector<2x128xf32>
    %cst_29 = arith.constant 1.000000e+00 : f32
    %135 = vector.broadcast %cst_29 : f32 to vector<2x128xf32>
    %136 = arith.addf %135, %134 : vector<2x128xf32>
    %137 = arith.divf %135, %136 : vector<2x128xf32>
    %138 = vector.extract_strided_slice %128 {offsets = [0, 128], sizes = [2, 128], strides = [1, 1]} : vector<2x384xf32> to vector<2x128xf32>
    %139 = vector.extract_strided_slice %129 {offsets = [0, 128], sizes = [2, 128], strides = [1, 1]} : vector<2x384xf32> to vector<2x128xf32>
    %140 = arith.addf %138, %139 : vector<2x128xf32>
    %141 = arith.negf %140 : vector<2x128xf32>
    %142 = math.exp %141 : vector<2x128xf32>
    %cst_30 = arith.constant 1.000000e+00 : f32
    %143 = vector.broadcast %cst_30 : f32 to vector<2x128xf32>
    %144 = arith.addf %143, %142 : vector<2x128xf32>
    %145 = arith.divf %143, %144 : vector<2x128xf32>
    %146 = vector.extract_strided_slice %128 {offsets = [0, 256], sizes = [2, 128], strides = [1, 1]} : vector<2x384xf32> to vector<2x128xf32>
    %147 = vector.extract_strided_slice %129 {offsets = [0, 256], sizes = [2, 128], strides = [1, 1]} : vector<2x384xf32> to vector<2x128xf32>
    %148 = vector.broadcast %4 : vector<1x128xf32> to vector<2x128xf32>
    %149 = arith.addf %147, %148 : vector<2x128xf32>
    %150 = arith.mulf %137, %149 : vector<2x128xf32>
    %151 = arith.addf %146, %150 : vector<2x128xf32>
    %152 = math.tanh %151 : vector<2x128xf32>
    %153 = arith.subf %125, %152 : vector<2x128xf32>
    %154 = arith.mulf %145, %153 : vector<2x128xf32>
    %155 = arith.addf %152, %154 : vector<2x128xf32>
    %c5_i32 = arith.constant 5 : i32
    %156 = arith.index_cast %c5_i32 : i32 to index
    %c0_31 = arith.constant 0 : index
    %c0_32 = arith.constant 0 : index
    %157 = vector.load %arg1[%156, %c0_31, %c0_32] : memref<8x2x384xf32, #tpu.memory_space<vmem>>, vector<1x2x384xf32>
    %158 = vector.shape_cast %157 : vector<1x2x384xf32> to vector<2x384xf32>
    %cst_33 = arith.constant dense<0.000000e+00> : vector<2x384xf32>
    %159 = tpu.matmul %155, %3, %cst_33 {dimension_numbers = #tpu.dot_dimension_numbers<[1], [0], [0], [1], [0, 0, 1, 1], [], []>, precision = #tpu.contract_precision<fp32>} : vector<2x128xf32>, vector<128x384xf32>, vector<2x384xf32> -> vector<2x384xf32>
    %160 = vector.extract_strided_slice %158 {offsets = [0, 0], sizes = [2, 128], strides = [1, 1]} : vector<2x384xf32> to vector<2x128xf32>
    %161 = vector.extract_strided_slice %159 {offsets = [0, 0], sizes = [2, 128], strides = [1, 1]} : vector<2x384xf32> to vector<2x128xf32>
    %162 = arith.addf %160, %161 : vector<2x128xf32>
    %163 = arith.negf %162 : vector<2x128xf32>
    %164 = math.exp %163 : vector<2x128xf32>
    %cst_34 = arith.constant 1.000000e+00 : f32
    %165 = vector.broadcast %cst_34 : f32 to vector<2x128xf32>
    %166 = arith.addf %165, %164 : vector<2x128xf32>
    %167 = arith.divf %165, %166 : vector<2x128xf32>
    %168 = vector.extract_strided_slice %158 {offsets = [0, 128], sizes = [2, 128], strides = [1, 1]} : vector<2x384xf32> to vector<2x128xf32>
    %169 = vector.extract_strided_slice %159 {offsets = [0, 128], sizes = [2, 128], strides = [1, 1]} : vector<2x384xf32> to vector<2x128xf32>
    %170 = arith.addf %168, %169 : vector<2x128xf32>
    %171 = arith.negf %170 : vector<2x128xf32>
    %172 = math.exp %171 : vector<2x128xf32>
    %cst_35 = arith.constant 1.000000e+00 : f32
    %173 = vector.broadcast %cst_35 : f32 to vector<2x128xf32>
    %174 = arith.addf %173, %172 : vector<2x128xf32>
    %175 = arith.divf %173, %174 : vector<2x128xf32>
    %176 = vector.extract_strided_slice %158 {offsets = [0, 256], sizes = [2, 128], strides = [1, 1]} : vector<2x384xf32> to vector<2x128xf32>
    %177 = vector.extract_strided_slice %159 {offsets = [0, 256], sizes = [2, 128], strides = [1, 1]} : vector<2x384xf32> to vector<2x128xf32>
    %178 = vector.broadcast %4 : vector<1x128xf32> to vector<2x128xf32>
    %179 = arith.addf %177, %178 : vector<2x128xf32>
    %180 = arith.mulf %167, %179 : vector<2x128xf32>
    %181 = arith.addf %176, %180 : vector<2x128xf32>
    %182 = math.tanh %181 : vector<2x128xf32>
    %183 = arith.subf %155, %182 : vector<2x128xf32>
    %184 = arith.mulf %175, %183 : vector<2x128xf32>
    %185 = arith.addf %182, %184 : vector<2x128xf32>
    %c6_i32 = arith.constant 6 : i32
    %186 = arith.index_cast %c6_i32 : i32 to index
    %c0_36 = arith.constant 0 : index
    %c0_37 = arith.constant 0 : index
    %187 = vector.load %arg1[%186, %c0_36, %c0_37] : memref<8x2x384xf32, #tpu.memory_space<vmem>>, vector<1x2x384xf32>
    %188 = vector.shape_cast %187 : vector<1x2x384xf32> to vector<2x384xf32>
    %cst_38 = arith.constant dense<0.000000e+00> : vector<2x384xf32>
    %189 = tpu.matmul %185, %3, %cst_38 {dimension_numbers = #tpu.dot_dimension_numbers<[1], [0], [0], [1], [0, 0, 1, 1], [], []>, precision = #tpu.contract_precision<fp32>} : vector<2x128xf32>, vector<128x384xf32>, vector<2x384xf32> -> vector<2x384xf32>
    %190 = vector.extract_strided_slice %188 {offsets = [0, 0], sizes = [2, 128], strides = [1, 1]} : vector<2x384xf32> to vector<2x128xf32>
    %191 = vector.extract_strided_slice %189 {offsets = [0, 0], sizes = [2, 128], strides = [1, 1]} : vector<2x384xf32> to vector<2x128xf32>
    %192 = arith.addf %190, %191 : vector<2x128xf32>
    %193 = arith.negf %192 : vector<2x128xf32>
    %194 = math.exp %193 : vector<2x128xf32>
    %cst_39 = arith.constant 1.000000e+00 : f32
    %195 = vector.broadcast %cst_39 : f32 to vector<2x128xf32>
    %196 = arith.addf %195, %194 : vector<2x128xf32>
    %197 = arith.divf %195, %196 : vector<2x128xf32>
    %198 = vector.extract_strided_slice %188 {offsets = [0, 128], sizes = [2, 128], strides = [1, 1]} : vector<2x384xf32> to vector<2x128xf32>
    %199 = vector.extract_strided_slice %189 {offsets = [0, 128], sizes = [2, 128], strides = [1, 1]} : vector<2x384xf32> to vector<2x128xf32>
    %200 = arith.addf %198, %199 : vector<2x128xf32>
    %201 = arith.negf %200 : vector<2x128xf32>
    %202 = math.exp %201 : vector<2x128xf32>
    %cst_40 = arith.constant 1.000000e+00 : f32
    %203 = vector.broadcast %cst_40 : f32 to vector<2x128xf32>
    %204 = arith.addf %203, %202 : vector<2x128xf32>
    %205 = arith.divf %203, %204 : vector<2x128xf32>
    %206 = vector.extract_strided_slice %188 {offsets = [0, 256], sizes = [2, 128], strides = [1, 1]} : vector<2x384xf32> to vector<2x128xf32>
    %207 = vector.extract_strided_slice %189 {offsets = [0, 256], sizes = [2, 128], strides = [1, 1]} : vector<2x384xf32> to vector<2x128xf32>
    %208 = vector.broadcast %4 : vector<1x128xf32> to vector<2x128xf32>
    %209 = arith.addf %207, %208 : vector<2x128xf32>
    %210 = arith.mulf %197, %209 : vector<2x128xf32>
    %211 = arith.addf %206, %210 : vector<2x128xf32>
    %212 = math.tanh %211 : vector<2x128xf32>
    %213 = arith.subf %185, %212 : vector<2x128xf32>
    %214 = arith.mulf %205, %213 : vector<2x128xf32>
    %215 = arith.addf %212, %214 : vector<2x128xf32>
    %c7_i32 = arith.constant 7 : i32
    %216 = arith.index_cast %c7_i32 : i32 to index
    %c0_41 = arith.constant 0 : index
    %c0_42 = arith.constant 0 : index
    %217 = vector.load %arg1[%216, %c0_41, %c0_42] : memref<8x2x384xf32, #tpu.memory_space<vmem>>, vector<1x2x384xf32>
    %218 = vector.shape_cast %217 : vector<1x2x384xf32> to vector<2x384xf32>
    %cst_43 = arith.constant dense<0.000000e+00> : vector<2x384xf32>
    %219 = tpu.matmul %215, %3, %cst_43 {dimension_numbers = #tpu.dot_dimension_numbers<[1], [0], [0], [1], [0, 0, 1, 1], [], []>, precision = #tpu.contract_precision<fp32>} : vector<2x128xf32>, vector<128x384xf32>, vector<2x384xf32> -> vector<2x384xf32>
    %220 = vector.extract_strided_slice %218 {offsets = [0, 0], sizes = [2, 128], strides = [1, 1]} : vector<2x384xf32> to vector<2x128xf32>
    %221 = vector.extract_strided_slice %219 {offsets = [0, 0], sizes = [2, 128], strides = [1, 1]} : vector<2x384xf32> to vector<2x128xf32>
    %222 = arith.addf %220, %221 : vector<2x128xf32>
    %223 = arith.negf %222 : vector<2x128xf32>
    %224 = math.exp %223 : vector<2x128xf32>
    %cst_44 = arith.constant 1.000000e+00 : f32
    %225 = vector.broadcast %cst_44 : f32 to vector<2x128xf32>
    %226 = arith.addf %225, %224 : vector<2x128xf32>
    %227 = arith.divf %225, %226 : vector<2x128xf32>
    %228 = vector.extract_strided_slice %218 {offsets = [0, 128], sizes = [2, 128], strides = [1, 1]} : vector<2x384xf32> to vector<2x128xf32>
    %229 = vector.extract_strided_slice %219 {offsets = [0, 128], sizes = [2, 128], strides = [1, 1]} : vector<2x384xf32> to vector<2x128xf32>
    %230 = arith.addf %228, %229 : vector<2x128xf32>
    %231 = arith.negf %230 : vector<2x128xf32>
    %232 = math.exp %231 : vector<2x128xf32>
    %cst_45 = arith.constant 1.000000e+00 : f32
    %233 = vector.broadcast %cst_45 : f32 to vector<2x128xf32>
    %234 = arith.addf %233, %232 : vector<2x128xf32>
    %235 = arith.divf %233, %234 : vector<2x128xf32>
    %236 = vector.extract_strided_slice %218 {offsets = [0, 256], sizes = [2, 128], strides = [1, 1]} : vector<2x384xf32> to vector<2x128xf32>
    %237 = vector.extract_strided_slice %219 {offsets = [0, 256], sizes = [2, 128], strides = [1, 1]} : vector<2x384xf32> to vector<2x128xf32>
    %238 = vector.broadcast %4 : vector<1x128xf32> to vector<2x128xf32>
    %239 = arith.addf %237, %238 : vector<2x128xf32>
    %240 = arith.mulf %227, %239 : vector<2x128xf32>
    %241 = arith.addf %236, %240 : vector<2x128xf32>
    %242 = math.tanh %241 : vector<2x128xf32>
    %243 = arith.subf %215, %242 : vector<2x128xf32>
    %244 = arith.mulf %235, %243 : vector<2x128xf32>
    %245 = arith.addf %242, %244 : vector<2x128xf32>
    %c8_i32 = arith.constant 8 : i32
    %c0_46 = arith.constant 0 : index
    %c0_47 = arith.constant 0 : index
    %246 = vector.load %arg7[%c0_46, %c0_47] : memref<2x128xf32, #tpu.memory_space<vmem>>, vector<2x128xf32>
    tpu.vector_store %arg7[%c0_46, %c0_47], %245 {strides = array<i32>} : memref<2x128xf32, #tpu.memory_space<vmem>>, vector<2x128xf32>,
    %c0_i32_48 = arith.constant 0 : i32
    %247 = arith.cmpi eq, %arg0, %c0_i32_48 : i32
    %248 = arith.extui %247 : i1 to i32
    %c0_i32_49 = arith.constant 0 : i32
    %249 = arith.cmpi ne, %248, %c0_i32_49 : i32
    scf.if %249 {
      %c0_50 = arith.constant 0 : index
      %c0_51 = arith.constant 0 : index
      %250 = vector.load %arg4[%c0_50, %c0_51] : memref<128x128xf32, #tpu.memory_space<vmem>>, vector<128x128xf32>
      %cst_52 = arith.constant dense<0.000000e+00> : vector<2x128xf32>
      %251 = tpu.matmul %245, %250, %cst_52 {dimension_numbers = #tpu.dot_dimension_numbers<[1], [0], [0], [1], [0, 0, 1, 1], [], []>, precision = #tpu.contract_precision<fp32>} : vector<2x128xf32>, vector<128x128xf32>, vector<2x128xf32> -> vector<2x128xf32>
      %c0_53 = arith.constant 0 : index
      %c0_54 = arith.constant 0 : index
      %252 = vector.load %arg5[%c0_53, %c0_54] : memref<1x128xf32, #tpu.memory_space<vmem>>, vector<1x128xf32>
      %253 = vector.broadcast %252 : vector<1x128xf32> to vector<2x128xf32>
      %254 = arith.addf %251, %253 : vector<2x128xf32>
      %c0_55 = arith.constant 0 : index
      %c0_56 = arith.constant 0 : index
      %255 = vector.load %arg6[%c0_55, %c0_56] : memref<2x128xf32, #tpu.memory_space<vmem>>, vector<2x128xf32>
      tpu.vector_store %arg6[%c0_55, %c0_56], %254 {strides = array<i32>} : memref<2x128xf32, #tpu.memory_space<vmem>>, vector<2x128xf32>,
    } else {
    }
    return
  }
  func.func @transform_0(%arg0: i32) -> (i32, i32, i32) {
    %c0_i32 = arith.constant 0 : i32
    %c0_i32_0 = arith.constant 0 : i32
    %c0_i32_1 = arith.constant 0 : i32
    return %arg0, %c0_i32, %c0_i32_0 : i32, i32, i32
  }
  func.func @transform_1(%arg0: i32) -> (i32, i32) {
    %c0_i32 = arith.constant 0 : i32
    %c0_i32_0 = arith.constant 0 : i32
    %c0_i32_1 = arith.constant 0 : i32
    return %c0_i32, %c0_i32_0 : i32, i32
  }
  func.func @transform_2(%arg0: i32) -> (i32, i32) {
    %c0_i32 = arith.constant 0 : i32
    %c0_i32_0 = arith.constant 0 : i32
    %c0_i32_1 = arith.constant 0 : i32
    return %c0_i32, %c0_i32_0 : i32, i32
  }
  func.func @transform_3(%arg0: i32) -> (i32, i32) {
    %c0_i32 = arith.constant 0 : i32
    %c0_i32_0 = arith.constant 0 : i32
    %c0_i32_1 = arith.constant 0 : i32
    return %c0_i32, %c0_i32_0 : i32, i32
  }
  func.func @transform_4(%arg0: i32) -> (i32, i32) {
    %c0_i32 = arith.constant 0 : i32
    %c0_i32_0 = arith.constant 0 : i32
    %c0_i32_1 = arith.constant 0 : i32
    return %c0_i32, %c0_i32_0 : i32, i32
  }
  func.func @transform_5(%arg0: i32) -> (i32, i32) {
    %c0_i32 = arith.constant 0 : i32
    %c0_i32_0 = arith.constant 0 : i32
    %c0_i32_1 = arith.constant 0 : i32
    return %c0_i32, %c0_i32_0 : i32, i32
  }
}

</mosaic_0001>

<bundles_post_ra>
// kernel: gru_linear_forward.1
= control target key start
LH: loop header
LB: loop body
LE: loop exit
PB: predicated region body
PF: predicated region fallthrough
CT: control target
= control target key end

     0   :  { %10 = vsyncpa [#allocation4], 0  ;;  %s21947_s0 = inlined_call_operand.vmem [shape: f32[8,2,384], index: 0, kind: input, shape index: {}]   ;;  %s21948_s1 = inlined_call_operand.hbm [shape: f32[128,384], index: 1, kind: input, shape index: {}]   ;;  %s21949_s2 = inlined_call_operand.vmem [shape: f32[1,128], index: 2, kind: input, shape index: {}]   ;;  %s21950_s3 = inlined_call_operand.vmem [shape: f32[128,128], index: 3, kind: input, shape index: {}]   ;;  %s21951_s4 = inlined_call_operand.vmem [shape: f32[1,128], index: 4, kind: input, shape index: {}]   ;;  %s21952_s5 = inlined_call_operand.hbm [shape: f32[2,128], index: 5, kind: output, shape index: {}]  }
   0x1   :  { %11 = vsyncpa [#allocation5], 0  ;;  %s18866_s18 = smov [#allocation3]   ;;  %s18818_s22 = scalar_lea.hbm %s21948_s1, 6144 }
   0x2   :  { %s19_s19 = sshll.u32 %s18866_s18, 4  ;;  %p18819_p0 = scmp.ne.s32.totalorder %s21948_s1, %s18818_s22  ;;  %s20_s19 = int_to_ptr.vmem [resolvable:$true] %s19_s19 }
   0x3   :  { %p18822_p1 = scmp.lt.u32.totalorder %s18818_s22, %s21948_s1 }
   0x5   :  { %p18824_p2 = pnand %p18822_p1, %p18819_p0 }
   0x7   :  { %18827 = shalt.err (!%p18824_p2)
}
   0x8   :  { %s18828_s27 = scalar_lea.vmem %s20_s19, 6144  ;;  %p18833_p4 = scmp.lt.s32.totalorder %s20_s19, %s20_s19 }
   0x9   :  { %p18829_p3 = scmp.ne.s32.totalorder %s20_s19, %s18828_s27  ;;  %p18834_p5 = scmp.lt.s32.totalorder %s18828_s27, %s18828_s27 }
   0xb   :  { %p18835_p6 = por %p18834_p5, %p18833_p4 }
   0xd   :  { %p18836_p7 = pnand %p18835_p6, %p18829_p3 }
   0xf   :  { %18839 = shalt.err (!%p18836_p7)
}
  0x10   :  { %s18867_s28 = smov 384   ;;  %s18868_s29 = smov 24  }
  0x11   :  { %25 = dma.hbm_to_vmem [thread:$0]  %s21948_s1, 6144, %s20_s19, [#allocation4], %s18867_s28, %s18867_s28, %s18868_s29  }
  0x12   :  { %18862 = dma.done.wait [#allocation4], 6144  }
  0x13   :  { %18863 = vsyncadd [#allocation4], 4294961152  ;;  %v21953_v0 = vmov 0.0   ;;  %v18918_v1 = vld [vmem:[#allocation3 + $0x8] sm:$0xff]  ;;  %v18920_v2 = vld [vmem:[#allocation3 + $0x20] sm:$0xff]  ;;  %vm18871_vm0 = vmmov 0  }
  0x14   :  { %187 = vmatprep.mubr.f32.mxu1 %v21953_v0  ;;  %39 = vst [vmem:[#allocation2] sm:$0x3] %v21953_v0  ;;  %664 = vmatprep.mubr.f32.mxu0 %v21953_v0  ;;  %v18922_v3 = vld [vmem:[#allocation3] sm:$0xff]  ;;  %v91_v4 = vand.u32 4294901760, %v18918_v1  ;;  %v95_v5 = vand.u32 4294901760, %v18920_v2  ;;  %v18926_v6 = vld [vmem:[#allocation3 + $0x18] sm:$0xff] }
  0x15   :  { %v93_v7 = vand.u32 4294901760, %v18922_v3  ;;  %v18929_v8 = vld [vmem:[#allocation3 + $0x38] sm:$0xff]  ;;  %v18931_v9 = vld [vmem:[#allocation3 + $0x50] sm:$0xff]  ;;  %v97_v10 = vand.u32 4294901760, %v18926_v6  ;;  %v18938_v14 = vld [vmem:[#allocation3 + $0x48] sm:$0xff]  ;;  %s18872_s8 = smov [#allocation6]  }
  0x16   :  { %v99_v11 = vand.u32 4294901760, %v18929_v8  ;;  %v103_v12 = vand.u32 4294901760, %v18931_v9  ;;  %v18936_v13 = vld [vmem:[#allocation3 + $0x30] sm:$0xff]  ;;  %v18940_v15 = vld [vmem:[#allocation3 + $0x68] sm:$0xff]  ;;  %v18946_v16 = vpack.c.bf16 %v95_v5, %v91_v4  ;;  %v21969_v18 = vand.u32 4294901760, %v18938_v14  ;;  %v18950_v19 = vld [vmem:[#allocation3 + $0x80] sm:$0xff] }
  0x17   :  { %v101_v17 = vand.u32 4294901760, %v18936_v13  ;;  %v21968_v20 = vand.u32 4294901760, %v18940_v15  ;;  %v18953_v21 = vld [vmem:[#allocation3 + $0x60] sm:$0xff]  ;;  %v18955_v22 = vld [vmem:[#allocation3 + $0x78] sm:$0xff]  ;;  %v18961_v23 = vpack.c.bf16 %v97_v10, %v93_v7  ;;  %v21963_v25 = vand.u32 4294901760, %v18950_v19  ;;  %v18973_v28 = vld [vmem:[#allocation3 + $0xb0] sm:$0xff] }
  0x18   :  { %22237 = vst [vmem:[#allocation9_spill] sm:$0xff] %v18946_v16  ;;  %v18967_v24 = vpack.c.bf16 %v103_v12, %v99_v11  ;;  %v21962_v26 = vand.u32 4294901760, %v18953_v21  ;;  %v18971_v27 = vld [vmem:[#allocation3 + $0x98] sm:$0xff]  ;;  %v18975_v29 = vld [vmem:[#allocation3 + $0x90] sm:$0xff]  ;;  %15805 = vmatprep.subr.bf16.mxu1 %v18946_v16  ;;  %15901 = vmatprep.subr.bf16.mxu0 %v18946_v16  ;;  %v21961_v30 = vand.u32 4294901760, %v18955_v22  ;;  %v21955_v32 = vand.u32 4294901760, %v18973_v28 }
  0x19   :  { %22238 = vst [vmem:[#allocation10_spill] sm:$0xff] %v18961_v23  ;;  %v21960_v31 = vand.u32 4294901760, %v18971_v27  ;;  %v18982_v33 = vld [vmem:[#allocation3 + $0xa8] sm:$0xff]  ;;  %v18986_v35 = vld [vmem:[#allocation3 + $0xe0] sm:$0xff]  ;;  %15807 = vmatpush1.bf16.msra.mxu1 %v18961_v23  ;;  %15903 = vmatpush1.bf16.msra.mxu0 %v18961_v23  ;;  %v18994_v36 = vpack.c.bf16 %v21969_v18, %v101_v17  ;;  %v21959_v37 = vand.u32 4294901760, %v18975_v29  ;;  %v19001_v41 = vld [vmem:[#allocation3 + $0xd8] sm:$0xff]  ;;  %v19011_v43 = vpack.c.bf16 %v21963_v25, %v21968_v20 }
  0x1a   :  { %22239 = vst [vmem:[#allocation11_spill] sm:$0xff] %v18967_v24  ;;  %v18984_v34 = vld [vmem:[#allocation3 + $0xc8] sm:$0xff]  ;;  %v21956_v38 = vand.u32 4294901760, %v18982_v33  ;;  %v18999_v40 = vld [vmem:[#allocation3 + $0xc0] sm:$0xff]  ;;  %v19003_v42 = vld [vmem:[#allocation3 + $0xf8] sm:$0xff]  ;;  %15809 = vmatprep.subr.bf16.mxu1 %v18967_v24  ;;  %15905 = vmatprep.subr.bf16.mxu0 %v18967_v24  ;;  %v21957_v44 = vand.u32 4294901760, %v18986_v35  ;;  %v19032_v54 = vpack.c.bf16 %v21961_v30, %v21962_v26 }
  0x1b   :  { %22240 = vst [vmem:[#allocation12_spill] sm:$0xff] %v18994_v36  ;;  %v21958_v39 = vand.u32 4294901760, %v18984_v34  ;;  %22241 = vst [vmem:[#allocation13_spill] sm:$0xff] %v19011_v43  ;;  %v21967_v45 = vand.u32 4294901760, %v18999_v40  ;;  %v19015_v46 = vld [vmem:[#allocation3 + $0x110] sm:$0xff]  ;;  %v19019_v48 = vld [vmem:[#allocation3 + $0x108] sm:$0xff]  ;;  %v19038_v55 = vpack.c.bf16 %v21955_v32, %v21960_v31 }
  0x1c   :  { %v19017_v47 = vld [vmem:[#allocation3 + $0xf0] sm:$0xff]  ;;  %v21964_v49 = vand.u32 4294901760, %v19001_v41  ;;  %v21966_v50 = vand.u32 4294901760, %v19003_v42  ;;  %v21965_v51 = vand.u32 4294901760, %v19015_v46  ;;  %v19024_v52 = vld [vmem:[#allocation3 + $0x128] sm:$0xff]  ;;  %v19026_v53 = vld [vmem:[#allocation3 + $0x140] sm:$0xff]  ;;  %v19052_v59 = vpack.c.bf16 %v21956_v38, %v21959_v37 }
  0x1d   :  { %22242 = vst [vmem:[#allocation14_spill] sm:$0xff] %v19032_v54  ;;  %22243 = vst [vmem:[#allocation15_spill] sm:$0xff] %v19038_v55  ;;  %v19040_v56 = vld [vmem:[#allocation3 + $0x120] sm:$0xff]  ;;  %v19042_v57 = vld [vmem:[#allocation3 + $0x138] sm:$0xff]  ;;  %15811 = vmatpush1.bf16.msra.mxu1 %v18994_v36  ;;  %15907 = vmatpush1.bf16.msra.mxu0 %v18994_v36  ;;  %v19058_v60 = vpack.c.bf16 %v21957_v44, %v21958_v39  ;;  %v21975_v61 = vand.u32 4294901760, %v19017_v47  ;;  %v21972_v62 = vand.u32 4294901760, %v19019_v48 }
  0x1e   :  { %v19044_v58 = vld [vmem:[#allocation3 + $0x158] sm:$0xff]  ;;  %22244 = vst [vmem:[#allocation16_spill] sm:$0xff] %v19052_v59  ;;  %v19062_v63 = vld [vmem:[#allocation3 + $0x170] sm:$0xff]  ;;  %15813 = vmatprep.subr.bf16.mxu1 %v19011_v43  ;;  %15909 = vmatprep.subr.bf16.mxu0 %v19011_v43  ;;  %v19072_v38 = vpack.c.bf16 %v21964_v49, %v21967_v45  ;;  %v19078_v44 = vpack.c.bf16 %v21965_v51, %v21966_v50  ;;  %v21971_v39 = vand.u32 4294901760, %v19024_v52  ;;  %v21970_v37 = vand.u32 4294901760, %v19026_v53  ;;  %v19082_v31 = vld [vmem:[#allocation3 + $0x168] sm:$0xff] }
  0x1f   :  { %22245 = vst [vmem:[#allocation17_spill] sm:$0xff] %v19058_v60  ;;  %v19064_v0 = vld [vmem:[#allocation3 + $0x150] sm:$0xff]  ;;  %v89_v32 = vld [vmem:[#allocation2] sm:$0x3]  ;;  %v21974_v30 = vand.u32 4294901760, %v19040_v56  ;;  %v21973_v26 = vand.u32 4294901760, %v19042_v57  ;;  %v19090_v49 = vsub.f32 %v18918_v1, %v91_v4  ;;  %v19097_v45 = vsub.f32 %v18920_v2, %v95_v5 }
  0x20   :  { %22246 = vst [vmem:[#allocation18_spill] sm:$0xff] %v19072_v38  ;;  %22247 = vst [vmem:[#allocation19_spill] sm:$0xff] %v19078_v44  ;;  %v21991_v25 = vand.u32 4294901760, %v19044_v58  ;;  %v21990_v51 = vand.u32 4294901760, %v19062_v63  ;;  %v19099_v20 = vand.u32 4294901760, %v89_v32  ;;  %v19108_v4 = vsub.f32 %v18922_v3, %v93_v7  ;;  %s12962_s9 = sshll.u32 %s18872_s8, 4  ;;  %s12963_s9 = int_to_ptr.vmem [resolvable:$true] %s12962_s9 }
  0x21   :  { %15815 = vmatpush1.bf16.msra.mxu1 %v19032_v54  ;;  %15911 = vmatpush1.bf16.msra.mxu0 %v19032_v54  ;;  %v201_v1 = vand.u32 4294901760, %v19090_v49  ;;  %v19113_v2 = vsub.f32 %v18926_v6, %v97_v10  ;;  %v213_v5 = vand.u32 4294901760, %v19097_v45  ;;  %v19124_v50 = vsub.f32 %v18929_v8, %v99_v11  ;;  %s18840_s10 = scalar_lea.vmem %s12963_s9, 32  ;;  %p18845_p9 = scmp.lt.s32.totalorder %s12963_s9, %s12963_s9 }
  0x22   :  { %22248 = vst [vmem:[#allocation20_spill] sm:$0xff] %v19099_v20  ;;  %15817 = vmatprep.subr.bf16.mxu1 %v19038_v55  ;;  %15913 = vmatprep.subr.bf16.mxu0 %v19038_v55  ;;  %v19119_v18 = vsub.f32 %v89_v32, %v19099_v20  ;;  %v19129_v3 = vsub.f32 %v18931_v9, %v103_v12  ;;  %v207_v7 = vand.u32 4294901760, %v19108_v4  ;;  %v22259_v36 = vand.u32 4294901760, %v18938_v14  ;;  %p18841_p8 = scmp.ne.s32.totalorder %s12963_s9, %s18840_s10  ;;  %p18846_p10 = scmp.lt.s32.totalorder %s18840_s10, %s18840_s10 }
  0x23   :  { %v202_v6 = vsub.f32 %v19090_v49, %v201_v1  ;;  %v219_v10 = vand.u32 4294901760, %v19113_v2  ;;  %v19137_v32 = vsub.f32 %v18936_v13, %v101_v17  ;;  %v19143_v8 = vpack.c.bf16 %v21972_v62, %v21975_v61 }
  0x24   :  { %22249 = vst [vmem:[#allocation21_spill] sm:$0xff] %v19119_v18  ;;  %v19149_v9 = vpack.c.bf16 %v21970_v37, %v21971_v39  ;;  %v214_v11 = vsub.f32 %v19097_v45, %v213_v5  ;;  %v225_v12 = vand.u32 4294901760, %v19124_v50  ;;  %v19159_v13 = vpack.c.bf16 %v21973_v26, %v21974_v30  ;;  %p18847_p11 = por %p18846_p10, %p18845_p9 }
  0x25   :  { %22250 = vst [vmem:[#allocation22_spill] sm:$0xff] %v19137_v32  ;;  %22251 = vst [vmem:[#allocation23_spill] sm:$0xff] %v19143_v8  ;;  %15819 = vmatpush1.bf16.msra.mxu1 %v19052_v59  ;;  %15915 = vmatpush1.bf16.msra.mxu0 %v19052_v59  ;;  %v19162_v17 = vand.u32 4294901760, %v19119_v18  ;;  %v208_v37 = vsub.f32 %v19108_v4, %v207_v7  ;;  %v220_v39 = vsub.f32 %v19113_v2, %v219_v10 }
  0x26   :  { %22252 = vst [vmem:[#allocation24_spill] sm:$0xff] %v19149_v9  ;;  %22253 = vst [vmem:[#allocation25_spill] sm:$0xff] %v19159_v13  ;;  %15821 = vmatprep.subr.bf16.mxu1 %v19058_v60  ;;  %15917 = vmatprep.subr.bf16.mxu0 %v19058_v60  ;;  %v19172_v62 = vpack.c.bf16 %v21990_v51, %v21991_v25  ;;  %v22256_v26 = vand.u32 4294901760, %v19064_v0  ;;  %v22257_v30 = vand.u32 4294901760, %v19082_v31  ;;  %v203_v59 = vand.u32 4294901760, %v202_v6  ;;  %p18848_p12 = pnand %p18847_p11, %p18841_p8 }
  0x27   :  { %22254 = vst [vmem:[#allocation26_spill] sm:$0xff] %v19162_v17  ;;  %v237_v55 = vand.u32 4294901760, %v19129_v3  ;;  %v215_v54 = vand.u32 4294901760, %v214_v11  ;;  %v226_v43 = vsub.f32 %v19124_v50, %v225_v12  ;;  %v231_v60 = vand.u32 4294901760, %v19137_v32 }
  0x28   :  { %22255 = vst [vmem:[#allocation27_spill] sm:$0xff] %v19172_v62  ;;  %v19178_v61 = vpack.c.bf16 %v22257_v30, %v22256_v26  ;;  %v19186_v24 = vsub.f32 %v18938_v14, %v22259_v36  ;;  %v19188_v51 = vpack.c.bf16 %v213_v5, %v201_v1  ;;  %v209_v25 = vand.u32 4294901760, %v208_v37 }
  0x29   :  { %v221_v23 = vand.u32 4294901760, %v220_v39  ;;  %v19190_v20 = vpack.c.bf16 %v219_v10, %v207_v7  ;;  %15823 = vmatpush1.bf16.msra.mxu1 %v19072_v38  ;;  %15919 = vmatpush1.bf16.msra.mxu0 %v19072_v38  ;;  %v191_v26 = vsub.f32 %v19119_v18, %v19162_v17  ;;  %v238_v30 = vsub.f32 %v19129_v3, %v237_v55 }
  0x2a   :  { %22258 = vst [vmem:[#allocation28_spill] sm:$0xff] %v19178_v61  ;;  %22260 = vst [vmem:[#allocation29_spill] sm:$0xff] %v19186_v24  ;;  %v232_v6 = vsub.f32 %v19137_v32, %v231_v60  ;;  %v243_v14 = vand.u32 4294901760, %v19186_v24  ;;  %15825 = vmatprep.subr.bf16.mxu1 %v19078_v44  ;;  %15921 = vmatprep.subr.bf16.mxu0 %v19078_v44  ;;  %v22263_v36 = vand.u32 4294901760, %v18940_v15  ;;  %v22264_v39 = vand.u32 4294901760, %v18950_v19 }
  0x2b   :  { %22261 = vst [vmem:[#allocation30_spill] sm:$0xff] %v19188_v51  ;;  %22262 = vst [vmem:[#allocation31_spill] sm:$0xff] %v19190_v20  ;;  %v22265_v5 = vand.u32 4294901760, %v18953_v21  ;;  %v19216_v10 = vpack.c.bf16 %v215_v54, %v203_v59  ;;  %v227_v11 = vand.u32 4294901760, %v226_v43  ;;  %v22267_v44 = vand.u32 4294901760, %v18955_v22 }
  0x2c   :  { %v19204_v37 = vsub.f32 %v18940_v15, %v22263_v36  ;;  %v19209_v1 = vsub.f32 %v18950_v19, %v22264_v39  ;;  %v244_v18 = vsub.f32 %v19186_v24, %v243_v14  ;;  %v19224_v36 = vpack.c.bf16 %v221_v23, %v209_v25 }
  0x2d   :  { %v19214_v7 = vsub.f32 %v18953_v21, %v22265_v5  ;;  %22266 = vst [vmem:[#allocation32_spill] sm:$0xff] %v19216_v10  ;;  %v19222_v15 = vsub.f32 %v18955_v22, %v22267_v44  ;;  %15827 = vmatpush1.bf16.msra.mxu1 %v19143_v8  ;;  %15923 = vmatpush1.bf16.msra.mxu0 %v19143_v8  ;;  %v239_v21 = vand.u32 4294901760, %v238_v30  ;;  %v22270_v54 = vand.u32 4294901760, %v18971_v27 }
  0x2e   :  { %22269 = vst [vmem:[#allocation34_spill] sm:$0xff] %v19224_v36  ;;  %v249_v19 = vand.u32 4294901760, %v19204_v37  ;;  %v261_v39 = vand.u32 4294901760, %v19209_v1  ;;  %v22271_v23 = vand.u32 4294901760, %v18973_v28  ;;  %15829 = vmatprep.subr.bf16.mxu1 %v19149_v9  ;;  %15925 = vmatprep.subr.bf16.mxu0 %v19149_v9  ;;  %v233_v44 = vand.u32 4294901760, %v232_v6 }
  0x2f   :  { %22268 = vst [vmem:[#allocation33_spill] sm:$0xff] %v19222_v15  ;;  %v255_v38 = vand.u32 4294901760, %v19214_v7  ;;  %v267_v43 = vand.u32 4294901760, %v19222_v15  ;;  %v19235_v22 = vsub.f32 %v18971_v27, %v22270_v54  ;;  %v245_v59 = vand.u32 4294901760, %v244_v18 }
  0x30   :  { %v19240_v25 = vsub.f32 %v18973_v28, %v22271_v23  ;;  %v250_v30 = vsub.f32 %v19204_v37, %v249_v19  ;;  %v262_v5 = vsub.f32 %v19209_v1, %v261_v39  ;;  %v19246_v8 = vpack.c.bf16 %v237_v55, %v225_v12 }
  0x31   :  { %v19248_v24 = vpack.c.bf16 %v243_v14, %v231_v60  ;;  %v256_v27 = vsub.f32 %v19214_v7, %v255_v38  ;;  %v268_v54 = vsub.f32 %v19222_v15, %v267_v43  ;;  %v273_v32 = vand.u32 4294901760, %v19235_v22  ;;  %15831 = vmatpush1.bf16.msra.mxu1 %v19159_v13  ;;  %15927 = vmatpush1.bf16.msra.mxu0 %v19159_v13 }
  0x32   :  { %22272 = vst [vmem:[#allocation35_spill] sm:$0xff] %v19246_v8  ;;  %v251_v28 = vand.u32 4294901760, %v250_v30  ;;  %v263_v23 = vand.u32 4294901760, %v262_v5  ;;  %v285_v9 = vand.u32 4294901760, %v19240_v25  ;;  %v22274_v55 = vand.u32 4294901760, %v18975_v29  ;;  %15833 = vmatprep.subr.bf16.mxu1 %v19172_v62  ;;  %15929 = vmatprep.subr.bf16.mxu0 %v19172_v62 }
  0x33   :  { %22273 = vst [vmem:[#allocation36_spill] sm:$0xff] %v19248_v24  ;;  %v257_v18 = vand.u32 4294901760, %v256_v27  ;;  %v269_v6 = vand.u32 4294901760, %v268_v54  ;;  %v22275_v12 = vand.u32 4294901760, %v18982_v33  ;;  %v19268_v30 = vand.u32 4294901760, %v191_v26 }
  0x34   :  { %v19259_v60 = vsub.f32 %v18975_v29, %v22274_v55  ;;  %v19270_v5 = vpack.c.bf16 %v239_v21, %v227_v11  ;;  %v19272_v27 = vpack.c.bf16 %v245_v59, %v233_v44  ;;  %v19274_v54 = vpack.c.bf16 %v261_v39, %v249_v19 }
  0x35   :  { %v19264_v14 = vsub.f32 %v18982_v33, %v22275_v12  ;;  %22276 = vst [vmem:[#allocation37_spill] sm:$0xff] %v19268_v30  ;;  %v274_v29 = vsub.f32 %v19235_v22, %v273_v32  ;;  %v286_v55 = vsub.f32 %v19240_v25, %v285_v9  ;;  %v19280_v12 = vpack.c.bf16 %v263_v23, %v251_v28 }
  0x36   :  { %22277 = vst [vmem:[#allocation38_spill] sm:$0xff] %v19270_v5  ;;  %22278 = vst [vmem:[#allocation39_spill] sm:$0xff] %v19272_v27  ;;  %v279_v13 = vand.u32 4294901760, %v19259_v60  ;;  %v19282_v15 = vpack.c.bf16 %v267_v43, %v255_v38  ;;  %v22282_v26 = vand.u32 4294901760, %v18984_v34  ;;  %v22283_v19 = vand.u32 4294901760, %v18986_v35  ;;  %15835 = vmatpush1.bf16.msra.mxu1 %v19178_v61  ;;  %15931 = vmatpush1.bf16.msra.mxu0 %v19178_v61 }
  0x37   :  { %22279 = vst [vmem:[#allocation40_spill] sm:$0xff] %v19274_v54  ;;  %v291_v33 = vand.u32 4294901760, %v19264_v14  ;;  %22280 = vst [vmem:[#allocation41_spill] sm:$0xff] %v19280_v12  ;;  %v19296_v21 = vpack.c.bf16 %v269_v6, %v257_v18  ;;  %15837 = vmatprep.subr.bf16.mxu1 %v19216_v10  ;;  %15933 = vmatprep.subr.bf16.mxu0 %v19188_v51  ;;  %v22286_v59 = vand.u32 4294901760, %v18999_v40  ;;  %v275_v23 = vand.u32 4294901760, %v274_v29 }
  0x38   :  { %22281 = vst [vmem:[#allocation42_spill] sm:$0xff] %v19282_v15  ;;  %v19287_v11 = vsub.f32 %v18984_v34, %v22282_v26  ;;  %v19292_v39 = vsub.f32 %v18986_v35, %v22283_v19  ;;  %v280_v44 = vsub.f32 %v19259_v60, %v279_v13  ;;  %v19302_v34 = vpack.c.bf16 %v285_v9, %v273_v32 }
  0x39   :  { %22284 = vst [vmem:[#allocation43_spill] sm:$0xff] %v19296_v21  ;;  %v292_v38 = vsub.f32 %v19264_v14, %v291_v33  ;;  %v19309_v28 = vsub.f32 %v18999_v40, %v22286_v59  ;;  %v287_v18 = vand.u32 4294901760, %v286_v55  ;;  %v22287_v6 = vand.u32 4294901760, %v19001_v41  ;;  %193 = vmatmul.mubr.f32.vlgmr.msra.gmra.mrb[0].mxu1 %v19268_v30  ;;  %668 = vmatmul.mubr.f32.vlgmr.msra.gmra.mrb[0].mxu0 %v19162_v17 }
  0x3a   :  { %22285 = vst [vmem:[#allocation44_spill] sm:$0xff] %v19302_v34  ;;  %v297_v43 = vand.u32 4294901760, %v19287_v11  ;;  %v309_v35 = vand.u32 4294901760, %v19292_v39  ;;  %v22288_v19 = vand.u32 4294901760, %v19003_v42  ;;  %v281_v9 = vand.u32 4294901760, %v280_v44  ;;  %15839 = vmatpush1.bf16.msra.mxu1 %v19224_v36  ;;  %15935 = vmatpush1.bf16.msra.mxu0 %v19190_v20 }
  0x3b   :  { %v19314_v26 = vsub.f32 %v19001_v41, %v22287_v6  ;;  %v293_v51 = vand.u32 4294901760, %v292_v38  ;;  %v303_v29 = vand.u32 4294901760, %v19309_v28  ;;  %v22289_v59 = vand.u32 4294901760, %v19015_v46  ;;  %15841 = vmatprep.subr.bf16.mxu1 %v19270_v5  ;;  %15937 = vmatprep.subr.bf16.mxu0 %v19246_v8 }
  0x3c   :  { %v19319_v32 = vsub.f32 %v19003_v42, %v22288_v19  ;;  %v298_v40 = vsub.f32 %v19287_v11, %v297_v43  ;;  %v310_v41 = vsub.f32 %v19292_v39, %v309_v35  ;;  %v19337_v44 = vpack.c.bf16 %v291_v33, %v279_v13 }
  0x3d   :  { %v315_v55 = vand.u32 4294901760, %v19314_v26  ;;  %v19333_v6 = vsub.f32 %v19015_v46, %v22289_v59  ;;  %v304_v38 = vsub.f32 %v19309_v28, %v303_v29  ;;  %v22291_v19 = vand.u32 4294901760, %v19017_v47 }
  0x3e   :  { %v321_v42 = vand.u32 4294901760, %v19319_v32  ;;  %22290 = vst [vmem:[#allocation45_spill] sm:$0xff] %v19337_v44  ;;  %v19345_v36 = vpack.c.bf16 %v287_v18, %v275_v23  ;;  %v19347_v17 = vpack.c.bf16 %v309_v35, %v297_v43  ;;  %v22294_v5 = vmov 0.0   ;;  %15843 = vmatpush1.bf16.msra.mxu1 %v19272_v27  ;;  %15939 = vmatpush1.bf16.msra.mxu0 %v19248_v24 }
  0x3f   :  { %v19343_v20 = vsub.f32 %v19017_v47, %v22291_v19  ;;  %v316_v46 = vsub.f32 %v19314_v26, %v315_v55  ;;  %v333_v59 = vand.u32 4294901760, %v19333_v6  ;;  %423 = vmatprep.mubr.f32.mxu1 %v22294_v5  ;;  %834 = vmatprep.mubr.f32.mxu0 %v22294_v5  ;;  %v19353_v13 = vpack.c.bf16 %v293_v51, %v281_v9 }
  0x40   :  { %22292 = vst [vmem:[#allocation46_spill] sm:$0xff] %v19345_v36  ;;  %22293 = vst [vmem:[#allocation47_spill] sm:$0xff] %v19347_v17  ;;  %v322_v33 = vsub.f32 %v19319_v32, %v321_v42  ;;  %v22295_v47 = vand.u32 4294901760, %v19019_v48  ;;  %v299_v43 = vand.u32 4294901760, %v298_v40  ;;  %v311_v35 = vand.u32 4294901760, %v310_v41  ;;  %15845 = vmatprep.subr.bf16.mxu1 %v19280_v12  ;;  %15941 = vmatprep.subr.bf16.mxu0 %v19274_v54 }
  0x41   :  { %v327_v8 = vand.u32 4294901760, %v19343_v20  ;;  %v19364_v18 = vpack.c.bf16 %v315_v55, %v303_v29  ;;  %v334_v51 = vsub.f32 %v19333_v6, %v333_v59  ;;  %v305_v9 = vand.u32 4294901760, %v304_v38 }
  0x42   :  { %v19360_v23 = vsub.f32 %v19019_v48, %v22295_v47  ;;  %v22297_v48 = vand.u32 4294901760, %v19024_v52  ;;  %v22298_v24 = vand.u32 4294901760, %v19026_v53  ;;  %v317_v29 = vand.u32 4294901760, %v316_v46  ;;  %15847 = vmatpush1.bf16.msra.mxu1 %v19296_v21  ;;  %15943 = vmatpush1.bf16.msra.mxu0 %v19282_v15 }
  0x43   :  { %22296 = vst [vmem:[#allocation48_spill] sm:$0xff] %v19364_v18  ;;  %v328_v41 = vsub.f32 %v19343_v20, %v327_v8  ;;  %v22299_v55 = vand.u32 4294901760, %v19040_v56  ;;  %v22300_v38 = vand.u32 4294901760, %v19042_v57  ;;  %15849 = vmatprep.subr.bf16.mxu1 %v19345_v36  ;;  %15945 = vmatprep.subr.bf16.mxu0 %v19302_v34  ;;  %v19415_v15 = vpack.c.bf16 %v333_v59, %v321_v42 }
  0x44   :  { %v339_v19 = vand.u32 4294901760, %v19360_v23  ;;  %v19373_v47 = vsub.f32 %v19024_v52, %v22297_v48  ;;  %v19378_v40 = vsub.f32 %v19026_v53, %v22298_v24  ;;  %v323_v52 = vand.u32 4294901760, %v322_v33 }
  0x45   :  { %v19384_v54 = vsub.f32 %v19040_v56, %v22299_v55  ;;  %v19389_v12 = vsub.f32 %v19042_v57, %v22300_v38  ;;  %v335_v48 = vand.u32 4294901760, %v334_v51  ;;  %v19395_v53 = vpack.c.bf16 %v311_v35, %v299_v43  ;;  %22303 = vst [vmem:[#allocation49_spill] sm:$0xff] %v19415_v15 }
  0x46   :  { %v340_v27 = vsub.f32 %v19360_v23, %v339_v19  ;;  %v345_v24 = vand.u32 4294901760, %v19373_v47  ;;  %v357_v56 = vand.u32 4294901760, %v19378_v40  ;;  %v22301_v33 = vand.u32 4294901760, %v19044_v58  ;;  %15851 = vmatpush1.bf16.msra.mxu1 %v19353_v13  ;;  %15947 = vmatpush1.bf16.msra.mxu0 %v19337_v44 }
  0x47   :  { %v351_v46 = vand.u32 4294901760, %v19384_v54  ;;  %v363_v55 = vand.u32 4294901760, %v19389_v12  ;;  %v22302_v43 = vand.u32 4294901760, %v19062_v63  ;;  %v19413_v38 = vpack.c.bf16 %v317_v29, %v305_v9  ;;  %15853 = vmatprep.subr.bf16.mxu1 %v19395_v53  ;;  %15949 = vmatprep.subr.bf16.mxu0 %v19347_v17 }
  0x48   :  { %v346_v57 = vsub.f32 %v19373_v47, %v345_v24  ;;  %v19406_v51 = vsub.f32 %v19044_v58, %v22301_v33  ;;  %v329_v21 = vand.u32 4294901760, %v328_v41  ;;  %v358_v36 = vsub.f32 %v19378_v40, %v357_v56 }
  0x49   :  { %v19411_v35 = vsub.f32 %v19062_v63, %v22302_v43  ;;  %v19418_v34 = vpack.c.bf16 %v335_v48, %v323_v52  ;;  %v341_v30 = vand.u32 4294901760, %v340_v27  ;;  %v352_v10 = vsub.f32 %v19384_v54, %v351_v46 }
  0x4a   :  { %v369_v58 = vand.u32 4294901760, %v19406_v51  ;;  %v347_v63 = vand.u32 4294901760, %v346_v57  ;;  %v359_v33 = vand.u32 4294901760, %v358_v36  ;;  %v364_v9 = vsub.f32 %v19389_v12, %v363_v55  ;;  %15855 = vmatpush1.bf16.msra.mxu1 %v19413_v38  ;;  %15951 = vmatpush1.bf16.msra.mxu0 %v19364_v18 }
  0x4b   :  { %v381_v42 = vand.u32 4294901760, %v19411_v35  ;;  %v22304_v59 = vand.u32 4294901760, %v19064_v0  ;;  %v22305_v41 = vand.u32 4294901760, %v19082_v31  ;;  %v19440_v48 = vpack.c.bf16 %v339_v19, %v327_v8  ;;  %15857 = vmatprep.subr.bf16.mxu1 %v19418_v34  ;;  %15953 = vmatprep.subr.bf16.mxu0 %v19415_v15 }
  0x4c   :  { %v370_v27 = vsub.f32 %v19406_v51, %v369_v58  ;;  %v19442_v57 = vpack.c.bf16 %v357_v56, %v345_v24 }
  0x4d   :  { %v19432_v29 = vsub.f32 %v19064_v0, %v22304_v59  ;;  %v19437_v52 = vsub.f32 %v19082_v31, %v22305_v41  ;;  %v382_v36 = vsub.f32 %v19411_v35, %v381_v42  ;;  %22306 = vst [vmem:[#allocation50_spill] sm:$0xff] %v19440_v48  ;;  %v19448_v0 = vpack.c.bf16 %v341_v30, %v329_v21 }
  0x4e   :  { %22307 = vst [vmem:[#allocation51_spill] sm:$0xff] %v19442_v57  ;;  %v19450_v59 = vpack.c.bf16 %v359_v33, %v347_v63  ;;  %v353_v31 = vand.u32 4294901760, %v352_v10  ;;  %v365_v41 = vand.u32 4294901760, %v364_v9  ;;  %v371_v8 = vand.u32 4294901760, %v370_v27  ;;  %15955 = vmatpush1.bf16.msra.mxu0 %v19440_v48 }
  0x4f   :  { %v375_v43 = vand.u32 4294901760, %v19432_v29  ;;  %v387_v17 = vand.u32 4294901760, %v19437_v52  ;;  %v383_v19 = vand.u32 4294901760, %v382_v36  ;;  %15859 = vmatpush1.bf16.msra.mxu1 %v19448_v0  ;;  %v19460_v21 = vpack.c.bf16 %v363_v55, %v351_v46  ;;  %15957 = vmatprep.subr.bf16.mxu0 %v19442_v57 }
  0x50   :  { %v19458_v30 = vpack.c.bf16 %v365_v41, %v353_v31  ;;  %15861 = vmatprep.subr.bf16.mxu1 %v19450_v59  ;;  %v19466_v9 = vpack.c.bf16 %v381_v42, %v369_v58  ;;  %v19478_v46 = vpack.c.bf16 %v19097_v45, %v19090_v49  ;;  %v19484_v55 = vpack.c.bf16 %v19113_v2, %v19108_v4  ;;  %v22316_v58 = vld [vmem:[#allocation20_spill] sm:$0xff]  ;;  %v22317_v45 = vld [vmem:[#allocation10_spill] sm:$0xff]  ;;  %v22319_v42 = vld [vmem:[#allocation29_spill] sm:$0xff] }
  0x51   :  { %v376_v24 = vsub.f32 %v19432_v29, %v375_v43  ;;  %v388_v56 = vsub.f32 %v19437_v52, %v387_v17  ;;  %22308 = vst [vmem:[#allocation52_spill] sm:$0xff] %v19460_v21  ;;  %v19464_v33 = vpack.c.bf16 %v383_v19, %v371_v8  ;;  %v19472_v36 = vpack.c.bf16 %v387_v17, %v375_v43  ;;  %v22318_v49 = vld [vmem:[#allocation22_spill] sm:$0xff]  ;;  %v22321_v2 = vld [vmem:[#allocation11_spill] sm:$0xff]  ;;  %v22324_v43 = vld [vmem:[#allocation33_spill] sm:$0xff] }
  0x52   :  { %22310 = vst [vmem:[#allocation54_spill] sm:$0xff] %v19466_v9  ;;  %15959 = vmatpush1.bf16.msra.mxu0 %v19460_v21  ;;  %22313 = vst [vmem:[#allocation57_spill] sm:$0xff] %v19478_v46  ;;  %v19490_v17 = vpack.c.bf16 %v19129_v3, %v19124_v50  ;;  %v19498_v4 = vpack.c.bf16 %v22319_v42, %v22318_v49  ;;  %v19504_v50 = vpack.c.bf16 %v19209_v1, %v19204_v37  ;;  %v22323_v3 = vld [vmem:[#allocation12_spill] sm:$0xff]  ;;  %v22326_v41 = vld [vmem:[#allocation13_spill] sm:$0xff] }
  0x53   :  { %v377_v10 = vand.u32 4294901760, %v376_v24  ;;  %v389_v63 = vand.u32 4294901760, %v388_v56  ;;  %22309 = vst [vmem:[#allocation53_spill] sm:$0xff] %v19464_v33  ;;  %15863 = vmatpush1.bf16.msra.mxu1 %v19458_v30  ;;  %22312 = vst [vmem:[#allocation56_spill] sm:$0xff] %v19472_v36  ;;  %15961 = vmatprep.subr.bf16.mxu0 %v19466_v9  ;;  %v19512_v31 = vpack.c.bf16 %v22324_v43, %v19214_v7  ;;  %v22328_v1 = vld [vmem:[#allocation14_spill] sm:$0xff]  ;;  %v22330_v7 = vld [vmem:[#allocation15_spill] sm:$0xff] }
  0x54   :  { %15865 = vmatprep.subr.bf16.mxu1 %v19464_v33  ;;  %22314 = vst [vmem:[#allocation58_spill] sm:$0xff] %v19484_v55  ;;  %22315 = vst [vmem:[#allocation59_spill] sm:$0xff] %v19490_v17  ;;  %v19518_v37 = vpack.c.bf16 %v19240_v25, %v19235_v22  ;;  %v19524_v8 = vpack.c.bf16 %v19264_v14, %v19259_v60  ;;  %v19530_v19 = vpack.c.bf16 %v19292_v39, %v19287_v11  ;;  %v22332_v22 = vld [vmem:[#allocation16_spill] sm:$0xff]  ;;  %v22334_v60 = vld [vmem:[#allocation17_spill] sm:$0xff] }
  0x55   :  { %v19470_v27 = vpack.c.bf16 %v389_v63, %v377_v10  ;;  %22320 = vst [vmem:[#allocation20_spill] sm:$0xff] %v19498_v4  ;;  %22322 = vst [vmem:[#allocation22_spill] sm:$0xff] %v19504_v50  ;;  %v19536_v25 = vpack.c.bf16 %v19314_v26, %v19309_v28  ;;  %v19542_v14 = vpack.c.bf16 %v19333_v6, %v19319_v32  ;;  %v22336_v11 = vld [vmem:[#allocation18_spill] sm:$0xff]  ;;  %v22338_v28 = vld [vmem:[#allocation19_spill] sm:$0xff] }
  0x56   :  { %15963 = vmatpush1.bf16.msra.mxu0 %v19472_v36  ;;  %22325 = vst [vmem:[#allocation29_spill] sm:$0xff] %v19512_v31  ;;  %22327 = vst [vmem:[#allocation33_spill] sm:$0xff] %v19518_v37  ;;  %v19548_v39 = vpack.c.bf16 %v19360_v23, %v19343_v20  ;;  %v19554_v26 = vpack.c.bf16 %v19378_v40, %v19373_v47  ;;  %v42_v24 = vld [vmem:[#allocation3 + $0x10] sm:$0xff]  ;;  %v45_v56 = vld [vmem:[#allocation3 + $0x28] sm:$0xff]  ;;  %v19560_v6 = vpack.c.bf16 %v19389_v12, %v19384_v54 }
  0x57   :  { %22311 = vst [vmem:[#allocation55_spill] sm:$0xff] %v19470_v27  ;;  %15867 = vmatpush1.bf16.msra.mxu1 %v19470_v27  ;;  %15965 = vmatprep.subr.bf16.mxu0 %v18946_v16  ;;  %22329 = vst [vmem:[#allocation60_spill] sm:$0xff] %v19524_v8  ;;  %v22340_v32 = vld [vmem:[#allocation23_spill] sm:$0xff]  ;;  %v22342_v20 = vld [vmem:[#allocation24_spill] sm:$0xff]  ;;  %v19566_v23 = vpack.c.bf16 %v19411_v35, %v19406_v51  ;;  %v947_v47 = vand.u32 4294901760, %v42_v24  ;;  %v950_v40 = vand.u32 4294901760, %v45_v56 }
  0x58   :  { %15869 = vmatprep.subr.bf16.mxu1 %v19478_v46  ;;  %22331 = vst [vmem:[#allocation61_spill] sm:$0xff] %v19530_v19  ;;  %22333 = vst [vmem:[#allocation62_spill] sm:$0xff] %v19536_v25  ;;  %v48_v10 = vld [vmem:[#allocation3 + $0x40] sm:$0xff]  ;;  %v51_v63 = vld [vmem:[#allocation3 + $0x58] sm:$0xff]  ;;  %v19572_v54 = vpack.c.bf16 %v19437_v52, %v19432_v29 }
  0x59   :  { %836 = vmatmul.mubr.f32.vlgmr.msra.gmra.mrb[0].mxu0 %v22316_v58  ;;  %22335 = vst [vmem:[#allocation63_spill] sm:$0xff] %v19542_v14  ;;  %22337 = vst [vmem:[#allocation64_spill] sm:$0xff] %v19548_v39  ;;  %v22344_v49 = vld [vmem:[#allocation25_spill] sm:$0xff]  ;;  %v19574_v12 = vsub.f32 %v42_v24, %v947_v47  ;;  %v19576_v42 = vsub.f32 %v45_v56, %v950_v40  ;;  %v953_v51 = vand.u32 4294901760, %v48_v10  ;;  %v956_v35 = vand.u32 4294901760, %v51_v63  ;;  %v54_v43 = vld [vmem:[#allocation3 + $0x70] sm:$0xff] }
  0x5a   :  { %425 = vmatmul.mubr.f32.vlgmr.msra.gmra.mrb[0].mxu1 %v22316_v58  ;;  %15967 = vmatpush1.bf16.msra.mxu0 %v22317_v45  ;;  %22339 = vst [vmem:[#allocation65_spill] sm:$0xff] %v19554_v26  ;;  %22341 = vst [vmem:[#allocation66_spill] sm:$0xff] %v19560_v6  ;;  %v57_v36 = vld [vmem:[#allocation3 + $0x88] sm:$0xff]  ;;  %v19586_v29 = vpack.c.bf16 %v950_v40, %v947_v47  ;;  %v22055_v56 = vmov 0.0|0.0   ;;  %v959_v57 = vand.u32 4294901760, %v54_v43 }
  0x5b   :  { %15871 = vmatpush1.bf16.msra.mxu1 %v19484_v55  ;;  %15969 = vmatprep.subr.bf16.mxu0 %v22321_v2  ;;  %22343 = vst [vmem:[#allocation67_spill] sm:$0xff] %v19566_v23  ;;  %22345 = vst [vmem:[#allocation68_spill] sm:$0xff] %v19572_v54  ;;  %v19580_v9 = vsub.f32 %v48_v10, %v953_v51  ;;  %v19582_v21 = vsub.f32 %v51_v63, %v956_v35  ;;  %v22064_v52 = vand.u32 4294901760, %v19574_v12  ;;  %v60_v10 = vld [vmem:[#allocation3 + $0xa0] sm:$0xff]  ;;  %v63_v63 = vld [vmem:[#allocation3 + $0xb8] sm:$0xff] }
  0x5c   :  { %15873 = vmatprep.subr.bf16.mxu1 %v19490_v17  ;;  %559 = vmatprep.mubr.f32.mxu1 %v22294_v5  ;;  %v22063_v24 = vand.u32 4294901760, %v19576_v42  ;;  %v962_v48 = vand.u32 4294901760, %v57_v36  ;;  %v22347_v47 = vld [vmem:[#allocation21_spill] sm:$0xff]  ;;  %v19602_v18 = vsub.f32 %v54_v43, %v959_v57 }
  0x5d   :  { %938 = vmatprep.mubr.f32.mxu0 %v22294_v5  ;;  %v22074_v40 = vand.u32 4294901760, %v19580_v9  ;;  %v22362_v17 = vand.u32 4294901760, %v19582_v21 }
  0x5e   :  { %15971 = vmatpush1.bf16.msra.mxu0 %v22323_v3  ;;  %v19596_v15 = vpack.c.bf16 %v22063_v24, %v22064_v52  ;;  %v19604_v44 = vsub.f32 %v57_v36, %v962_v48  ;;  %v22348_v24 = vmov 0.0|0.0   ;;  %v965_v52 = vand.u32 4294901760, %v60_v10  ;;  %v66_v36 = vld [vmem:[#allocation3 + $0xd0] sm:$0xff] }
  0x5f   :  { %15875 = vmatpush1.bf16.msra.mxu1 %v19498_v4  ;;  %15973 = vmatprep.subr.bf16.mxu0 %v22326_v41 }
  0x60   :  { %15877 = vmatprep.subr.bf16.mxu1 %v19504_v50  ;;  %22346 = vst [vmem:[#allocation69_spill] sm:$0xff] %v19596_v15  ;;  %v22357_v50 = vand.u32 4294901760, %v19574_v12 }
  0x62   :  { %15975 = vmatpush1.bf16.msra.mxu0 %v22328_v1 }
  0x63   :  { %15879 = vmatpush1.bf16.msra.mxu1 %v19512_v31  ;;  %15977 = vmatprep.subr.bf16.mxu0 %v22330_v7 }
  0x64   :  { %15881 = vmatprep.subr.bf16.mxu1 %v19518_v37 }
  0x66   :  { %15979 = vmatpush1.bf16.msra.mxu0 %v22332_v22 }
  0x67   :  { %15883 = vmatpush1.bf16.msra.mxu1 %v19524_v8  ;;  %15981 = vmatprep.subr.bf16.mxu0 %v22334_v60 }
  0x68   :  { %15885 = vmatprep.subr.bf16.mxu1 %v19530_v19 }
  0x6a   :  { %15983 = vmatpush1.bf16.msra.mxu0 %v22336_v11 }
  0x6b   :  { %15887 = vmatpush1.bf16.msra.mxu1 %v19536_v25  ;;  %15985 = vmatprep.subr.bf16.mxu0 %v22338_v28 }
  0x6c   :  { %15889 = vmatprep.subr.bf16.mxu1 %v19542_v14 }
  0x6e   :  { %15987 = vmatpush1.bf16.msra.mxu0 %v22340_v32 }
  0x6f   :  { %15891 = vmatpush1.bf16.msra.mxu1 %v19548_v39  ;;  %15989 = vmatprep.subr.bf16.mxu0 %v22342_v20  ;;  %v75_v39 = vld [vmem:[#allocation3 + $0x118] sm:$0xff] }
  0x70   :  { %15893 = vmatprep.subr.bf16.mxu1 %v19554_v26 }
  0x72   :  { %15991 = vmatpush1.bf16.msra.mxu0 %v22344_v49 }
  0x73   :  { %15895 = vmatpush1.bf16.msra.mxu1 %v19560_v6  ;;  %15993 = vmatprep.subr.bf16.mxu0 %v19172_v62  ;;  %v19623_v6 = vsub.f32 %v60_v10, %v965_v52  ;;  %v72_v10 = vld [vmem:[#allocation3 + $0x100] sm:$0xff] }
  0x74   :  { %15897 = vmatprep.subr.bf16.mxu1 %v19566_v23  ;;  %v69_v23 = vld [vmem:[#allocation3 + $0xe8] sm:$0xff] }
  0x76   :  { %15995 = vmatpush1.bf16.msra.mxu0 %v19178_v61 }
  0x77   :  { %15899 = vmatpush1.bf16.msra.mxu1 %v19572_v54  ;;  %16141 = vmatprep.subr.bf16.mxu0 %v18946_v16  ;;  %v19607_v16 = vpack.c.bf16 %v956_v35, %v953_v51  ;;  %v968_v54 = vand.u32 4294901760, %v63_v63  ;;  %v22084_v51 = vand.u32 4294901760, %v19602_v18  ;;  %v22083_v35 = vand.u32 4294901760, %v19604_v44 }
  0x78   :  { %15996 = vmatprep.subr.bf16.mxu1 %v22055_v56  ;;  %v22073_v56 = vand.u32 4294901760, %v19582_v21 }
  0x79   :  { %940 = vmatmul.mubr.f32.vlgmr.msra.gmra.mrb[0].mxu0 %v22316_v58  ;;  %v19625_v26 = vsub.f32 %v63_v63, %v968_v54  ;;  %v22092_v63 = vand.u32 4294901760, %v19623_v6  ;;  %v19646_v25 = vpack.c.bf16 %v968_v54, %v965_v52 }
  0x7a   :  { %562 = vmatmul.mubr.f32.vlgmr.msra.gmra.mrb[0].mxu1 %v22347_v47  ;;  %v19616_v43 = vpack.c.bf16 %v22073_v56, %v22074_v40  ;;  %16143 = vmatpush1.bf16.msra.mxu0 %v22317_v45  ;;  %v19628_v56 = vpack.c.bf16 %v962_v48, %v959_v57  ;;  %v971_v40 = vand.u32 4294901760, %v66_v36  ;;  %v974_v45 = vand.u32 4294901760, %v69_v23 }
  0x7b   :  { %15998 = vmatpush3.bf16.msra.mxu1 %v19586_v29  ;;  %13946 = vmatprep.mubr.msk.f32.mxu1 %vm18871_vm0, %v22294_v5  ;;  %v22091_v48 = vand.u32 4294901760, %v19625_v26 }
  0x7c   :  { %15999 = vmatprep.subr.bf16.mxu1 %v22348_v24  ;;  %22349 = vst [vmem:[#allocation21_spill] sm:$0xff] %v19616_v43  ;;  %16145 = vmatprep.subr.bf16.mxu0 %v22321_v2  ;;  %v19635_v2 = vpack.c.bf16 %v22083_v35, %v22084_v51  ;;  %v19641_v57 = vsub.f32 %v66_v36, %v971_v40  ;;  %v977_v35 = vand.u32 4294901760, %v72_v10  ;;  %v980_v51 = vand.u32 4294901760, %v75_v39  ;;  %v78_v36 = vld [vmem:[#allocation3 + $0x130] sm:$0xff] }
  0x7d   :  { %1717 = vmatprep.mubr.f32.mxu0 %v22294_v5  ;;  %v19643_v14 = vsub.f32 %v69_v23, %v974_v45  ;;  %v19664_v8 = vpack.c.bf16 %v974_v45, %v971_v40 }
  0x7e   :  { %22350 = vst [vmem:[#allocation70_spill] sm:$0xff] %v19635_v2  ;;  %16147 = vmatpush1.bf16.msra.mxu0 %v22323_v3  ;;  %v81_v3 = vld [vmem:[#allocation3 + $0x148] sm:$0xff]  ;;  %v22100_v23 = vand.u32 4294901760, %v19641_v57  ;;  %v19659_v52 = vsub.f32 %v72_v10, %v977_v35  ;;  %v19661_v19 = vsub.f32 %v75_v39, %v980_v51  ;;  %v84_v10 = vld [vmem:[#allocation3 + $0x160] sm:$0xff]  ;;  %v19682_v31 = vpack.c.bf16 %v980_v51, %v977_v35 }
  0x7f   :  { %16001 = vmatpush3.bf16.msra.mxu1 %v19607_v16  ;;  %16149 = vmatprep.subr.bf16.mxu0 %v22326_v41  ;;  %v19653_v41 = vpack.c.bf16 %v22091_v48, %v22092_v63  ;;  %v22099_v54 = vand.u32 4294901760, %v19643_v14  ;;  %22352 = vst [vmem:[#allocation72_spill] sm:$0xff] %v19664_v8  ;;  %v983_v48 = vand.u32 4294901760, %v78_v36  ;;  %v986_v63 = vand.u32 4294901760, %v81_v3 }
  0x80   :  { %16002 = vmatprep.subr.bf16.mxu1 %v22348_v24  ;;  %v22106_v39 = vand.u32 4294901760, %v19659_v52  ;;  %v22105_v45 = vand.u32 4294901760, %v19661_v19  ;;  %22354 = vst [vmem:[#allocation74_spill] sm:$0xff] %v19682_v31 }
  0x81   :  { %22351 = vst [vmem:[#allocation71_spill] sm:$0xff] %v19653_v41  ;;  %v19677_v40 = vsub.f32 %v78_v36, %v983_v48  ;;  %v19679_v37 = vsub.f32 %v81_v3, %v986_v63 }
  0x82   :  { %16151 = vmatpush1.bf16.msra.mxu0 %v22328_v1  ;;  %v87_v1 = vld [vmem:[#allocation3 + $0x178] sm:$0xff] }
  0x83   :  { %16004 = vmatpush3.bf16.msra.mxu1 %v19628_v56  ;;  %16153 = vmatprep.subr.bf16.mxu0 %v22330_v7  ;;  %v19671_v7 = vpack.c.bf16 %v22099_v54, %v22100_v23  ;;  %v989_v54 = vand.u32 4294901760, %v84_v10  ;;  %v992_v23 = vand.u32 4294901760, %v87_v1  ;;  %v1124_v3 = vand.u32 4294901760, %v19677_v40 }
  0x84   :  { %16005 = vmatprep.subr.bf16.mxu1 %v22348_v24  ;;  %v1131_v36 = vand.u32 4294901760, %v19679_v37 }
  0x85   :  { %22353 = vst [vmem:[#allocation73_spill] sm:$0xff] %v19671_v7  ;;  %v19695_v51 = vsub.f32 %v84_v10, %v989_v54  ;;  %v19697_v35 = vsub.f32 %v87_v1, %v992_v23  ;;  %v19713_v1 = vpack.c.bf16 %v992_v23, %v989_v54  ;;  %v22364_v54 = vand.u32 4294901760, %v19602_v18 }
  0x86   :  { %16155 = vmatpush1.bf16.msra.mxu0 %v22332_v22  ;;  %v19700_v22 = vpack.c.bf16 %v986_v63, %v983_v48 }
  0x87   :  { %16007 = vmatpush3.bf16.msra.mxu1 %v19646_v25  ;;  %16157 = vmatprep.subr.bf16.mxu0 %v22334_v60  ;;  %v19689_v60 = vpack.c.bf16 %v22105_v45, %v22106_v39  ;;  %v1041_v45 = vsub.f32 %v19574_v12, %v22357_v50  ;;  %v22358_v39 = vand.u32 4294901760, %v19576_v42  ;;  %22360 = vst [vmem:[#allocation78_spill] sm:$0xff] %v19713_v1  ;;  %v1138_v63 = vand.u32 4294901760, %v19695_v51 }
  0x88   :  { %16008 = vmatprep.subr.bf16.mxu1 %v22348_v24  ;;  %22356 = vst [vmem:[#allocation76_spill] sm:$0xff] %v19700_v22  ;;  %v1145_v48 = vand.u32 4294901760, %v19697_v35 }
  0x89   :  { %22355 = vst [vmem:[#allocation75_spill] sm:$0xff] %v19689_v60  ;;  %v1042_v50 = vand.u32 4294901760, %v1041_v45 }
  0x8a   :  { %16159 = vmatpush1.bf16.msra.mxu0 %v22336_v11  ;;  %v19709_v11 = vpack.c.bf16 %v1131_v36, %v1124_v3  ;;  %v19725_v23 = vpack.c.bf16 %v1145_v48, %v1138_v63 }
  0x8b   :  { %16010 = vmatpush3.bf16.msra.mxu1 %v19664_v8  ;;  %16161 = vmatprep.subr.bf16.mxu0 %v22338_v28  ;;  %v1048_v28 = vsub.f32 %v19576_v42, %v22358_v39  ;;  %v22361_v39 = vand.u32 4294901760, %v19580_v9 }
  0x8c   :  { %16011 = vmatprep.subr.bf16.mxu1 %v22348_v24  ;;  %22359 = vst [vmem:[#allocation77_spill] sm:$0xff] %v19709_v11  ;;  %22363 = vst [vmem:[#allocation79_spill] sm:$0xff] %v19725_v23 }
  0x8d   :  { %v1049_v10 = vand.u32 4294901760, %v1048_v28  ;;  %v1055_v4 = vsub.f32 %v19580_v9, %v22361_v39  ;;  %v1069_v28 = vsub.f32 %v19602_v18, %v22364_v54  ;;  %v22368_v54 = vand.u32 4294901760, %v19623_v6 }
  0x8e   :  { %16163 = vmatpush1.bf16.msra.mxu0 %v22340_v32  ;;  %v1062_v32 = vsub.f32 %v19582_v21, %v22362_v17  ;;  %v22365_v17 = vand.u32 4294901760, %v19604_v44 }
  0x8f   :  { %16013 = vmatpush3.bf16.msra.mxu1 %v19682_v31  ;;  %16165 = vmatprep.subr.bf16.mxu0 %v22342_v20  ;;  %v19733_v45 = vpack.c.bf16 %v1049_v10, %v1042_v50  ;;  %v1056_v39 = vand.u32 4294901760, %v1055_v4  ;;  %v1083_v46 = vsub.f32 %v19623_v6, %v22368_v54  ;;  %v22369_v50 = vand.u32 4294901760, %v19625_v26 }
  0x90   :  { %16014 = vmatprep.subr.bf16.mxu1 %v22348_v24  ;;  %v1063_v20 = vand.u32 4294901760, %v1062_v32  ;;  %v1076_v55 = vsub.f32 %v19604_v44, %v22365_v17  ;;  %v1070_v10 = vand.u32 4294901760, %v1069_v28 }
  0x91   :  { %v1090_v4 = vsub.f32 %v19625_v26, %v22369_v50 }
  0x92   :  { %16167 = vmatpush1.bf16.msra.mxu0 %v22344_v49  ;;  %v22366_v49 = vld [vmem:[#allocation32_spill] sm:$0xff]  ;;  %v19749_v32 = vpack.c.bf16 %v1063_v20, %v1056_v39  ;;  %v1077_v17 = vand.u32 4294901760, %v1076_v55  ;;  %v22371_v20 = vand.u32 4294901760, %v19643_v14 }
  0x93   :  { %16016 = vmatpush3.bf16.msra.mxu1 %v19700_v22  ;;  %16169 = vmatprep.subr.bf16.mxu0 %v19172_v62  ;;  %v22367_v62 = vld [vmem:[#allocation37_spill] sm:$0xff] }
  0x94   :  { %16017 = vmatprep.subr.bf16.mxu1 %v22348_v24  ;;  %v19755_v54 = vpack.c.bf16 %v1077_v17, %v1070_v10  ;;  %v1104_v28 = vsub.f32 %v19643_v14, %v22371_v20  ;;  %v22373_v17 = vand.u32 4294901760, %v19661_v19  ;;  %v1125_v20 = vsub.f32 %v19677_v40, %v1124_v3 }
  0x95   :  { %v1146_v3 = vsub.f32 %v19697_v35, %v1145_v48 }
  0x96   :  { %16171 = vmatpush1.bf16.msra.mxu0 %v19178_v61  ;;  %v22370_v61 = vand.u32 4294901760, %v19641_v57  ;;  %v1105_v39 = vand.u32 4294901760, %v1104_v28  ;;  %v1139_v28 = vsub.f32 %v19695_v51, %v1138_v63 }
  0x97   :  { %16019 = vmatpush3.bf16.msra.mxu1 %v19713_v1  ;;  %16173 = vmatprep.subr.bf16.mxu0 %v22366_v49  ;;  %v1091_v49 = vand.u32 4294901760, %v1090_v4  ;;  %v22372_v4 = vand.u32 4294901760, %v19659_v52 }
  0x98   :  { %16020 = vmatprep.subr.bf16.mxu1 %v22348_v24  ;;  %v1097_v50 = vsub.f32 %v19641_v57, %v22370_v61  ;;  %v1118_v61 = vsub.f32 %v19661_v19, %v22373_v17  ;;  %v1126_v17 = vand.u32 4294901760, %v1125_v20 }
  0x99   :  { %v1111_v10 = vsub.f32 %v19659_v52, %v22372_v4 }
  0x9a   :  { %13947 = vmatmul.mubr.f32.vlgmr.msra.gmra.mrb[2].mxu1 %v22367_v62  ;;  %v1084_v62 = vand.u32 4294901760, %v1083_v46  ;;  %v1098_v46 = vand.u32 4294901760, %v1097_v50  ;;  %v1119_v27 = vand.u32 4294901760, %v1118_v61  ;;  %v1132_v50 = vsub.f32 %v19679_v37, %v1131_v36 }
  0x9b   :  { %16022 = vmatpush3.bf16.msra.mxu1 %v19733_v45  ;;  %13981 = vmatprep.mubr.msk.f32.mxu1 %vm18871_vm0, %v22294_v5  ;;  %v1147_v36 = vand.u32 4294901760, %v1146_v3 }
  0x9c   :  { %16023 = vmatprep.subr.bf16.mxu1 %v22348_v24  ;;  %v19764_v55 = vpack.c.bf16 %v1091_v49, %v1084_v62  ;;  %v19776_v49 = vpack.c.bf16 %v1105_v39, %v1098_v46  ;;  %v1112_v62 = vand.u32 4294901760, %v1111_v10  ;;  %v1133_v33 = vand.u32 4294901760, %v1132_v50 }
  0x9d   :  { %v1140_v39 = vand.u32 4294901760, %v1139_v28  ;;  %v90_v28 = vld [vmem:[%s21947_s0] sm:$0x3f] }
  0x9e   :  { %v19782_v4 = vpack.c.bf16 %v1119_v27, %v1112_v62  ;;  %v19787_v46 = vpack.c.bf16 %v1133_v33, %v1126_v17  ;;  %v19797_v27 = vpack.c.bf16 %v19576_v42, %v19574_v12  ;;  %v19804_v33 = vpack.c.bf16 %v19582_v21, %v19580_v9 }
  0x9f   :  { %16025 = vmatpush3.bf16.msra.mxu1 %v19749_v32  ;;  %v19791_v63 = vpack.c.bf16 %v1147_v36, %v1140_v39  ;;  %v19812_v12 = vpack.c.bf16 %v19604_v44, %v19602_v18  ;;  %v19818_v42 = vpack.c.bf16 %v19625_v26, %v19623_v6  ;;  %v19824_v21 = vpack.c.bf16 %v19643_v14, %v19641_v57 }
  0xa0   :  { %16026 = vmatprep.subr.bf16.mxu1 %v22348_v24  ;;  %22375 = vst [vmem:[#allocation80_spill] sm:$0xff] %v19797_v27  ;;  %22376 = vst [vmem:[#allocation81_spill] sm:$0xff] %v19804_v33  ;;  %v19830_v44 = vpack.c.bf16 %v19661_v19, %v19659_v52  ;;  %v19836_v18 = vpack.c.bf16 %v19679_v37, %v19677_v40  ;;  %v19842_v9 = vpack.c.bf16 %v19697_v35, %v19695_v51  ;;  %v22383_v37 = vld [vmem:[#allocation26_spill] sm:$0xff] }
  0xa1   :  { %22374 = vst [vmem:[#allocation37_spill] sm:$0xff] %v19791_v63  ;;  %22377 = vst [vmem:[#allocation82_spill] sm:$0xff] %v19812_v12 }
  0xa2   :  { %22378 = vst [vmem:[#allocation83_spill] sm:$0xff] %v19818_v42  ;;  %22379 = vst [vmem:[#allocation84_spill] sm:$0xff] %v19824_v21 }
  0xa3   :  { %16028 = vmatpush3.bf16.msra.mxu1 %v19755_v54  ;;  %22380 = vst [vmem:[#allocation85_spill] sm:$0xff] %v19830_v44  ;;  %22381 = vst [vmem:[#allocation86_spill] sm:$0xff] %v19836_v18 }
  0xa4   :  { %16029 = vmatprep.subr.bf16.mxu1 %v22348_v24  ;;  %22382 = vst [vmem:[#allocation87_spill] sm:$0xff] %v19842_v9 }
  0xa7   :  { %16031 = vmatpush3.bf16.msra.mxu1 %v19764_v55 }
  0xa8   :  { %16032 = vmatprep.subr.bf16.mxu1 %v22348_v24 }
  0xab   :  { %16034 = vmatpush3.bf16.msra.mxu1 %v19776_v49 }
  0xac   :  { %16035 = vmatprep.subr.bf16.mxu1 %v22348_v24 }
  0xaf   :  { %16037 = vmatpush3.bf16.msra.mxu1 %v19782_v4 }
  0xb0   :  { %16038 = vmatprep.subr.bf16.mxu1 %v22348_v24 }
  0xb3   :  { %16040 = vmatpush3.bf16.msra.mxu1 %v19787_v46 }
  0xb4   :  { %16041 = vmatprep.subr.bf16.mxu1 %v22348_v24 }
  0xb7   :  { %16043 = vmatpush3.bf16.msra.mxu1 %v19791_v63 }
  0xb8   :  { %16044 = vmatprep.subr.bf16.mxu1 %v22348_v24 }
  0xba   :  { %13982 = vmatmul.mubr.f32.vlgmr.msra.gmra.mrb[4].mxu1 %v22316_v58 }
  0xbb   :  { %16046 = vmatpush3.bf16.msra.mxu1 %v19797_v27  ;;  %14016 = vmatprep.mubr.msk.f32.mxu1 %vm18871_vm0, %v22294_v5 }
  0xbc   :  { %16047 = vmatprep.subr.bf16.mxu1 %v22348_v24 }
  0xbf   :  { %16049 = vmatpush3.bf16.msra.mxu1 %v19804_v33 }
  0xc0   :  { %16050 = vmatprep.subr.bf16.mxu1 %v22348_v24 }
  0xc3   :  { %16052 = vmatpush3.bf16.msra.mxu1 %v19812_v12 }
  0xc4   :  { %16053 = vmatprep.subr.bf16.mxu1 %v22348_v24 }
  0xc7   :  { %16055 = vmatpush3.bf16.msra.mxu1 %v19818_v42 }
  0xc8   :  { %16056 = vmatprep.subr.bf16.mxu1 %v22348_v24 }
  0xcb   :  { %16058 = vmatpush3.bf16.msra.mxu1 %v19824_v21 }
  0xcc   :  { %16059 = vmatprep.subr.bf16.mxu1 %v22348_v24 }
  0xcf   :  { %16061 = vmatpush3.bf16.msra.mxu1 %v19830_v44 }
  0xd0   :  { %16062 = vmatprep.subr.bf16.mxu1 %v22348_v24 }
  0xd3   :  { %16064 = vmatpush3.bf16.msra.mxu1 %v19836_v18 }
  0xd4   :  { %16065 = vmatprep.subr.bf16.mxu1 %v22348_v24 }
  0xd7   :  { %16067 = vmatpush3.bf16.msra.mxu1 %v19842_v9 }
  0xd8   :  { %16068 = vmatprep.subr.bf16.mxu1 %v22348_v24 }
  0xda   :  { %14017 = vmatmul.mubr.f32.vlgmr.msra.gmra.mrb[6].mxu1 %v22347_v47 }
  0xdb   :  { %16070 = vmatpush3.bf16.msra.mxu1 %v19586_v29  ;;  %14051 = vmatprep.mubr.msk.f32.mxu1 %vm18871_vm0, %v22294_v5 }
  0xdc   :  { %16071 = vmatprep.subr.bf16.mxu1 %v22348_v24 }
  0xdf   :  { %16073 = vmatpush3.bf16.msra.mxu1 %v19607_v16 }
  0xe0   :  { %16074 = vmatprep.subr.bf16.mxu1 %v22348_v24 }
  0xe3   :  { %16076 = vmatpush3.bf16.msra.mxu1 %v19628_v56 }
  0xe4   :  { %16077 = vmatprep.subr.bf16.mxu1 %v22348_v24 }
  0xe7   :  { %16079 = vmatpush3.bf16.msra.mxu1 %v19646_v25 }
  0xe8   :  { %16080 = vmatprep.subr.bf16.mxu1 %v22348_v24 }
  0xeb   :  { %16082 = vmatpush3.bf16.msra.mxu1 %v19664_v8 }
  0xec   :  { %16083 = vmatprep.subr.bf16.mxu1 %v22348_v24 }
  0xef   :  { %16085 = vmatpush3.bf16.msra.mxu1 %v19682_v31 }
  0xf0   :  { %16086 = vmatprep.subr.bf16.mxu1 %v22348_v24 }
  0xf3   :  { %16088 = vmatpush3.bf16.msra.mxu1 %v19700_v22 }
  0xf4   :  { %16089 = vmatprep.subr.bf16.mxu1 %v22348_v24 }
  0xf7   :  { %16091 = vmatpush3.bf16.msra.mxu1 %v19713_v1 }
  0xf8   :  { %16092 = vmatprep.subr.bf16.mxu1 %v22348_v24 }
  0xfa   :  { %14052 = vmatmul.mubr.f32.vlgmr.msra.gmra.mrb[8].mxu1 %v22383_v37 }
  0xfb   :  { %16094 = vmatpush3.bf16.msra.mxu1 %v19596_v15  ;;  %14086 = vmatprep.mubr.msk.f32.mxu1 %vm18871_vm0, %v22294_v5 }
  0xfc   :  { %16095 = vmatprep.subr.bf16.mxu1 %v22348_v24 }
  0xff   :  { %16097 = vmatpush3.bf16.msra.mxu1 %v19616_v43 }
 0x100   :  { %16098 = vmatprep.subr.bf16.mxu1 %v22348_v24 }
 0x103   :  { %16100 = vmatpush3.bf16.msra.mxu1 %v19635_v2 }
 0x104   :  { %16101 = vmatprep.subr.bf16.mxu1 %v22348_v24 }
 0x107   :  { %16103 = vmatpush3.bf16.msra.mxu1 %v19653_v41 }
 0x108   :  { %16104 = vmatprep.subr.bf16.mxu1 %v22348_v24 }
 0x10b   :  { %16106 = vmatpush3.bf16.msra.mxu1 %v19671_v7 }
 0x10c   :  { %16107 = vmatprep.subr.bf16.mxu1 %v22348_v24 }
 0x10f   :  { %16109 = vmatpush3.bf16.msra.mxu1 %v19689_v60 }
 0x110   :  { %16110 = vmatprep.subr.bf16.mxu1 %v22348_v24 }
 0x113   :  { %16112 = vmatpush3.bf16.msra.mxu1 %v19709_v11 }
 0x114   :  { %16113 = vmatprep.subr.bf16.mxu1 %v22348_v24 }
 0x117   :  { %16115 = vmatpush3.bf16.msra.mxu1 %v19725_v23 }
 0x118   :  { %16116 = vmatprep.subr.bf16.mxu1 %v22348_v24 }
 0x11a   :  { %14087 = vmatmul.mubr.f32.vlgmr.msra.gmra.mrb[10].mxu1 %v22316_v58 }
 0x11b   :  { %16118 = vmatpush3.bf16.msra.mxu1 %v19586_v29  ;;  %14121 = vmatprep.mubr.msk.f32.mxu1 %vm18871_vm0, %v22294_v5 }
 0x11c   :  { %16119 = vmatprep.subr.bf16.mxu1 %v22348_v24 }
 0x11f   :  { %16121 = vmatpush3.bf16.msra.mxu1 %v19607_v16 }
 0x120   :  { %16122 = vmatprep.subr.bf16.mxu1 %v22348_v24 }
 0x123   :  { %16124 = vmatpush3.bf16.msra.mxu1 %v19628_v56 }
 0x124   :  { %16125 = vmatprep.subr.bf16.mxu1 %v22348_v24 }
 0x127   :  { %16127 = vmatpush3.bf16.msra.mxu1 %v19646_v25 }
 0x128   :  { %16128 = vmatprep.subr.bf16.mxu1 %v22348_v24 }
 0x12b   :  { %16130 = vmatpush3.bf16.msra.mxu1 %v19664_v8 }
 0x12c   :  { %16131 = vmatprep.subr.bf16.mxu1 %v22348_v24 }
 0x12f   :  { %16133 = vmatpush3.bf16.msra.mxu1 %v19682_v31 }
 0x130   :  { %16134 = vmatprep.subr.bf16.mxu1 %v22348_v24 }
 0x133   :  { %16136 = vmatpush3.bf16.msra.mxu1 %v19700_v22 }
 0x134   :  { %16137 = vmatprep.subr.bf16.mxu1 %v22348_v24 }
 0x137   :  { %16139 = vmatpush3.bf16.msra.mxu1 %v19713_v1 }
 0x138   :  { %16332 = vmatprep.subr.bf16.mxu1 %v22348_v24 }
 0x13a   :  { %14122 = vmatmul.mubr.f32.vlgmr.msra.gmra.mrb[12].mxu1 %v22316_v58 }
 0x13b   :  { %16334 = vmatpush3.bf16.msra.mxu1 %v19586_v29  ;;  %14156 = vmatprep.mubr.msk.f32.mxu1 %vm18871_vm0, %v22294_v5 }
 0x13c   :  { %16335 = vmatprep.subr.bf16.mxu1 %v22348_v24 }
 0x13f   :  { %16337 = vmatpush3.bf16.msra.mxu1 %v19607_v16 }
 0x140   :  { %16338 = vmatprep.subr.bf16.mxu1 %v22348_v24 }
 0x143   :  { %16340 = vmatpush3.bf16.msra.mxu1 %v19628_v56 }
 0x144   :  { %16341 = vmatprep.subr.bf16.mxu1 %v22348_v24 }
 0x147   :  { %16343 = vmatpush3.bf16.msra.mxu1 %v19646_v25 }
 0x148   :  { %16344 = vmatprep.subr.bf16.mxu1 %v22348_v24 }
 0x14b   :  { %16346 = vmatpush3.bf16.msra.mxu1 %v19664_v8 }
 0x14c   :  { %16347 = vmatprep.subr.bf16.mxu1 %v22348_v24  ;;  %v941_v19 = vpop.f32.mrb[0].mxu0 }
 0x14d   :  { %v563_v58 = vpop.f32.mrb[0].mxu1  ;;  %v943_v6 = vpop.f32.mrb[1].mxu0 }
 0x14e   :  { %v18636_v14 = vadd.f32 %v941_v19, %v563_v58  ;;  %v565_v26 = vpop.f32.mrb[1].mxu1  ;;  %v1595_v58 = vrot.slane %v90_v28, 2 }
 0x14f   :  { %v18637_v47 = vadd.f32 %v943_v6, %v565_v26  ;;  %16349 = vmatpush3.bf16.msra.mxu1 %v19682_v31 }
 0x150   :  { %16350 = vmatprep.subr.bf16.mxu1 %v22348_v24  ;;  %v1587_v3 = vadd.f32 %v18636_v14, %v90_v28 }
 0x151   :  { %v1597_v19 = vadd.f32 %v18637_v47, %v1595_v58 }
 0x152   :  { %v12971_v37 = vmul.f32 -1.442695, %v1587_v3 }
 0x153   :  { %16352 = vmatpush3.bf16.msra.mxu1 %v19700_v22  ;;  %v12972_v6 = vmul.f32 -1.442695, %v1597_v19 }
 0x154   :  { %16353 = vmatprep.subr.bf16.mxu1 %v22348_v24  ;;  %18734 = vpow2.f32 %v12971_v37 }
 0x155   :  { %18736 = vpow2.f32 %v12972_v6 }
 0x157   :  { %16355 = vmatpush3.bf16.msra.mxu1 %v19713_v1 }
 0x158   :  { %16356 = vmatprep.subr.bf16.mxu1 %v22348_v24 }
 0x15e   :  { %v18735_v26 = vpop.eup %18734 }
 0x15f   :  { %v18737_v14 = vpop.eup %18736 }
 0x160   :  { %v1601_v47 = vadd.f32 1.0, %v18737_v14  ;;  %v22388_v14 = vld [vmem:[#allocation43_spill] sm:$0xff] }
 0x16d   :  { %v1033_v57 = vpop.f32.mrb[2].mxu1 }
 0x16e   :  { %v13948_v52 = vpop.f32.mrb[3].mxu1 }
 0x16f   :  { %v19929_v52 = vld [vmem:[%s21949_s2] ss:$0 sm:$0xff] }
 0x18d   :  { %v1184_v40 = vpop.f32.mrb[4].mxu1 }
 0x18e   :  { %v1185_v51 = vadd.f32 %v1184_v40, %v1033_v57  ;;  %v13983_v35 = vpop.f32.mrb[5].mxu1  ;;  %v1591_v57 = vadd.f32 1.0, %v18735_v26 }
 0x190   :  { %18738 = vrcp.f32 %v1591_v57  ;;  %v22384_v57 = vld [vmem:[#allocation34_spill] sm:$0xff] }
 0x1ad   :  { %v1288_v48 = vpop.f32.mrb[6].mxu1 }
 0x1ae   :  { %v1289_v10 = vadd.f32 %v1288_v48, %v1185_v51  ;;  %v14018_v61 = vpop.f32.mrb[7].mxu1  ;;  %v1612_v48 = vrot.slane %v90_v28, 4 }
 0x1af   :  { %v18739_v61 = vpop.eup %18738 }
 0x1cd   :  { %v1377_v20 = vpop.f32.mrb[8].mxu1 }
 0x1ce   :  { %v1378_v62 = vadd.f32 %v1377_v20, %v1289_v10  ;;  %v14053_v50 = vpop.f32.mrb[9].mxu1 }
 0x1ed   :  { %v1496_v17 = vpop.f32.mrb[10].mxu1 }
 0x1ee   :  { %v1497_v39 = vadd.f32 %v1496_v17, %v1378_v62  ;;  %v14088_v36 = vpop.f32.mrb[11].mxu1  ;;  %v18814_v17 = vld [vmem:[#allocation2] sm:$0x3] }
 0x20d   :  { %v1583_v40 = vpop.f32.mrb[12].mxu1 }
 0x20e   :  { %v1584_v51 = vadd.f32 %v1583_v40, %v1497_v39  ;;  %v14123_v35 = vpop.f32.mrb[13].mxu1  ;;  %v22385_v40 = vld [vmem:[#allocation38_spill] sm:$0xff] }
 0x20f   :  { %v22387_v35 = vld [vmem:[#allocation41_spill] sm:$0xff] }
 0x210   :  { %v1610_v10 = vadd.f32 %v19929_v52, %v1584_v51  ;;  %v22386_v51 = vld [vmem:[#allocation39_spill] sm:$0xff] }
 0x212   :  { %v1611_v20 = vmul.f32 %v18739_v61, %v1610_v10  ;;  %v22390_v10 = vld [vmem:[#allocation53_spill] sm:$0xff]  ;;  %v22391_v61 = vld [vmem:[#allocation55_spill] sm:$0xff] }
 0x214   :  { %v1614_v62 = vadd.f32 %v1612_v48, %v1611_v20  ;;  %v22389_v48 = vld [vmem:[#allocation46_spill] sm:$0xff]  ;;  %v22392_v20 = vld [vmem:[#allocation57_spill] sm:$0xff] }
 0x216   :  { %18740 = vtanh.f32 %v1614_v62  ;;  %v22394_v62 = vld [vmem:[#allocation59_spill] sm:$0xff] }
 0x217   :  { %18742 = vrcp.f32 %v1601_v47  ;;  %v22393_v47 = vld [vmem:[#allocation58_spill] sm:$0xff] }
 0x220   :  { %v18741_v50 = vpop.eup %18740 }
 0x221   :  { %v1616_v3 = vsub.f32 %v18814_v17, %v18741_v50  ;;  %v18743_v36 = vpop.eup %18742  ;;  %v22396_v17 = vld [vmem:[#allocation22_spill] sm:$0xff] }
 0x223   :  { %v1617_v37 = vmul.f32 %v18743_v36, %v1616_v3  ;;  %v22397_v3 = vld [vmem:[#allocation29_spill] sm:$0xff] }
 0x224   :  { %v22398_v36 = vld [vmem:[#allocation33_spill] sm:$0xff] }
 0x225   :  { %v19932_v58 = vadd.f32 %v18741_v50, %v1617_v37  ;;  %v22395_v50 = vld [vmem:[#allocation20_spill] sm:$0xff] }
 0x226   :  { %v22399_v37 = vld [vmem:[#allocation60_spill] sm:$0xff] }
 0x227   :  { %v19935_v39 = vand.u32 4294901760, %v19932_v58 }
 0x229   :  { %v19939_v28 = vsub.f32 %v19932_v58, %v19935_v39 }
 0x22b   :  { %v19942_v19 = vand.u32 4294901760, %v19939_v28 }
 0x22d   :  { %v1721_v26 = vsub.f32 %v19939_v28, %v19942_v19 }
 0x22f   :  { %v1722_v6 = vand.u32 4294901760, %v1721_v26  ;;  %v22400_v26 = vld [vmem:[#allocation61_spill] sm:$0xff] }
 0x231   :  { %1723 = vmatmul.mubr.f32.vlgmr.msra.gmra.mrb[2].mxu0 %v1722_v6  ;;  %14157 = vmatmul.mubr.f32.vlgmr.msra.gmra.mrb[14].mxu1 %v1722_v6  ;;  %v22401_v6 = vld [vmem:[#allocation62_spill] sm:$0xff] }
 0x232   :  { %16175 = vmatpush1.bf16.msra.mxu0 %v22384_v57  ;;  %16358 = vmatpush3.bf16.msra.mxu1 %v19733_v45 }
 0x233   :  { %16177 = vmatprep.subr.bf16.mxu0 %v22385_v40  ;;  %16359 = vmatprep.subr.bf16.mxu1 %v22348_v24 }
 0x234   :  { %1953 = vmatprep.mubr.f32.mxu0 %v22294_v5  ;;  %14191 = vmatprep.mubr.msk.f32.mxu1 %vm18871_vm0, %v22294_v5 }
 0x236   :  { %16179 = vmatpush1.bf16.msra.mxu0 %v22386_v51  ;;  %16361 = vmatpush3.bf16.msra.mxu1 %v19749_v32 }
 0x237   :  { %16181 = vmatprep.subr.bf16.mxu0 %v22387_v35  ;;  %16362 = vmatprep.subr.bf16.mxu1 %v22348_v24 }
 0x23a   :  { %16183 = vmatpush1.bf16.msra.mxu0 %v22388_v14  ;;  %16364 = vmatpush3.bf16.msra.mxu1 %v19755_v54 }
 0x23b   :  { %16185 = vmatprep.subr.bf16.mxu0 %v22389_v48  ;;  %16365 = vmatprep.subr.bf16.mxu1 %v22348_v24 }
 0x23e   :  { %16187 = vmatpush1.bf16.msra.mxu0 %v19353_v13  ;;  %16367 = vmatpush3.bf16.msra.mxu1 %v19764_v55 }
 0x23f   :  { %16189 = vmatprep.subr.bf16.mxu0 %v19395_v53  ;;  %16368 = vmatprep.subr.bf16.mxu1 %v22348_v24 }
 0x242   :  { %16191 = vmatpush1.bf16.msra.mxu0 %v19413_v38  ;;  %16370 = vmatpush3.bf16.msra.mxu1 %v19776_v49 }
 0x243   :  { %16193 = vmatprep.subr.bf16.mxu0 %v19418_v34  ;;  %16371 = vmatprep.subr.bf16.mxu1 %v22348_v24 }
 0x246   :  { %16195 = vmatpush1.bf16.msra.mxu0 %v19448_v0  ;;  %16373 = vmatpush3.bf16.msra.mxu1 %v19782_v4 }
 0x247   :  { %16197 = vmatprep.subr.bf16.mxu0 %v19450_v59  ;;  %16374 = vmatprep.subr.bf16.mxu1 %v22348_v24 }
 0x24a   :  { %16199 = vmatpush1.bf16.msra.mxu0 %v19458_v30  ;;  %16376 = vmatpush3.bf16.msra.mxu1 %v19787_v46 }
 0x24b   :  { %16201 = vmatprep.subr.bf16.mxu0 %v22390_v10  ;;  %16377 = vmatprep.subr.bf16.mxu1 %v22348_v24 }
 0x24e   :  { %16203 = vmatpush1.bf16.msra.mxu0 %v22391_v61  ;;  %16379 = vmatpush3.bf16.msra.mxu1 %v19791_v63  ;;  %v22428_v63 = vld [vmem:[#allocation40_spill] sm:$0xff] }
 0x24f   :  { %16205 = vmatprep.subr.bf16.mxu0 %v22392_v20  ;;  %16380 = vmatprep.subr.bf16.mxu1 %v22348_v24  ;;  %v22426_v20 = vld [vmem:[#allocation35_spill] sm:$0xff] }
 0x251   :  { %1955 = vmatmul.mubr.f32.vlgmr.msra.gmra.mrb[2].mxu0 %v19935_v39  ;;  %14192 = vmatmul.mubr.f32.vlgmr.msra.gmra.mrb[16].mxu1 %v19935_v39 }
 0x252   :  { %16207 = vmatpush1.bf16.msra.mxu0 %v22393_v47  ;;  %16382 = vmatpush3.bf16.msra.mxu1 %v19797_v27  ;;  %v22424_v27 = vld [vmem:[#allocation30_spill] sm:$0xff]  ;;  %v22425_v47 = vld [vmem:[#allocation31_spill] sm:$0xff] }
 0x253   :  { %16209 = vmatprep.subr.bf16.mxu0 %v22394_v62  ;;  %16383 = vmatprep.subr.bf16.mxu1 %v22348_v24  ;;  %v22423_v62 = vld [vmem:[#allocation28_spill] sm:$0xff] }
 0x254   :  { %2089 = vmatprep.mubr.f32.mxu0 %v22294_v5  ;;  %14226 = vmatprep.mubr.msk.f32.mxu1 %vm18871_vm0, %v22294_v5 }
 0x256   :  { %16211 = vmatpush1.bf16.msra.mxu0 %v22395_v50  ;;  %16385 = vmatpush3.bf16.msra.mxu1 %v19804_v33  ;;  %v22421_v33 = vld [vmem:[#allocation25_spill] sm:$0xff]  ;;  %v22422_v50 = vld [vmem:[#allocation27_spill] sm:$0xff] }
 0x257   :  { %16213 = vmatprep.subr.bf16.mxu0 %v22396_v17  ;;  %16386 = vmatprep.subr.bf16.mxu1 %v22348_v24  ;;  %v22402_v17 = vld [vmem:[#allocation63_spill] sm:$0xff] }
 0x25a   :  { %16215 = vmatpush1.bf16.msra.mxu0 %v22397_v3  ;;  %16388 = vmatpush3.bf16.msra.mxu1 %v19812_v12  ;;  %v22403_v12 = vld [vmem:[#allocation64_spill] sm:$0xff] }
 0x25b   :  { %16217 = vmatprep.subr.bf16.mxu0 %v22398_v36  ;;  %16389 = vmatprep.subr.bf16.mxu1 %v22348_v24  ;;  %v22404_v36 = vld [vmem:[#allocation65_spill] sm:$0xff]  ;;  %v22420_v3 = vld [vmem:[#allocation24_spill] sm:$0xff] }
 0x25e   :  { %16219 = vmatpush1.bf16.msra.mxu0 %v22399_v37  ;;  %16391 = vmatpush3.bf16.msra.mxu1 %v19818_v42  ;;  %v22405_v42 = vld [vmem:[#allocation66_spill] sm:$0xff]  ;;  %v22419_v37 = vld [vmem:[#allocation23_spill] sm:$0xff] }
 0x25f   :  { %16221 = vmatprep.subr.bf16.mxu0 %v22400_v26  ;;  %16392 = vmatprep.subr.bf16.mxu1 %v22348_v24  ;;  %v22406_v26 = vld [vmem:[#allocation67_spill] sm:$0xff] }
 0x262   :  { %16223 = vmatpush1.bf16.msra.mxu0 %v22401_v6  ;;  %16394 = vmatpush3.bf16.msra.mxu1 %v19824_v21  ;;  %v22407_v21 = vld [vmem:[#allocation68_spill] sm:$0xff]  ;;  %v22418_v6 = vld [vmem:[#allocation19_spill] sm:$0xff] }
 0x263   :  { %16225 = vmatprep.subr.bf16.mxu0 %v22402_v17  ;;  %16395 = vmatprep.subr.bf16.mxu1 %v22348_v24  ;;  %v22408_v17 = vld [vmem:[#allocation9_spill] sm:$0xff] }
 0x266   :  { %16227 = vmatpush1.bf16.msra.mxu0 %v22403_v12  ;;  %16397 = vmatpush3.bf16.msra.mxu1 %v19830_v44  ;;  %v22416_v44 = vld [vmem:[#allocation17_spill] sm:$0xff]  ;;  %v22417_v12 = vld [vmem:[#allocation18_spill] sm:$0xff] }
 0x267   :  { %16229 = vmatprep.subr.bf16.mxu0 %v22404_v36  ;;  %16398 = vmatprep.subr.bf16.mxu1 %v22348_v24  ;;  %v22409_v36 = vld [vmem:[#allocation10_spill] sm:$0xff] }
 0x26a   :  { %16231 = vmatpush1.bf16.msra.mxu0 %v22405_v42  ;;  %16400 = vmatpush3.bf16.msra.mxu1 %v19836_v18  ;;  %v22410_v18 = vld [vmem:[#allocation11_spill] sm:$0xff]  ;;  %v22415_v42 = vld [vmem:[#allocation16_spill] sm:$0xff] }
 0x26b   :  { %16233 = vmatprep.subr.bf16.mxu0 %v22406_v26  ;;  %16401 = vmatprep.subr.bf16.mxu1 %v22348_v24  ;;  %v22414_v26 = vld [vmem:[#allocation15_spill] sm:$0xff] }
 0x26e   :  { %16235 = vmatpush1.bf16.msra.mxu0 %v22407_v21  ;;  %16403 = vmatpush3.bf16.msra.mxu1 %v19842_v9  ;;  %v22411_v9 = vld [vmem:[#allocation12_spill] sm:$0xff]  ;;  %v22412_v21 = vld [vmem:[#allocation13_spill] sm:$0xff] }
 0x26f   :  { %16237 = vmatprep.subr.bf16.mxu0 %v22408_v17  ;;  %16404 = vmatprep.subr.bf16.mxu1 %v22348_v24 }
 0x271   :  { %2092 = vmatmul.mubr.f32.vlgmr.msra.gmra.mrb[2].mxu0 %v19939_v28  ;;  %14227 = vmatmul.mubr.f32.vlgmr.msra.gmra.mrb[18].mxu1 %v19939_v28  ;;  %v22413_v28 = vld [vmem:[#allocation14_spill] sm:$0xff] }
 0x272   :  { %16239 = vmatpush1.bf16.msra.mxu0 %v22409_v36  ;;  %16406 = vmatpush3.bf16.msra.mxu1 %v19586_v29 }
 0x273   :  { %16241 = vmatprep.subr.bf16.mxu0 %v22410_v18  ;;  %16407 = vmatprep.subr.bf16.mxu1 %v22348_v24 }
 0x274   :  { %2194 = vmatprep.mubr.f32.mxu0 %v22294_v5  ;;  %14261 = vmatprep.mubr.msk.f32.mxu1 %vm18871_vm0, %v22294_v5 }
 0x276   :  { %16243 = vmatpush1.bf16.msra.mxu0 %v22411_v9  ;;  %16409 = vmatpush3.bf16.msra.mxu1 %v19607_v16 }
 0x277   :  { %16245 = vmatprep.subr.bf16.mxu0 %v22412_v21  ;;  %16410 = vmatprep.subr.bf16.mxu1 %v22348_v24 }
 0x27a   :  { %16247 = vmatpush1.bf16.msra.mxu0 %v22413_v28  ;;  %16412 = vmatpush3.bf16.msra.mxu1 %v19628_v56 }
 0x27b   :  { %16249 = vmatprep.subr.bf16.mxu0 %v22414_v26  ;;  %16413 = vmatprep.subr.bf16.mxu1 %v22348_v24 }
 0x27e   :  { %16251 = vmatpush1.bf16.msra.mxu0 %v22415_v42  ;;  %16415 = vmatpush3.bf16.msra.mxu1 %v19646_v25 }
 0x27f   :  { %16253 = vmatprep.subr.bf16.mxu0 %v22416_v44  ;;  %16416 = vmatprep.subr.bf16.mxu1 %v22348_v24 }
 0x282   :  { %16255 = vmatpush1.bf16.msra.mxu0 %v22417_v12  ;;  %16418 = vmatpush3.bf16.msra.mxu1 %v19664_v8 }
 0x283   :  { %16257 = vmatprep.subr.bf16.mxu0 %v22418_v6  ;;  %16419 = vmatprep.subr.bf16.mxu1 %v22348_v24 }
 0x286   :  { %16259 = vmatpush1.bf16.msra.mxu0 %v22419_v37  ;;  %16421 = vmatpush3.bf16.msra.mxu1 %v19682_v31 }
 0x287   :  { %16261 = vmatprep.subr.bf16.mxu0 %v22420_v3  ;;  %16422 = vmatprep.subr.bf16.mxu1 %v22348_v24 }
 0x28a   :  { %16263 = vmatpush1.bf16.msra.mxu0 %v22421_v33  ;;  %16424 = vmatpush3.bf16.msra.mxu1 %v19700_v22 }
 0x28b   :  { %16265 = vmatprep.subr.bf16.mxu0 %v22422_v50  ;;  %16425 = vmatprep.subr.bf16.mxu1 %v22348_v24 }
 0x28e   :  { %16267 = vmatpush1.bf16.msra.mxu0 %v22423_v62  ;;  %16427 = vmatpush3.bf16.msra.mxu1 %v19713_v1 }
 0x28f   :  { %16269 = vmatprep.subr.bf16.mxu0 %v22424_v27  ;;  %16428 = vmatprep.subr.bf16.mxu1 %v22348_v24  ;;  %v22427_v27 = vld [vmem:[#allocation36_spill] sm:$0xff] }
 0x291   :  { %2198 = vmatmul.mubr.f32.vlgmr.msra.gmra.mrb[2].mxu0 %v19942_v19  ;;  %14262 = vmatmul.mubr.f32.vlgmr.msra.gmra.mrb[20].mxu1 %v19942_v19  ;;  %v22429_v19 = vld [vmem:[#allocation42_spill] sm:$0xff] }
 0x292   :  { %16271 = vmatpush1.bf16.msra.mxu0 %v22425_v47  ;;  %16430 = vmatpush3.bf16.msra.mxu1 %v19596_v15  ;;  %v22431_v15 = vld [vmem:[#allocation45_spill] sm:$0xff]  ;;  %v22432_v47 = vld [vmem:[#allocation47_spill] sm:$0xff] }
 0x293   :  { %16273 = vmatprep.subr.bf16.mxu0 %v22426_v20  ;;  %16431 = vmatprep.subr.bf16.mxu1 %v22348_v24  ;;  %v22430_v20 = vld [vmem:[#allocation44_spill] sm:$0xff] }
 0x294   :  { %2364 = vmatprep.mubr.f32.mxu0 %v22294_v5  ;;  %14296 = vmatprep.mubr.msk.f32.mxu1 %vm18871_vm0, %v22294_v5 }
 0x296   :  { %16275 = vmatpush1.bf16.msra.mxu0 %v22427_v27  ;;  %16433 = vmatpush3.bf16.msra.mxu1 %v19616_v43  ;;  %v22433_v43 = vld [vmem:[#allocation48_spill] sm:$0xff] }
 0x297   :  { %16277 = vmatprep.subr.bf16.mxu0 %v22428_v63  ;;  %16434 = vmatprep.subr.bf16.mxu1 %v22348_v24  ;;  %v22434_v63 = vld [vmem:[#allocation49_spill] sm:$0xff] }
 0x29a   :  { %16279 = vmatpush1.bf16.msra.mxu0 %v22429_v19  ;;  %16436 = vmatpush3.bf16.msra.mxu1 %v19635_v2  ;;  %v22435_v2 = vld [vmem:[#allocation50_spill] sm:$0xff] }
 0x29b   :  { %16281 = vmatprep.subr.bf16.mxu0 %v22430_v20  ;;  %16437 = vmatprep.subr.bf16.mxu1 %v22348_v24  ;;  %v22436_v20 = vld [vmem:[#allocation51_spill] sm:$0xff] }
 0x29e   :  { %16283 = vmatpush1.bf16.msra.mxu0 %v22431_v15  ;;  %16439 = vmatpush3.bf16.msra.mxu1 %v19653_v41  ;;  %v22437_v41 = vld [vmem:[#allocation52_spill] sm:$0xff] }
 0x29f   :  { %16285 = vmatprep.subr.bf16.mxu0 %v22432_v47  ;;  %16440 = vmatprep.subr.bf16.mxu1 %v22348_v24  ;;  %v22438_v47 = vld [vmem:[#allocation54_spill] sm:$0xff] }
 0x2a2   :  { %16287 = vmatpush1.bf16.msra.mxu0 %v22433_v43  ;;  %16442 = vmatpush3.bf16.msra.mxu1 %v19671_v7  ;;  %v22439_v7 = vld [vmem:[#allocation56_spill] sm:$0xff] }
 0x2a3   :  { %16289 = vmatprep.subr.bf16.mxu0 %v22434_v63  ;;  %16443 = vmatprep.subr.bf16.mxu1 %v22348_v24 }
 0x2a6   :  { %16291 = vmatpush1.bf16.msra.mxu0 %v22435_v2  ;;  %16445 = vmatpush3.bf16.msra.mxu1 %v19689_v60 }
 0x2a7   :  { %16293 = vmatprep.subr.bf16.mxu0 %v22436_v20  ;;  %16446 = vmatprep.subr.bf16.mxu1 %v22348_v24 }
 0x2aa   :  { %16295 = vmatpush1.bf16.msra.mxu0 %v22437_v41  ;;  %16448 = vmatpush3.bf16.msra.mxu1 %v19709_v11 }
 0x2ab   :  { %16297 = vmatprep.subr.bf16.mxu0 %v22438_v47  ;;  %16449 = vmatprep.subr.bf16.mxu1 %v22348_v24 }
 0x2ae   :  { %16299 = vmatpush1.bf16.msra.mxu0 %v22439_v7  ;;  %16451 = vmatpush3.bf16.msra.mxu1 %v19725_v23 }
 0x2af   :  { %16301 = vmatprep.subr.bf16.mxu0 %v22408_v17  ;;  %16452 = vmatprep.subr.bf16.mxu1 %v22348_v24 }
 0x2b1   :  { %2366 = vmatmul.mubr.f32.vlgmr.msra.gmra.mrb[2].mxu0 %v19935_v39  ;;  %14297 = vmatmul.mubr.f32.vlgmr.msra.gmra.mrb[22].mxu1 %v19935_v39 }
 0x2b2   :  { %16303 = vmatpush1.bf16.msra.mxu0 %v22409_v36  ;;  %16454 = vmatpush3.bf16.msra.mxu1 %v19586_v29 }
 0x2b3   :  { %16305 = vmatprep.subr.bf16.mxu0 %v22410_v18  ;;  %16455 = vmatprep.subr.bf16.mxu1 %v22348_v24 }
 0x2b4   :  { %2468 = vmatprep.mubr.f32.mxu0 %v22294_v5  ;;  %14331 = vmatprep.mubr.msk.f32.mxu1 %vm18871_vm0, %v22294_v5 }
 0x2b6   :  { %16307 = vmatpush1.bf16.msra.mxu0 %v22411_v9  ;;  %16457 = vmatpush3.bf16.msra.mxu1 %v19607_v16 }
 0x2b7   :  { %16309 = vmatprep.subr.bf16.mxu0 %v22412_v21  ;;  %16458 = vmatprep.subr.bf16.mxu1 %v22348_v24 }
 0x2ba   :  { %16311 = vmatpush1.bf16.msra.mxu0 %v22413_v28  ;;  %16460 = vmatpush3.bf16.msra.mxu1 %v19628_v56 }
 0x2bb   :  { %16313 = vmatprep.subr.bf16.mxu0 %v22414_v26  ;;  %16461 = vmatprep.subr.bf16.mxu1 %v22348_v24 }
 0x2be   :  { %16315 = vmatpush1.bf16.msra.mxu0 %v22415_v42  ;;  %16463 = vmatpush3.bf16.msra.mxu1 %v19646_v25 }
 0x2bf   :  { %16317 = vmatprep.subr.bf16.mxu0 %v22416_v44  ;;  %16464 = vmatprep.subr.bf16.mxu1 %v22348_v24 }
 0x2c2   :  { %16319 = vmatpush1.bf16.msra.mxu0 %v22417_v12  ;;  %16466 = vmatpush3.bf16.msra.mxu1 %v19664_v8 }
 0x2c3   :  { %16321 = vmatprep.subr.bf16.mxu0 %v22418_v6  ;;  %16467 = vmatprep.subr.bf16.mxu1 %v22348_v24 }
 0x2c6   :  { %16323 = vmatpush1.bf16.msra.mxu0 %v22419_v37  ;;  %16469 = vmatpush3.bf16.msra.mxu1 %v19682_v31 }
 0x2c7   :  { %16325 = vmatprep.subr.bf16.mxu0 %v22420_v3  ;;  %16470 = vmatprep.subr.bf16.mxu1 %v22348_v24 }
 0x2ca   :  { %16327 = vmatpush1.bf16.msra.mxu0 %v22421_v33  ;;  %16472 = vmatpush3.bf16.msra.mxu1 %v19700_v22 }
 0x2cb   :  { %16329 = vmatprep.subr.bf16.mxu0 %v22422_v50  ;;  %16473 = vmatprep.subr.bf16.mxu1 %v22348_v24 }
 0x2ce   :  { %16331 = vmatpush1.bf16.msra.mxu0 %v22423_v62  ;;  %16475 = vmatpush3.bf16.msra.mxu1 %v19713_v1 }
 0x2cf   :  { %16477 = vmatprep.subr.bf16.mxu0 %v22408_v17  ;;  %16668 = vmatprep.subr.bf16.mxu1 %v22348_v24 }
 0x2d1   :  { %2470 = vmatmul.mubr.f32.vlgmr.msra.gmra.mrb[2].mxu0 %v19935_v39  ;;  %14332 = vmatmul.mubr.f32.vlgmr.msra.gmra.mrb[24].mxu1 %v19935_v39  ;;  %v22440_v39 = vld [vmem:[#allocation32_spill] sm:$0xff] }
 0x2d2   :  { %16479 = vmatpush1.bf16.msra.mxu0 %v22409_v36  ;;  %16670 = vmatpush3.bf16.msra.mxu1 %v19586_v29 }
 0x2d3   :  { %16481 = vmatprep.subr.bf16.mxu0 %v22410_v18  ;;  %16671 = vmatprep.subr.bf16.mxu1 %v22348_v24 }
 0x2d4   :  { %3241 = vmatprep.mubr.f32.mxu0 %v22294_v5  ;;  %14366 = vmatprep.mubr.msk.f32.mxu1 %vm18871_vm0, %v22294_v5 }
 0x2d6   :  { %16483 = vmatpush1.bf16.msra.mxu0 %v22411_v9  ;;  %16673 = vmatpush3.bf16.msra.mxu1 %v19607_v16 }
 0x2d7   :  { %16485 = vmatprep.subr.bf16.mxu0 %v22412_v21  ;;  %16674 = vmatprep.subr.bf16.mxu1 %v22348_v24 }
 0x2da   :  { %16487 = vmatpush1.bf16.msra.mxu0 %v22413_v28  ;;  %16676 = vmatpush3.bf16.msra.mxu1 %v19628_v56 }
 0x2db   :  { %16489 = vmatprep.subr.bf16.mxu0 %v22414_v26  ;;  %16677 = vmatprep.subr.bf16.mxu1 %v22348_v24 }
 0x2de   :  { %16491 = vmatpush1.bf16.msra.mxu0 %v22415_v42  ;;  %16679 = vmatpush3.bf16.msra.mxu1 %v19646_v25 }
 0x2df   :  { %16493 = vmatprep.subr.bf16.mxu0 %v22416_v44  ;;  %16680 = vmatprep.subr.bf16.mxu1 %v22348_v24 }
 0x2e2   :  { %16495 = vmatpush1.bf16.msra.mxu0 %v22417_v12  ;;  %16682 = vmatpush3.bf16.msra.mxu1 %v19664_v8 }
 0x2e3   :  { %16497 = vmatprep.subr.bf16.mxu0 %v22418_v6  ;;  %16683 = vmatprep.subr.bf16.mxu1 %v22348_v24 }
 0x2e6   :  { %16499 = vmatpush1.bf16.msra.mxu0 %v22419_v37  ;;  %16685 = vmatpush3.bf16.msra.mxu1 %v19682_v31 }
 0x2e7   :  { %16501 = vmatprep.subr.bf16.mxu0 %v22420_v3  ;;  %16686 = vmatprep.subr.bf16.mxu1 %v22348_v24 }
 0x2ea   :  { %16503 = vmatpush1.bf16.msra.mxu0 %v22421_v33  ;;  %16688 = vmatpush3.bf16.msra.mxu1 %v19700_v22 }
 0x2eb   :  { %16505 = vmatprep.subr.bf16.mxu0 %v22422_v50  ;;  %16689 = vmatprep.subr.bf16.mxu1 %v22348_v24 }
 0x2ee   :  { %16507 = vmatpush1.bf16.msra.mxu0 %v22423_v62  ;;  %16691 = vmatpush3.bf16.msra.mxu1 %v19713_v1 }
 0x2ef   :  { %16509 = vmatprep.subr.bf16.mxu0 %v22440_v39  ;;  %16692 = vmatprep.subr.bf16.mxu1 %v22348_v24  ;;  %v12974_v39 = vld [vmem:[%s21947_s0 + $0x6] sm:$0x3f] }
 0x304   :  { %v2563_v23 = vpop.f32.mrb[14].mxu1 }
 0x305   :  { %v14158_v7 = vpop.f32.mrb[15].mxu1 }
 0x324   :  { %v2714_v47 = vpop.f32.mrb[16].mxu1 }
 0x325   :  { %v2715_v11 = vadd.f32 %v2714_v47, %v2563_v23  ;;  %v14193_v41 = vpop.f32.mrb[17].mxu1 }
 0x344   :  { %v2818_v20 = vpop.f32.mrb[18].mxu1 }
 0x345   :  { %v2819_v60 = vadd.f32 %v2818_v20, %v2715_v11  ;;  %v14228_v2 = vpop.f32.mrb[19].mxu1  ;;  %v3125_v11 = vrot.slane %v12974_v39, 2 }
 0x364   :  { %v2907_v63 = vpop.f32.mrb[20].mxu1 }
 0x365   :  { %v2908_v43 = vadd.f32 %v2907_v63, %v2819_v60  ;;  %v14263_v15 = vpop.f32.mrb[21].mxu1  ;;  %v3136_v63 = vrot.slane %v12974_v39, 4 }
 0x384   :  { %v3026_v19 = vpop.f32.mrb[22].mxu1 }
 0x385   :  { %v3027_v27 = vadd.f32 %v3026_v19, %v2908_v43  ;;  %v14298_v62 = vpop.f32.mrb[23].mxu1 }
 0x3a4   :  { %v2471_v1 = vpop.f32.mrb[2].mxu0  ;;  %v3113_v50 = vpop.f32.mrb[24].mxu1 }
 0x3a5   :  { %v3117_v22 = vadd.f32 %v12974_v39, %v2471_v1  ;;  %v3114_v7 = vadd.f32 %v3113_v50, %v3027_v27  ;;  %v2473_v33 = vpop.f32.mrb[3].mxu0  ;;  %v14333_v23 = vpop.f32.mrb[25].mxu1 }
 0x3a6   :  { %v3127_v2 = vadd.f32 %v3125_v11, %v2473_v33  ;;  %v22442_v11 = vld [vmem:[#allocation57_spill] sm:$0xff] }
 0x3a7   :  { %v12975_v41 = vmul.f32 -1.442695, %v3117_v22  ;;  %v3134_v47 = vadd.f32 %v19929_v52, %v3114_v7 }
 0x3a8   :  { %v12976_v20 = vmul.f32 -1.442695, %v3127_v2  ;;  %v22443_v2 = vld [vmem:[#allocation58_spill] sm:$0xff] }
 0x3a9   :  { %18744 = vpow2.f32 %v12975_v41 }
 0x3aa   :  { %18746 = vpow2.f32 %v12976_v20  ;;  %v22444_v20 = vld [vmem:[#allocation80_spill] sm:$0xff] }
 0x3b3   :  { %v18745_v60 = vpop.eup %18744 }
 0x3b4   :  { %v3121_v15 = vadd.f32 1.0, %v18745_v60  ;;  %v18747_v43 = vpop.eup %18746  ;;  %v22445_v60 = vld [vmem:[#allocation59_spill] sm:$0xff] }
 0x3b5   :  { %v3131_v1 = vadd.f32 1.0, %v18747_v43  ;;  %v22447_v43 = vld [vmem:[#allocation81_spill] sm:$0xff] }
 0x3b6   :  { %18748 = vrcp.f32 %v3121_v15  ;;  %v22446_v15 = vld [vmem:[#allocation20_spill] sm:$0xff] }
 0x3c0   :  { %v18749_v62 = vpop.eup %18748 }
 0x3c1   :  { %v3135_v19 = vmul.f32 %v18749_v62, %v3134_v47  ;;  %v22449_v47 = vld [vmem:[#allocation29_spill] sm:$0xff]  ;;  %v22450_v62 = vld [vmem:[#allocation82_spill] sm:$0xff] }
 0x3c3   :  { %v3138_v3 = vadd.f32 %v3136_v63, %v3135_v19  ;;  %v22448_v63 = vld [vmem:[#allocation22_spill] sm:$0xff]  ;;  %v22451_v19 = vld [vmem:[#allocation33_spill] sm:$0xff] }
 0x3c5   :  { %18750 = vtanh.f32 %v3138_v3 }
 0x3c6   :  { %18752 = vrcp.f32 %v3131_v1  ;;  %v22452_v1 = vld [vmem:[#allocation60_spill] sm:$0xff] }
 0x3cf   :  { %v18751_v27 = vpop.eup %18750 }
 0x3d0   :  { %v3140_v22 = vsub.f32 %v19932_v58, %v18751_v27  ;;  %v18753_v50 = vpop.eup %18752  ;;  %v22441_v58 = vld [vmem:[#allocation37_spill] sm:$0xff] }
 0x3d2   :  { %v3141_v33 = vmul.f32 %v18753_v50, %v3140_v22  ;;  %v22454_v22 = vld [vmem:[#allocation61_spill] sm:$0xff]  ;;  %v22455_v50 = vld [vmem:[#allocation62_spill] sm:$0xff] }
 0x3d4   :  { %v20171_v23 = vadd.f32 %v18751_v27, %v3141_v33  ;;  %v22453_v27 = vld [vmem:[#allocation83_spill] sm:$0xff]  ;;  %v22456_v33 = vld [vmem:[#allocation84_spill] sm:$0xff] }
 0x3d6   :  { %v20174_v41 = vand.u32 4294901760, %v20171_v23 }
 0x3d8   :  { %v20178_v39 = vsub.f32 %v20171_v23, %v20174_v41 }
 0x3da   :  { %v20181_v52 = vand.u32 4294901760, %v20178_v39 }
 0x3dc   :  { %v3245_v3 = vsub.f32 %v20178_v39, %v20181_v52 }
 0x3de   :  { %v3246_v7 = vand.u32 4294901760, %v3245_v3  ;;  %v22457_v3 = vld [vmem:[#allocation63_spill] sm:$0xff] }
 0x3e0   :  { %3247 = vmatmul.mubr.f32.vlgmr.msra.gmra.mrb[4].mxu0 %v3246_v7  ;;  %14367 = vmatmul.mubr.f32.vlgmr.msra.gmra.mrb[26].mxu1 %v3246_v7  ;;  %v22458_v7 = vld [vmem:[#allocation64_spill] sm:$0xff] }
 0x3e1   :  { %16511 = vmatpush1.bf16.msra.mxu0 %v22384_v57  ;;  %16694 = vmatpush3.bf16.msra.mxu1 %v19733_v45 }
 0x3e2   :  { %16513 = vmatprep.subr.bf16.mxu0 %v22385_v40  ;;  %16695 = vmatprep.subr.bf16.mxu1 %v22348_v24 }
 0x3e3   :  { %3477 = vmatprep.mubr.f32.mxu0 %v22294_v5  ;;  %14401 = vmatprep.mubr.msk.f32.mxu1 %vm18871_vm0, %v22294_v5 }
 0x3e5   :  { %16515 = vmatpush1.bf16.msra.mxu0 %v22386_v51  ;;  %16697 = vmatpush3.bf16.msra.mxu1 %v19749_v32 }
 0x3e6   :  { %16517 = vmatprep.subr.bf16.mxu0 %v22387_v35  ;;  %16698 = vmatprep.subr.bf16.mxu1 %v22348_v24 }
 0x3e9   :  { %16519 = vmatpush1.bf16.msra.mxu0 %v22388_v14  ;;  %16700 = vmatpush3.bf16.msra.mxu1 %v19755_v54 }
 0x3ea   :  { %16521 = vmatprep.subr.bf16.mxu0 %v22389_v48  ;;  %16701 = vmatprep.subr.bf16.mxu1 %v22348_v24 }
 0x3ed   :  { %16523 = vmatpush1.bf16.msra.mxu0 %v19353_v13  ;;  %16703 = vmatpush3.bf16.msra.mxu1 %v19764_v55 }
 0x3ee   :  { %16525 = vmatprep.subr.bf16.mxu0 %v19395_v53  ;;  %16704 = vmatprep.subr.bf16.mxu1 %v22348_v24 }
 0x3f1   :  { %16527 = vmatpush1.bf16.msra.mxu0 %v19413_v38  ;;  %16706 = vmatpush3.bf16.msra.mxu1 %v19776_v49 }
 0x3f2   :  { %16529 = vmatprep.subr.bf16.mxu0 %v19418_v34  ;;  %16707 = vmatprep.subr.bf16.mxu1 %v22348_v24 }
 0x3f5   :  { %16531 = vmatpush1.bf16.msra.mxu0 %v19448_v0  ;;  %16709 = vmatpush3.bf16.msra.mxu1 %v19782_v4 }
 0x3f6   :  { %16533 = vmatprep.subr.bf16.mxu0 %v19450_v59  ;;  %16710 = vmatprep.subr.bf16.mxu1 %v22348_v24 }
 0x3f9   :  { %16535 = vmatpush1.bf16.msra.mxu0 %v19458_v30  ;;  %16712 = vmatpush3.bf16.msra.mxu1 %v19787_v46 }
 0x3fa   :  { %16537 = vmatprep.subr.bf16.mxu0 %v22390_v10  ;;  %16713 = vmatprep.subr.bf16.mxu1 %v22348_v24 }
 0x3fd   :  { %16539 = vmatpush1.bf16.msra.mxu0 %v22391_v61  ;;  %16715 = vmatpush3.bf16.msra.mxu1 %v22441_v58 }
 0x3fe   :  { %16541 = vmatprep.subr.bf16.mxu0 %v22442_v11  ;;  %16716 = vmatprep.subr.bf16.mxu1 %v22348_v24 }
 0x400   :  { %3479 = vmatmul.mubr.f32.vlgmr.msra.gmra.mrb[4].mxu0 %v20174_v41  ;;  %14402 = vmatmul.mubr.f32.vlgmr.msra.gmra.mrb[28].mxu1 %v20174_v41 }
 0x401   :  { %16543 = vmatpush1.bf16.msra.mxu0 %v22443_v2  ;;  %16718 = vmatpush3.bf16.msra.mxu1 %v22444_v20 }
 0x402   :  { %16545 = vmatprep.subr.bf16.mxu0 %v22445_v60  ;;  %16719 = vmatprep.subr.bf16.mxu1 %v22348_v24 }
 0x403   :  { %3613 = vmatprep.mubr.f32.mxu0 %v22294_v5  ;;  %14436 = vmatprep.mubr.msk.f32.mxu1 %vm18871_vm0, %v22294_v5 }
 0x405   :  { %16547 = vmatpush1.bf16.msra.mxu0 %v22446_v15  ;;  %16721 = vmatpush3.bf16.msra.mxu1 %v22447_v43  ;;  %v22483_v43 = vld [vmem:[#allocation71_spill] sm:$0xff] }
 0x406   :  { %16549 = vmatprep.subr.bf16.mxu0 %v22448_v63  ;;  %16722 = vmatprep.subr.bf16.mxu1 %v22348_v24  ;;  %v22478_v63 = vld [vmem:[#allocation40_spill] sm:$0xff]  ;;  %v22484_v15 = vld [vmem:[#allocation47_spill] sm:$0xff] }
 0x409   :  { %16551 = vmatpush1.bf16.msra.mxu0 %v22449_v47  ;;  %16724 = vmatpush3.bf16.msra.mxu1 %v22450_v62  ;;  %v22460_v62 = vld [vmem:[#allocation65_spill] sm:$0xff] }
 0x40a   :  { %16553 = vmatprep.subr.bf16.mxu0 %v22451_v19  ;;  %16725 = vmatprep.subr.bf16.mxu1 %v22348_v24  ;;  %v22459_v19 = vld [vmem:[#allocation85_spill] sm:$0xff] }
 0x40b   :  { %v22477_v47 = vld [vmem:[#allocation21_spill] sm:$0xff] }
 0x40d   :  { %16555 = vmatpush1.bf16.msra.mxu0 %v22452_v1  ;;  %16727 = vmatpush3.bf16.msra.mxu1 %v22453_v27  ;;  %v22461_v27 = vld [vmem:[#allocation66_spill] sm:$0xff]  ;;  %v22463_v1 = vld [vmem:[#allocation67_spill] sm:$0xff] }
 0x40e   :  { %16557 = vmatprep.subr.bf16.mxu0 %v22454_v22  ;;  %16728 = vmatprep.subr.bf16.mxu1 %v22348_v24  ;;  %v22462_v22 = vld [vmem:[#allocation86_spill] sm:$0xff] }
 0x411   :  { %16559 = vmatpush1.bf16.msra.mxu0 %v22455_v50  ;;  %16730 = vmatpush3.bf16.msra.mxu1 %v22456_v33  ;;  %v22464_v33 = vld [vmem:[#allocation68_spill] sm:$0xff]  ;;  %v22475_v50 = vld [vmem:[#allocation35_spill] sm:$0xff] }
 0x412   :  { %16561 = vmatprep.subr.bf16.mxu0 %v22457_v3  ;;  %16731 = vmatprep.subr.bf16.mxu1 %v22348_v24  ;;  %v22465_v3 = vld [vmem:[#allocation87_spill] sm:$0xff] }
 0x415   :  { %16563 = vmatpush1.bf16.msra.mxu0 %v22458_v7  ;;  %16733 = vmatpush3.bf16.msra.mxu1 %v22459_v19  ;;  %v22473_v19 = vld [vmem:[#allocation31_spill] sm:$0xff]  ;;  %v22474_v7 = vld [vmem:[#allocation69_spill] sm:$0xff] }
 0x416   :  { %16565 = vmatprep.subr.bf16.mxu0 %v22460_v62  ;;  %16734 = vmatprep.subr.bf16.mxu1 %v22348_v24  ;;  %v22472_v62 = vld [vmem:[#allocation30_spill] sm:$0xff] }
 0x419   :  { %16567 = vmatpush1.bf16.msra.mxu0 %v22461_v27  ;;  %16736 = vmatpush3.bf16.msra.mxu1 %v22462_v22  ;;  %v22470_v22 = vld [vmem:[#allocation28_spill] sm:$0xff]  ;;  %v22471_v27 = vld [vmem:[#allocation78_spill] sm:$0xff] }
 0x41a   :  { %16569 = vmatprep.subr.bf16.mxu0 %v22463_v1  ;;  %16737 = vmatprep.subr.bf16.mxu1 %v22348_v24  ;;  %v22469_v1 = vld [vmem:[#allocation27_spill] sm:$0xff] }
 0x41d   :  { %16571 = vmatpush1.bf16.msra.mxu0 %v22464_v33  ;;  %16739 = vmatpush3.bf16.msra.mxu1 %v22465_v3  ;;  %v22467_v3 = vld [vmem:[#allocation25_spill] sm:$0xff]  ;;  %v22468_v33 = vld [vmem:[#allocation76_spill] sm:$0xff] }
 0x41e   :  { %16573 = vmatprep.subr.bf16.mxu0 %v22408_v17  ;;  %16740 = vmatprep.subr.bf16.mxu1 %v22348_v24 }
 0x420   :  { %3616 = vmatmul.mubr.f32.vlgmr.msra.gmra.mrb[4].mxu0 %v20178_v39  ;;  %14437 = vmatmul.mubr.f32.vlgmr.msra.gmra.mrb[30].mxu1 %v20178_v39  ;;  %v22466_v39 = vld [vmem:[#allocation24_spill] sm:$0xff] }
 0x421   :  { %16575 = vmatpush1.bf16.msra.mxu0 %v22409_v36  ;;  %16742 = vmatpush3.bf16.msra.mxu1 %v19586_v29 }
 0x422   :  { %16577 = vmatprep.subr.bf16.mxu0 %v22410_v18  ;;  %16743 = vmatprep.subr.bf16.mxu1 %v22348_v24 }
 0x423   :  { %3718 = vmatprep.mubr.f32.mxu0 %v22294_v5  ;;  %14471 = vmatprep.mubr.msk.f32.mxu1 %vm18871_vm0, %v22294_v5 }
 0x425   :  { %16579 = vmatpush1.bf16.msra.mxu0 %v22411_v9  ;;  %16745 = vmatpush3.bf16.msra.mxu1 %v19607_v16 }
 0x426   :  { %16581 = vmatprep.subr.bf16.mxu0 %v22412_v21  ;;  %16746 = vmatprep.subr.bf16.mxu1 %v22348_v24 }
 0x429   :  { %16583 = vmatpush1.bf16.msra.mxu0 %v22413_v28  ;;  %16748 = vmatpush3.bf16.msra.mxu1 %v19628_v56 }
 0x42a   :  { %16585 = vmatprep.subr.bf16.mxu0 %v22414_v26  ;;  %16749 = vmatprep.subr.bf16.mxu1 %v22348_v24 }
 0x42d   :  { %16587 = vmatpush1.bf16.msra.mxu0 %v22415_v42  ;;  %16751 = vmatpush3.bf16.msra.mxu1 %v19646_v25 }
 0x42e   :  { %16589 = vmatprep.subr.bf16.mxu0 %v22416_v44  ;;  %16752 = vmatprep.subr.bf16.mxu1 %v22348_v24 }
 0x431   :  { %16591 = vmatpush1.bf16.msra.mxu0 %v22417_v12  ;;  %16754 = vmatpush3.bf16.msra.mxu1 %v19664_v8 }
 0x432   :  { %16593 = vmatprep.subr.bf16.mxu0 %v22418_v6  ;;  %16755 = vmatprep.subr.bf16.mxu1 %v22348_v24 }
 0x435   :  { %16595 = vmatpush1.bf16.msra.mxu0 %v22419_v37  ;;  %16757 = vmatpush3.bf16.msra.mxu1 %v19682_v31 }
 0x436   :  { %16597 = vmatprep.subr.bf16.mxu0 %v22466_v39  ;;  %16758 = vmatprep.subr.bf16.mxu1 %v22348_v24 }
 0x439   :  { %16599 = vmatpush1.bf16.msra.mxu0 %v22467_v3  ;;  %16760 = vmatpush3.bf16.msra.mxu1 %v22468_v33 }
 0x43a   :  { %16601 = vmatprep.subr.bf16.mxu0 %v22469_v1  ;;  %16761 = vmatprep.subr.bf16.mxu1 %v22348_v24 }
 0x43d   :  { %16603 = vmatpush1.bf16.msra.mxu0 %v22470_v22  ;;  %16763 = vmatpush3.bf16.msra.mxu1 %v22471_v27 }
 0x43e   :  { %16605 = vmatprep.subr.bf16.mxu0 %v22472_v62  ;;  %16764 = vmatprep.subr.bf16.mxu1 %v22348_v24  ;;  %v22476_v62 = vld [vmem:[#allocation36_spill] sm:$0xff] }
 0x440   :  { %3722 = vmatmul.mubr.f32.vlgmr.msra.gmra.mrb[4].mxu0 %v20181_v52  ;;  %14472 = vmatmul.mubr.f32.vlgmr.msra.gmra.mrb[32].mxu1 %v20181_v52  ;;  %v22479_v52 = vld [vmem:[#allocation42_spill] sm:$0xff] }
 0x441   :  { %16607 = vmatpush1.bf16.msra.mxu0 %v22473_v19  ;;  %16766 = vmatpush3.bf16.msra.mxu1 %v22474_v7  ;;  %v22480_v7 = vld [vmem:[#allocation70_spill] sm:$0xff]  ;;  %v22482_v19 = vld [vmem:[#allocation45_spill] sm:$0xff] }
 0x442   :  { %16609 = vmatprep.subr.bf16.mxu0 %v22475_v50  ;;  %16767 = vmatprep.subr.bf16.mxu1 %v22348_v24  ;;  %v22481_v50 = vld [vmem:[#allocation44_spill] sm:$0xff] }
 0x443   :  { %3888 = vmatprep.mubr.f32.mxu0 %v22294_v5  ;;  %14506 = vmatprep.mubr.msk.f32.mxu1 %vm18871_vm0, %v22294_v5 }
 0x445   :  { %16611 = vmatpush1.bf16.msra.mxu0 %v22476_v62  ;;  %16769 = vmatpush3.bf16.msra.mxu1 %v22477_v47  ;;  %v22485_v47 = vld [vmem:[#allocation48_spill] sm:$0xff]  ;;  %v22487_v62 = vld [vmem:[#allocation49_spill] sm:$0xff] }
 0x446   :  { %16613 = vmatprep.subr.bf16.mxu0 %v22478_v63  ;;  %16770 = vmatprep.subr.bf16.mxu1 %v22348_v24  ;;  %v22486_v63 = vld [vmem:[#allocation73_spill] sm:$0xff] }
 0x449   :  { %16615 = vmatpush1.bf16.msra.mxu0 %v22479_v52  ;;  %16772 = vmatpush3.bf16.msra.mxu1 %v22480_v7  ;;  %v22488_v7 = vld [vmem:[#allocation50_spill] sm:$0xff]  ;;  %v22490_v52 = vld [vmem:[#allocation51_spill] sm:$0xff] }
 0x44a   :  { %16617 = vmatprep.subr.bf16.mxu0 %v22481_v50  ;;  %16773 = vmatprep.subr.bf16.mxu1 %v22348_v24  ;;  %v22489_v50 = vld [vmem:[#allocation75_spill] sm:$0xff] }
 0x44d   :  { %16619 = vmatpush1.bf16.msra.mxu0 %v22482_v19  ;;  %16775 = vmatpush3.bf16.msra.mxu1 %v22483_v43  ;;  %v22491_v43 = vld [vmem:[#allocation52_spill] sm:$0xff]  ;;  %v22493_v19 = vld [vmem:[#allocation54_spill] sm:$0xff] }
 0x44e   :  { %16621 = vmatprep.subr.bf16.mxu0 %v22484_v15  ;;  %16776 = vmatprep.subr.bf16.mxu1 %v22348_v24  ;;  %v22492_v15 = vld [vmem:[#allocation77_spill] sm:$0xff] }
 0x451   :  { %16623 = vmatpush1.bf16.msra.mxu0 %v22485_v47  ;;  %16778 = vmatpush3.bf16.msra.mxu1 %v22486_v63  ;;  %v22494_v63 = vld [vmem:[#allocation56_spill] sm:$0xff] }
 0x452   :  { %16625 = vmatprep.subr.bf16.mxu0 %v22487_v62  ;;  %16779 = vmatprep.subr.bf16.mxu1 %v22348_v24  ;;  %v22495_v62 = vld [vmem:[#allocation79_spill] sm:$0xff] }
 0x455   :  { %16627 = vmatpush1.bf16.msra.mxu0 %v22488_v7  ;;  %16781 = vmatpush3.bf16.msra.mxu1 %v22489_v50 }
 0x456   :  { %16629 = vmatprep.subr.bf16.mxu0 %v22490_v52  ;;  %16782 = vmatprep.subr.bf16.mxu1 %v22348_v24 }
 0x459   :  { %16631 = vmatpush1.bf16.msra.mxu0 %v22491_v43  ;;  %16784 = vmatpush3.bf16.msra.mxu1 %v22492_v15 }
 0x45a   :  { %16633 = vmatprep.subr.bf16.mxu0 %v22493_v19  ;;  %16785 = vmatprep.subr.bf16.mxu1 %v22348_v24 }
 0x45d   :  { %16635 = vmatpush1.bf16.msra.mxu0 %v22494_v63  ;;  %16787 = vmatpush3.bf16.msra.mxu1 %v22495_v62 }
 0x45e   :  { %16637 = vmatprep.subr.bf16.mxu0 %v22408_v17  ;;  %16788 = vmatprep.subr.bf16.mxu1 %v22348_v24 }
 0x460   :  { %3890 = vmatmul.mubr.f32.vlgmr.msra.gmra.mrb[4].mxu0 %v20174_v41  ;;  %14507 = vmatmul.mubr.f32.vlgmr.msra.gmra.mrb[34].mxu1 %v20174_v41 }
 0x461   :  { %16639 = vmatpush1.bf16.msra.mxu0 %v22409_v36  ;;  %16790 = vmatpush3.bf16.msra.mxu1 %v19586_v29 }
 0x462   :  { %16641 = vmatprep.subr.bf16.mxu0 %v22410_v18  ;;  %16791 = vmatprep.subr.bf16.mxu1 %v22348_v24 }
 0x463   :  { %3992 = vmatprep.mubr.f32.mxu0 %v22294_v5  ;;  %14541 = vmatprep.mubr.msk.f32.mxu1 %vm18871_vm0, %v22294_v5 }
 0x465   :  { %16643 = vmatpush1.bf16.msra.mxu0 %v22411_v9  ;;  %16793 = vmatpush3.bf16.msra.mxu1 %v19607_v16 }
 0x466   :  { %16645 = vmatprep.subr.bf16.mxu0 %v22412_v21  ;;  %16794 = vmatprep.subr.bf16.mxu1 %v22348_v24 }
 0x469   :  { %16647 = vmatpush1.bf16.msra.mxu0 %v22413_v28  ;;  %16796 = vmatpush3.bf16.msra.mxu1 %v19628_v56 }
 0x46a   :  { %16649 = vmatprep.subr.bf16.mxu0 %v22414_v26  ;;  %16797 = vmatprep.subr.bf16.mxu1 %v22348_v24 }
 0x46d   :  { %16651 = vmatpush1.bf16.msra.mxu0 %v22415_v42  ;;  %16799 = vmatpush3.bf16.msra.mxu1 %v19646_v25 }
 0x46e   :  { %16653 = vmatprep.subr.bf16.mxu0 %v22416_v44  ;;  %16800 = vmatprep.subr.bf16.mxu1 %v22348_v24 }
 0x471   :  { %16655 = vmatpush1.bf16.msra.mxu0 %v22417_v12  ;;  %16802 = vmatpush3.bf16.msra.mxu1 %v19664_v8 }
 0x472   :  { %16657 = vmatprep.subr.bf16.mxu0 %v22418_v6  ;;  %16803 = vmatprep.subr.bf16.mxu1 %v22348_v24 }
 0x475   :  { %16659 = vmatpush1.bf16.msra.mxu0 %v22419_v37  ;;  %16805 = vmatpush3.bf16.msra.mxu1 %v19682_v31 }
 0x476   :  { %16661 = vmatprep.subr.bf16.mxu0 %v22466_v39  ;;  %16806 = vmatprep.subr.bf16.mxu1 %v22348_v24 }
 0x479   :  { %16663 = vmatpush1.bf16.msra.mxu0 %v22467_v3  ;;  %16808 = vmatpush3.bf16.msra.mxu1 %v22468_v33 }
 0x47a   :  { %16665 = vmatprep.subr.bf16.mxu0 %v22469_v1  ;;  %16809 = vmatprep.subr.bf16.mxu1 %v22348_v24 }
 0x47d   :  { %16667 = vmatpush1.bf16.msra.mxu0 %v22470_v22  ;;  %16811 = vmatpush3.bf16.msra.mxu1 %v22471_v27 }
 0x47e   :  { %16813 = vmatprep.subr.bf16.mxu0 %v22408_v17  ;;  %17004 = vmatprep.subr.bf16.mxu1 %v22348_v24 }
 0x480   :  { %3994 = vmatmul.mubr.f32.vlgmr.msra.gmra.mrb[4].mxu0 %v20174_v41  ;;  %14542 = vmatmul.mubr.f32.vlgmr.msra.gmra.mrb[36].mxu1 %v20174_v41  ;;  %v22496_v41 = vld [vmem:[#allocation32_spill] sm:$0xff] }
 0x481   :  { %16815 = vmatpush1.bf16.msra.mxu0 %v22409_v36  ;;  %17006 = vmatpush3.bf16.msra.mxu1 %v19586_v29 }
 0x482   :  { %16817 = vmatprep.subr.bf16.mxu0 %v22410_v18  ;;  %17007 = vmatprep.subr.bf16.mxu1 %v22348_v24 }
 0x483   :  { %4765 = vmatprep.mubr.f32.mxu0 %v22294_v5  ;;  %14576 = vmatprep.mubr.msk.f32.mxu1 %vm18871_vm0, %v22294_v5 }
 0x485   :  { %16819 = vmatpush1.bf16.msra.mxu0 %v22411_v9  ;;  %17009 = vmatpush3.bf16.msra.mxu1 %v19607_v16 }
 0x486   :  { %16821 = vmatprep.subr.bf16.mxu0 %v22412_v21  ;;  %17010 = vmatprep.subr.bf16.mxu1 %v22348_v24 }
 0x489   :  { %16823 = vmatpush1.bf16.msra.mxu0 %v22413_v28  ;;  %17012 = vmatpush3.bf16.msra.mxu1 %v19628_v56 }
 0x48a   :  { %16825 = vmatprep.subr.bf16.mxu0 %v22414_v26  ;;  %17013 = vmatprep.subr.bf16.mxu1 %v22348_v24 }
 0x48d   :  { %16827 = vmatpush1.bf16.msra.mxu0 %v22415_v42  ;;  %17015 = vmatpush3.bf16.msra.mxu1 %v19646_v25 }
 0x48e   :  { %16829 = vmatprep.subr.bf16.mxu0 %v22416_v44  ;;  %17016 = vmatprep.subr.bf16.mxu1 %v22348_v24 }
 0x491   :  { %16831 = vmatpush1.bf16.msra.mxu0 %v22417_v12  ;;  %17018 = vmatpush3.bf16.msra.mxu1 %v19664_v8 }
 0x492   :  { %16833 = vmatprep.subr.bf16.mxu0 %v22418_v6  ;;  %17019 = vmatprep.subr.bf16.mxu1 %v22348_v24 }
 0x495   :  { %16835 = vmatpush1.bf16.msra.mxu0 %v22419_v37  ;;  %17021 = vmatpush3.bf16.msra.mxu1 %v19682_v31 }
 0x496   :  { %16837 = vmatprep.subr.bf16.mxu0 %v22466_v39  ;;  %17022 = vmatprep.subr.bf16.mxu1 %v22348_v24 }
 0x499   :  { %16839 = vmatpush1.bf16.msra.mxu0 %v22467_v3  ;;  %17024 = vmatpush3.bf16.msra.mxu1 %v22468_v33 }
 0x49a   :  { %16841 = vmatprep.subr.bf16.mxu0 %v22469_v1  ;;  %17025 = vmatprep.subr.bf16.mxu1 %v22348_v24 }
 0x49d   :  { %16843 = vmatpush1.bf16.msra.mxu0 %v22470_v22  ;;  %17027 = vmatpush3.bf16.msra.mxu1 %v22471_v27 }
 0x49e   :  { %16845 = vmatprep.subr.bf16.mxu0 %v22496_v41  ;;  %17028 = vmatprep.subr.bf16.mxu1 %v22348_v24  ;;  %v12977_v41 = vld [vmem:[%s21947_s0 + $0xc] sm:$0x3f] }
 0x4b3   :  { %v4087_v62 = vpop.f32.mrb[26].mxu1 }
 0x4b4   :  { %v14368_v63 = vpop.f32.mrb[27].mxu1 }
 0x4d3   :  { %v4238_v19 = vpop.f32.mrb[28].mxu1 }
 0x4d4   :  { %v4239_v15 = vadd.f32 %v4238_v19, %v4087_v62  ;;  %v14403_v43 = vpop.f32.mrb[29].mxu1 }
 0x4f3   :  { %v4342_v52 = vpop.f32.mrb[30].mxu1 }
 0x4f4   :  { %v4343_v50 = vadd.f32 %v4342_v52, %v4239_v15  ;;  %v14438_v7 = vpop.f32.mrb[31].mxu1  ;;  %v4649_v15 = vrot.slane %v12977_v41, 2 }
 0x513   :  { %v4431_v47 = vpop.f32.mrb[32].mxu1 }
 0x514   :  { %v4432_v1 = vadd.f32 %v4431_v47, %v4343_v50  ;;  %v14473_v33 = vpop.f32.mrb[33].mxu1 }
 0x515   :  { %v20411_v33 = vld [vmem:[%s21949_s2] ss:$0 sm:$0xff] }
 0x533   :  { %v4550_v3 = vpop.f32.mrb[34].mxu1 }
 0x534   :  { %v4551_v39 = vadd.f32 %v4550_v3, %v4432_v1  ;;  %v14508_v22 = vpop.f32.mrb[35].mxu1 }
 0x535   :  { %v4660_v22 = vrot.slane %v12977_v41, 4 }
 0x553   :  { %v3995_v27 = vpop.f32.mrb[4].mxu0  ;;  %v4637_v31 = vpop.f32.mrb[36].mxu1 }
 0x554   :  { %v4641_v37 = vadd.f32 %v12977_v41, %v3995_v27  ;;  %v4638_v63 = vadd.f32 %v4637_v31, %v4551_v39  ;;  %v3997_v6 = vpop.f32.mrb[5].mxu0  ;;  %v14543_v62 = vpop.f32.mrb[37].mxu1 }
 0x555   :  { %v4651_v19 = vadd.f32 %v4649_v15, %v3997_v6 }
 0x556   :  { %v12978_v43 = vmul.f32 -1.442695, %v4641_v37  ;;  %v4658_v31 = vadd.f32 %v20411_v33, %v4638_v63 }
 0x557   :  { %v12979_v7 = vmul.f32 -1.442695, %v4651_v19 }
 0x558   :  { %18754 = vpow2.f32 %v12978_v43 }
 0x559   :  { %18756 = vpow2.f32 %v12979_v7 }
 0x562   :  { %v18755_v47 = vpop.eup %18754 }
 0x563   :  { %v4645_v50 = vadd.f32 1.0, %v18755_v47  ;;  %v18757_v1 = vpop.eup %18756 }
 0x564   :  { %v4655_v39 = vadd.f32 1.0, %v18757_v1  ;;  %v22499_v1 = vld [vmem:[#allocation22_spill] sm:$0xff] }
 0x565   :  { %18758 = vrcp.f32 %v4645_v50  ;;  %v22498_v50 = vld [vmem:[#allocation81_spill] sm:$0xff] }
 0x56f   :  { %v18759_v27 = vpop.eup %18758 }
 0x570   :  { %v4659_v3 = vmul.f32 %v18759_v27, %v4658_v31  ;;  %v22501_v31 = vld [vmem:[#allocation82_spill] sm:$0xff]  ;;  %v22502_v27 = vld [vmem:[#allocation33_spill] sm:$0xff] }
 0x572   :  { %v4662_v37 = vadd.f32 %v4660_v22, %v4659_v3  ;;  %v22500_v22 = vld [vmem:[#allocation29_spill] sm:$0xff]  ;;  %v22503_v3 = vld [vmem:[#allocation60_spill] sm:$0xff] }
 0x574   :  { %18760 = vtanh.f32 %v4662_v37  ;;  %v22504_v37 = vld [vmem:[#allocation83_spill] sm:$0xff] }
 0x575   :  { %18762 = vrcp.f32 %v4655_v39  ;;  %v22505_v39 = vld [vmem:[#allocation61_spill] sm:$0xff] }
 0x57e   :  { %v18761_v6 = vpop.eup %18760 }
 0x57f   :  { %v4664_v52 = vsub.f32 %v20171_v23, %v18761_v6  ;;  %v18763_v62 = vpop.eup %18762  ;;  %v22497_v23 = vld [vmem:[#allocation20_spill] sm:$0xff] }
 0x581   :  { %v4665_v43 = vmul.f32 %v18763_v62, %v4664_v52  ;;  %v22507_v52 = vld [vmem:[#allocation84_spill] sm:$0xff]  ;;  %v22508_v62 = vld [vmem:[#allocation63_spill] sm:$0xff] }
 0x583   :  { %v20415_v15 = vadd.f32 %v18761_v6, %v4665_v43  ;;  %v22506_v6 = vld [vmem:[#allocation62_spill] sm:$0xff]  ;;  %v22509_v43 = vld [vmem:[#allocation64_spill] sm:$0xff] }
 0x585   :  { %v20418_v41 = vand.u32 4294901760, %v20415_v15 }
 0x587   :  { %v20422_v19 = vsub.f32 %v20415_v15, %v20418_v41 }
 0x589   :  { %v20425_v63 = vand.u32 4294901760, %v20422_v19 }
 0x58b   :  { %v4769_v7 = vsub.f32 %v20422_v19, %v20425_v63 }
 0x58d   :  { %v4770_v47 = vand.u32 4294901760, %v4769_v7  ;;  %v22510_v7 = vld [vmem:[#allocation85_spill] sm:$0xff] }
 0x58f   :  { %4771 = vmatmul.mubr.f32.vlgmr.msra.gmra.mrb[6].mxu0 %v4770_v47  ;;  %14577 = vmatmul.mubr.f32.vlgmr.msra.gmra.mrb[38].mxu1 %v4770_v47  ;;  %v22511_v47 = vld [vmem:[#allocation65_spill] sm:$0xff] }
 0x590   :  { %16847 = vmatpush1.bf16.msra.mxu0 %v22384_v57  ;;  %17030 = vmatpush3.bf16.msra.mxu1 %v19733_v45 }
 0x591   :  { %16849 = vmatprep.subr.bf16.mxu0 %v22385_v40  ;;  %17031 = vmatprep.subr.bf16.mxu1 %v22348_v24 }
 0x592   :  { %5001 = vmatprep.mubr.f32.mxu0 %v22294_v5  ;;  %14611 = vmatprep.mubr.msk.f32.mxu1 %vm18871_vm0, %v22294_v5 }
 0x594   :  { %16851 = vmatpush1.bf16.msra.mxu0 %v22386_v51  ;;  %17033 = vmatpush3.bf16.msra.mxu1 %v19749_v32 }
 0x595   :  { %16853 = vmatprep.subr.bf16.mxu0 %v22387_v35  ;;  %17034 = vmatprep.subr.bf16.mxu1 %v22348_v24 }
 0x598   :  { %16855 = vmatpush1.bf16.msra.mxu0 %v22388_v14  ;;  %17036 = vmatpush3.bf16.msra.mxu1 %v19755_v54 }
 0x599   :  { %16857 = vmatprep.subr.bf16.mxu0 %v22389_v48  ;;  %17037 = vmatprep.subr.bf16.mxu1 %v22348_v24 }
 0x59c   :  { %16859 = vmatpush1.bf16.msra.mxu0 %v19353_v13  ;;  %17039 = vmatpush3.bf16.msra.mxu1 %v19764_v55 }
 0x59d   :  { %16861 = vmatprep.subr.bf16.mxu0 %v19395_v53  ;;  %17040 = vmatprep.subr.bf16.mxu1 %v22348_v24 }
 0x5a0   :  { %16863 = vmatpush1.bf16.msra.mxu0 %v19413_v38  ;;  %17042 = vmatpush3.bf16.msra.mxu1 %v19776_v49 }
 0x5a1   :  { %16865 = vmatprep.subr.bf16.mxu0 %v19418_v34  ;;  %17043 = vmatprep.subr.bf16.mxu1 %v22348_v24 }
 0x5a4   :  { %16867 = vmatpush1.bf16.msra.mxu0 %v19448_v0  ;;  %17045 = vmatpush3.bf16.msra.mxu1 %v19782_v4 }
 0x5a5   :  { %16869 = vmatprep.subr.bf16.mxu0 %v19450_v59  ;;  %17046 = vmatprep.subr.bf16.mxu1 %v22348_v24 }
 0x5a8   :  { %16871 = vmatpush1.bf16.msra.mxu0 %v19458_v30  ;;  %17048 = vmatpush3.bf16.msra.mxu1 %v19787_v46 }
 0x5a9   :  { %16873 = vmatprep.subr.bf16.mxu0 %v22390_v10  ;;  %17049 = vmatprep.subr.bf16.mxu1 %v22348_v24 }
 0x5ac   :  { %16875 = vmatpush1.bf16.msra.mxu0 %v22391_v61  ;;  %17051 = vmatpush3.bf16.msra.mxu1 %v22441_v58 }
 0x5ad   :  { %16877 = vmatprep.subr.bf16.mxu0 %v22442_v11  ;;  %17052 = vmatprep.subr.bf16.mxu1 %v22348_v24 }
 0x5af   :  { %5003 = vmatmul.mubr.f32.vlgmr.msra.gmra.mrb[6].mxu0 %v20418_v41  ;;  %14612 = vmatmul.mubr.f32.vlgmr.msra.gmra.mrb[40].mxu1 %v20418_v41 }
 0x5b0   :  { %16879 = vmatpush1.bf16.msra.mxu0 %v22443_v2  ;;  %17054 = vmatpush3.bf16.msra.mxu1 %v22444_v20 }
 0x5b1   :  { %16881 = vmatprep.subr.bf16.mxu0 %v22445_v60  ;;  %17055 = vmatprep.subr.bf16.mxu1 %v22348_v24  ;;  %v22538_v60 = vld [vmem:[#allocation47_spill] sm:$0xff] }
 0x5b2   :  { %5137 = vmatprep.mubr.f32.mxu0 %v22294_v5  ;;  %14646 = vmatprep.mubr.msk.f32.mxu1 %vm18871_vm0, %v22294_v5 }
 0x5b4   :  { %16883 = vmatpush1.bf16.msra.mxu0 %v22497_v23  ;;  %17057 = vmatpush3.bf16.msra.mxu1 %v22498_v50  ;;  %v22532_v50 = vld [vmem:[#allocation40_spill] sm:$0xff]  ;;  %v22537_v23 = vld [vmem:[#allocation71_spill] sm:$0xff] }
 0x5b5   :  { %16885 = vmatprep.subr.bf16.mxu0 %v22499_v1  ;;  %17058 = vmatprep.subr.bf16.mxu1 %v22348_v24  ;;  %v22531_v1 = vld [vmem:[#allocation21_spill] sm:$0xff] }
 0x5b8   :  { %16887 = vmatpush1.bf16.msra.mxu0 %v22500_v22  ;;  %17060 = vmatpush3.bf16.msra.mxu1 %v22501_v31  ;;  %v22528_v31 = vld [vmem:[#allocation69_spill] sm:$0xff]  ;;  %v22529_v22 = vld [vmem:[#allocation35_spill] sm:$0xff] }
 0x5b9   :  { %16889 = vmatprep.subr.bf16.mxu0 %v22502_v27  ;;  %17061 = vmatprep.subr.bf16.mxu1 %v22348_v24  ;;  %v22527_v27 = vld [vmem:[#allocation31_spill] sm:$0xff] }
 0x5bc   :  { %16891 = vmatpush1.bf16.msra.mxu0 %v22503_v3  ;;  %17063 = vmatpush3.bf16.msra.mxu1 %v22504_v37  ;;  %v22512_v37 = vld [vmem:[#allocation66_spill] sm:$0xff]  ;;  %v22514_v3 = vld [vmem:[#allocation67_spill] sm:$0xff] }
 0x5bd   :  { %16893 = vmatprep.subr.bf16.mxu0 %v22505_v39  ;;  %17064 = vmatprep.subr.bf16.mxu1 %v22348_v24  ;;  %v22513_v39 = vld [vmem:[#allocation86_spill] sm:$0xff] }
 0x5c0   :  { %16895 = vmatpush1.bf16.msra.mxu0 %v22506_v6  ;;  %17066 = vmatpush3.bf16.msra.mxu1 %v22507_v52  ;;  %v22515_v52 = vld [vmem:[#allocation68_spill] sm:$0xff]  ;;  %v22526_v6 = vld [vmem:[#allocation30_spill] sm:$0xff] }
 0x5c1   :  { %16897 = vmatprep.subr.bf16.mxu0 %v22508_v62  ;;  %17067 = vmatprep.subr.bf16.mxu1 %v22348_v24  ;;  %v22516_v62 = vld [vmem:[#allocation87_spill] sm:$0xff] }
 0x5c4   :  { %16899 = vmatpush1.bf16.msra.mxu0 %v22509_v43  ;;  %17069 = vmatpush3.bf16.msra.mxu1 %v22510_v7  ;;  %v22524_v7 = vld [vmem:[#allocation28_spill] sm:$0xff]  ;;  %v22525_v43 = vld [vmem:[#allocation78_spill] sm:$0xff] }
 0x5c5   :  { %16901 = vmatprep.subr.bf16.mxu0 %v22511_v47  ;;  %17070 = vmatprep.subr.bf16.mxu1 %v22348_v24  ;;  %v22523_v47 = vld [vmem:[#allocation27_spill] sm:$0xff] }
 0x5c8   :  { %16903 = vmatpush1.bf16.msra.mxu0 %v22512_v37  ;;  %17072 = vmatpush3.bf16.msra.mxu1 %v22513_v39  ;;  %v22521_v39 = vld [vmem:[#allocation25_spill] sm:$0xff]  ;;  %v22522_v37 = vld [vmem:[#allocation76_spill] sm:$0xff] }
 0x5c9   :  { %16905 = vmatprep.subr.bf16.mxu0 %v22514_v3  ;;  %17073 = vmatprep.subr.bf16.mxu1 %v22348_v24  ;;  %v22520_v3 = vld [vmem:[#allocation24_spill] sm:$0xff] }
 0x5cc   :  { %16907 = vmatpush1.bf16.msra.mxu0 %v22515_v52  ;;  %17075 = vmatpush3.bf16.msra.mxu1 %v22516_v62  ;;  %v22518_v62 = vld [vmem:[#allocation23_spill] sm:$0xff]  ;;  %v22519_v52 = vld [vmem:[#allocation74_spill] sm:$0xff] }
 0x5cd   :  { %16909 = vmatprep.subr.bf16.mxu0 %v22408_v17  ;;  %17076 = vmatprep.subr.bf16.mxu1 %v22348_v24 }
 0x5cf   :  { %5140 = vmatmul.mubr.f32.vlgmr.msra.gmra.mrb[6].mxu0 %v20422_v19  ;;  %14647 = vmatmul.mubr.f32.vlgmr.msra.gmra.mrb[42].mxu1 %v20422_v19  ;;  %v22517_v19 = vld [vmem:[#allocation19_spill] sm:$0xff] }
 0x5d0   :  { %16911 = vmatpush1.bf16.msra.mxu0 %v22409_v36  ;;  %17078 = vmatpush3.bf16.msra.mxu1 %v19586_v29 }
 0x5d1   :  { %16913 = vmatprep.subr.bf16.mxu0 %v22410_v18  ;;  %17079 = vmatprep.subr.bf16.mxu1 %v22348_v24 }
 0x5d2   :  { %5242 = vmatprep.mubr.f32.mxu0 %v22294_v5  ;;  %14681 = vmatprep.mubr.msk.f32.mxu1 %vm18871_vm0, %v22294_v5 }
 0x5d4   :  { %16915 = vmatpush1.bf16.msra.mxu0 %v22411_v9  ;;  %17081 = vmatpush3.bf16.msra.mxu1 %v19607_v16 }
 0x5d5   :  { %16917 = vmatprep.subr.bf16.mxu0 %v22412_v21  ;;  %17082 = vmatprep.subr.bf16.mxu1 %v22348_v24 }
 0x5d8   :  { %16919 = vmatpush1.bf16.msra.mxu0 %v22413_v28  ;;  %17084 = vmatpush3.bf16.msra.mxu1 %v19628_v56 }
 0x5d9   :  { %16921 = vmatprep.subr.bf16.mxu0 %v22414_v26  ;;  %17085 = vmatprep.subr.bf16.mxu1 %v22348_v24 }
 0x5dc   :  { %16923 = vmatpush1.bf16.msra.mxu0 %v22415_v42  ;;  %17087 = vmatpush3.bf16.msra.mxu1 %v19646_v25 }
 0x5dd   :  { %16925 = vmatprep.subr.bf16.mxu0 %v22416_v44  ;;  %17088 = vmatprep.subr.bf16.mxu1 %v22348_v24 }
 0x5e0   :  { %16927 = vmatpush1.bf16.msra.mxu0 %v22417_v12  ;;  %17090 = vmatpush3.bf16.msra.mxu1 %v19664_v8 }
 0x5e1   :  { %16929 = vmatprep.subr.bf16.mxu0 %v22517_v19  ;;  %17091 = vmatprep.subr.bf16.mxu1 %v22348_v24 }
 0x5e4   :  { %16931 = vmatpush1.bf16.msra.mxu0 %v22518_v62  ;;  %17093 = vmatpush3.bf16.msra.mxu1 %v22519_v52 }
 0x5e5   :  { %16933 = vmatprep.subr.bf16.mxu0 %v22520_v3  ;;  %17094 = vmatprep.subr.bf16.mxu1 %v22348_v24 }
 0x5e8   :  { %16935 = vmatpush1.bf16.msra.mxu0 %v22521_v39  ;;  %17096 = vmatpush3.bf16.msra.mxu1 %v22522_v37 }
 0x5e9   :  { %16937 = vmatprep.subr.bf16.mxu0 %v22523_v47  ;;  %17097 = vmatprep.subr.bf16.mxu1 %v22348_v24 }
 0x5ec   :  { %16939 = vmatpush1.bf16.msra.mxu0 %v22524_v7  ;;  %17099 = vmatpush3.bf16.msra.mxu1 %v22525_v43 }
 0x5ed   :  { %16941 = vmatprep.subr.bf16.mxu0 %v22526_v6  ;;  %17100 = vmatprep.subr.bf16.mxu1 %v22348_v24  ;;  %v22530_v6 = vld [vmem:[#allocation36_spill] sm:$0xff] }
 0x5ef   :  { %5246 = vmatmul.mubr.f32.vlgmr.msra.gmra.mrb[6].mxu0 %v20425_v63  ;;  %14682 = vmatmul.mubr.f32.vlgmr.msra.gmra.mrb[44].mxu1 %v20425_v63  ;;  %v22533_v63 = vld [vmem:[#allocation42_spill] sm:$0xff] }
 0x5f0   :  { %16943 = vmatpush1.bf16.msra.mxu0 %v22527_v27  ;;  %17102 = vmatpush3.bf16.msra.mxu1 %v22528_v31  ;;  %v22534_v31 = vld [vmem:[#allocation70_spill] sm:$0xff]  ;;  %v22536_v27 = vld [vmem:[#allocation45_spill] sm:$0xff] }
 0x5f1   :  { %16945 = vmatprep.subr.bf16.mxu0 %v22529_v22  ;;  %17103 = vmatprep.subr.bf16.mxu1 %v22348_v24  ;;  %v22535_v22 = vld [vmem:[#allocation44_spill] sm:$0xff] }
 0x5f2   :  { %5412 = vmatprep.mubr.f32.mxu0 %v22294_v5  ;;  %14716 = vmatprep.mubr.msk.f32.mxu1 %vm18871_vm0, %v22294_v5 }
 0x5f4   :  { %16947 = vmatpush1.bf16.msra.mxu0 %v22530_v6  ;;  %17105 = vmatpush3.bf16.msra.mxu1 %v22531_v1  ;;  %v22539_v1 = vld [vmem:[#allocation48_spill] sm:$0xff]  ;;  %v22541_v6 = vld [vmem:[#allocation49_spill] sm:$0xff] }
 0x5f5   :  { %16949 = vmatprep.subr.bf16.mxu0 %v22532_v50  ;;  %17106 = vmatprep.subr.bf16.mxu1 %v22348_v24  ;;  %v22540_v50 = vld [vmem:[#allocation73_spill] sm:$0xff] }
 0x5f8   :  { %16951 = vmatpush1.bf16.msra.mxu0 %v22533_v63  ;;  %17108 = vmatpush3.bf16.msra.mxu1 %v22534_v31  ;;  %v22542_v31 = vld [vmem:[#allocation50_spill] sm:$0xff]  ;;  %v22544_v63 = vld [vmem:[#allocation51_spill] sm:$0xff] }
 0x5f9   :  { %16953 = vmatprep.subr.bf16.mxu0 %v22535_v22  ;;  %17109 = vmatprep.subr.bf16.mxu1 %v22348_v24  ;;  %v22543_v22 = vld [vmem:[#allocation75_spill] sm:$0xff] }
 0x5fc   :  { %16955 = vmatpush1.bf16.msra.mxu0 %v22536_v27  ;;  %17111 = vmatpush3.bf16.msra.mxu1 %v22537_v23  ;;  %v22545_v23 = vld [vmem:[#allocation52_spill] sm:$0xff]  ;;  %v22547_v27 = vld [vmem:[#allocation54_spill] sm:$0xff] }
 0x5fd   :  { %16957 = vmatprep.subr.bf16.mxu0 %v22538_v60  ;;  %17112 = vmatprep.subr.bf16.mxu1 %v22348_v24  ;;  %v22546_v60 = vld [vmem:[#allocation77_spill] sm:$0xff] }
 0x600   :  { %16959 = vmatpush1.bf16.msra.mxu0 %v22539_v1  ;;  %17114 = vmatpush3.bf16.msra.mxu1 %v22540_v50  ;;  %v22548_v50 = vld [vmem:[#allocation56_spill] sm:$0xff] }
 0x601   :  { %16961 = vmatprep.subr.bf16.mxu0 %v22541_v6  ;;  %17115 = vmatprep.subr.bf16.mxu1 %v22348_v24  ;;  %v22549_v6 = vld [vmem:[#allocation79_spill] sm:$0xff] }
 0x604   :  { %16963 = vmatpush1.bf16.msra.mxu0 %v22542_v31  ;;  %17117 = vmatpush3.bf16.msra.mxu1 %v22543_v22 }
 0x605   :  { %16965 = vmatprep.subr.bf16.mxu0 %v22544_v63  ;;  %17118 = vmatprep.subr.bf16.mxu1 %v22348_v24 }
 0x608   :  { %16967 = vmatpush1.bf16.msra.mxu0 %v22545_v23  ;;  %17120 = vmatpush3.bf16.msra.mxu1 %v22546_v60 }
 0x609   :  { %16969 = vmatprep.subr.bf16.mxu0 %v22547_v27  ;;  %17121 = vmatprep.subr.bf16.mxu1 %v22348_v24 }
 0x60c   :  { %16971 = vmatpush1.bf16.msra.mxu0 %v22548_v50  ;;  %17123 = vmatpush3.bf16.msra.mxu1 %v22549_v6 }
 0x60d   :  { %16973 = vmatprep.subr.bf16.mxu0 %v22408_v17  ;;  %17124 = vmatprep.subr.bf16.mxu1 %v22348_v24 }
 0x60f   :  { %5414 = vmatmul.mubr.f32.vlgmr.msra.gmra.mrb[6].mxu0 %v20418_v41  ;;  %14717 = vmatmul.mubr.f32.vlgmr.msra.gmra.mrb[46].mxu1 %v20418_v41 }
 0x610   :  { %16975 = vmatpush1.bf16.msra.mxu0 %v22409_v36  ;;  %17126 = vmatpush3.bf16.msra.mxu1 %v19586_v29 }
 0x611   :  { %16977 = vmatprep.subr.bf16.mxu0 %v22410_v18  ;;  %17127 = vmatprep.subr.bf16.mxu1 %v22348_v24 }
 0x612   :  { %5516 = vmatprep.mubr.f32.mxu0 %v22294_v5  ;;  %14751 = vmatprep.mubr.msk.f32.mxu1 %vm18871_vm0, %v22294_v5 }
 0x614   :  { %16979 = vmatpush1.bf16.msra.mxu0 %v22411_v9  ;;  %17129 = vmatpush3.bf16.msra.mxu1 %v19607_v16 }
 0x615   :  { %16981 = vmatprep.subr.bf16.mxu0 %v22412_v21  ;;  %17130 = vmatprep.subr.bf16.mxu1 %v22348_v24 }
 0x618   :  { %16983 = vmatpush1.bf16.msra.mxu0 %v22413_v28  ;;  %17132 = vmatpush3.bf16.msra.mxu1 %v19628_v56 }
 0x619   :  { %16985 = vmatprep.subr.bf16.mxu0 %v22414_v26  ;;  %17133 = vmatprep.subr.bf16.mxu1 %v22348_v24 }
 0x61c   :  { %16987 = vmatpush1.bf16.msra.mxu0 %v22415_v42  ;;  %17135 = vmatpush3.bf16.msra.mxu1 %v19646_v25 }
 0x61d   :  { %16989 = vmatprep.subr.bf16.mxu0 %v22416_v44  ;;  %17136 = vmatprep.subr.bf16.mxu1 %v22348_v24 }
 0x620   :  { %16991 = vmatpush1.bf16.msra.mxu0 %v22417_v12  ;;  %17138 = vmatpush3.bf16.msra.mxu1 %v19664_v8 }
 0x621   :  { %16993 = vmatprep.subr.bf16.mxu0 %v22517_v19  ;;  %17139 = vmatprep.subr.bf16.mxu1 %v22348_v24 }
 0x624   :  { %16995 = vmatpush1.bf16.msra.mxu0 %v22518_v62  ;;  %17141 = vmatpush3.bf16.msra.mxu1 %v22519_v52 }
 0x625   :  { %16997 = vmatprep.subr.bf16.mxu0 %v22520_v3  ;;  %17142 = vmatprep.subr.bf16.mxu1 %v22348_v24 }
 0x628   :  { %16999 = vmatpush1.bf16.msra.mxu0 %v22521_v39  ;;  %17144 = vmatpush3.bf16.msra.mxu1 %v22522_v37 }
 0x629   :  { %17001 = vmatprep.subr.bf16.mxu0 %v22523_v47  ;;  %17145 = vmatprep.subr.bf16.mxu1 %v22348_v24 }
 0x62c   :  { %17003 = vmatpush1.bf16.msra.mxu0 %v22524_v7  ;;  %17147 = vmatpush3.bf16.msra.mxu1 %v22525_v43 }
 0x62d   :  { %17149 = vmatprep.subr.bf16.mxu0 %v22408_v17  ;;  %17340 = vmatprep.subr.bf16.mxu1 %v22348_v24 }
 0x62f   :  { %5518 = vmatmul.mubr.f32.vlgmr.msra.gmra.mrb[6].mxu0 %v20418_v41  ;;  %14752 = vmatmul.mubr.f32.vlgmr.msra.gmra.mrb[48].mxu1 %v20418_v41  ;;  %v22550_v41 = vld [vmem:[#allocation32_spill] sm:$0xff] }
 0x630   :  { %17151 = vmatpush1.bf16.msra.mxu0 %v22409_v36  ;;  %17342 = vmatpush3.bf16.msra.mxu1 %v19586_v29 }
 0x631   :  { %17153 = vmatprep.subr.bf16.mxu0 %v22410_v18  ;;  %17343 = vmatprep.subr.bf16.mxu1 %v22348_v24 }
 0x632   :  { %6289 = vmatprep.mubr.f32.mxu0 %v22294_v5  ;;  %14786 = vmatprep.mubr.msk.f32.mxu1 %vm18871_vm0, %v22294_v5 }
 0x634   :  { %17155 = vmatpush1.bf16.msra.mxu0 %v22411_v9  ;;  %17345 = vmatpush3.bf16.msra.mxu1 %v19607_v16 }
 0x635   :  { %17157 = vmatprep.subr.bf16.mxu0 %v22412_v21  ;;  %17346 = vmatprep.subr.bf16.mxu1 %v22348_v24 }
 0x638   :  { %17159 = vmatpush1.bf16.msra.mxu0 %v22413_v28  ;;  %17348 = vmatpush3.bf16.msra.mxu1 %v19628_v56 }
 0x639   :  { %17161 = vmatprep.subr.bf16.mxu0 %v22414_v26  ;;  %17349 = vmatprep.subr.bf16.mxu1 %v22348_v24 }
 0x63c   :  { %17163 = vmatpush1.bf16.msra.mxu0 %v22415_v42  ;;  %17351 = vmatpush3.bf16.msra.mxu1 %v19646_v25 }
 0x63d   :  { %17165 = vmatprep.subr.bf16.mxu0 %v22416_v44  ;;  %17352 = vmatprep.subr.bf16.mxu1 %v22348_v24 }
 0x640   :  { %17167 = vmatpush1.bf16.msra.mxu0 %v22417_v12  ;;  %17354 = vmatpush3.bf16.msra.mxu1 %v19664_v8 }
 0x641   :  { %17169 = vmatprep.subr.bf16.mxu0 %v22517_v19  ;;  %17355 = vmatprep.subr.bf16.mxu1 %v22348_v24 }
 0x644   :  { %17171 = vmatpush1.bf16.msra.mxu0 %v22518_v62  ;;  %17357 = vmatpush3.bf16.msra.mxu1 %v22519_v52 }
 0x645   :  { %17173 = vmatprep.subr.bf16.mxu0 %v22520_v3  ;;  %17358 = vmatprep.subr.bf16.mxu1 %v22348_v24 }
 0x648   :  { %17175 = vmatpush1.bf16.msra.mxu0 %v22521_v39  ;;  %17360 = vmatpush3.bf16.msra.mxu1 %v22522_v37 }
 0x649   :  { %17177 = vmatprep.subr.bf16.mxu0 %v22523_v47  ;;  %17361 = vmatprep.subr.bf16.mxu1 %v22348_v24 }
 0x64c   :  { %17179 = vmatpush1.bf16.msra.mxu0 %v22524_v7  ;;  %17363 = vmatpush3.bf16.msra.mxu1 %v22525_v43 }
 0x64d   :  { %17181 = vmatprep.subr.bf16.mxu0 %v22550_v41  ;;  %17364 = vmatprep.subr.bf16.mxu1 %v22348_v24  ;;  %v12980_v41 = vld [vmem:[%s21947_s0 + $0x12] sm:$0x3f] }
 0x662   :  { %v5611_v6 = vpop.f32.mrb[38].mxu1 }
 0x663   :  { %v14578_v50 = vpop.f32.mrb[39].mxu1 }
 0x682   :  { %v5762_v27 = vpop.f32.mrb[40].mxu1 }
 0x683   :  { %v5763_v60 = vadd.f32 %v5762_v27, %v5611_v6  ;;  %v14613_v23 = vpop.f32.mrb[41].mxu1 }
 0x6a2   :  { %v5866_v63 = vpop.f32.mrb[42].mxu1 }
 0x6a3   :  { %v5867_v22 = vadd.f32 %v5866_v63, %v5763_v60  ;;  %v14648_v31 = vpop.f32.mrb[43].mxu1  ;;  %v6173_v60 = vrot.slane %v12980_v41, 2 }
 0x6c2   :  { %v5955_v1 = vpop.f32.mrb[44].mxu1 }
 0x6c3   :  { %v5956_v47 = vadd.f32 %v5955_v1, %v5867_v22  ;;  %v14683_v37 = vpop.f32.mrb[45].mxu1 }
 0x6e2   :  { %v6074_v39 = vpop.f32.mrb[46].mxu1 }
 0x6e3   :  { %v6075_v3 = vadd.f32 %v6074_v39, %v5956_v47  ;;  %v14718_v7 = vpop.f32.mrb[47].mxu1  ;;  %v6184_v39 = vrot.slane %v12980_v41, 4 }
 0x702   :  { %v5519_v43 = vpop.f32.mrb[6].mxu0  ;;  %v6161_v52 = vpop.f32.mrb[48].mxu1 }
 0x703   :  { %v6165_v62 = vadd.f32 %v12980_v41, %v5519_v43  ;;  %v6162_v50 = vadd.f32 %v6161_v52, %v6075_v3  ;;  %v5521_v19 = vpop.f32.mrb[7].mxu0  ;;  %v14753_v27 = vpop.f32.mrb[49].mxu1 }
 0x704   :  { %v6175_v31 = vadd.f32 %v6173_v60, %v5521_v19  ;;  %v22552_v60 = vld [vmem:[#allocation20_spill] sm:$0xff] }
 0x705   :  { %v12981_v23 = vmul.f32 -1.442695, %v6165_v62  ;;  %v6182_v7 = vadd.f32 %v20411_v33, %v6162_v50 }
 0x706   :  { %v12982_v6 = vmul.f32 -1.442695, %v6175_v31  ;;  %v22553_v31 = vld [vmem:[#allocation81_spill] sm:$0xff] }
 0x707   :  { %18764 = vpow2.f32 %v12981_v23 }
 0x708   :  { %18766 = vpow2.f32 %v12982_v6  ;;  %v22554_v6 = vld [vmem:[#allocation22_spill] sm:$0xff] }
 0x711   :  { %v18765_v1 = vpop.eup %18764 }
 0x712   :  { %v6169_v22 = vadd.f32 1.0, %v18765_v1  ;;  %v18767_v37 = vpop.eup %18766  ;;  %v22555_v1 = vld [vmem:[#allocation29_spill] sm:$0xff] }
 0x713   :  { %v6179_v43 = vadd.f32 1.0, %v18767_v37  ;;  %v22557_v37 = vld [vmem:[#allocation33_spill] sm:$0xff] }
 0x714   :  { %18768 = vrcp.f32 %v6169_v22  ;;  %v22556_v22 = vld [vmem:[#allocation82_spill] sm:$0xff] }
 0x71e   :  { %v18769_v47 = vpop.eup %18768 }
 0x71f   :  { %v6183_v63 = vmul.f32 %v18769_v47, %v6182_v7  ;;  %v22559_v7 = vld [vmem:[#allocation83_spill] sm:$0xff]  ;;  %v22560_v47 = vld [vmem:[#allocation61_spill] sm:$0xff] }
 0x721   :  { %v6186_v8 = vadd.f32 %v6184_v39, %v6183_v63  ;;  %v22558_v39 = vld [vmem:[#allocation60_spill] sm:$0xff]  ;;  %v22561_v63 = vld [vmem:[#allocation62_spill] sm:$0xff] }
 0x723   :  { %18770 = vtanh.f32 %v6186_v8 }
 0x724   :  { %18772 = vrcp.f32 %v6179_v43  ;;  %v22562_v43 = vld [vmem:[#allocation84_spill] sm:$0xff] }
 0x72d   :  { %v18771_v3 = vpop.eup %18770 }
 0x72e   :  { %v6188_v52 = vsub.f32 %v20415_v15, %v18771_v3  ;;  %v18773_v62 = vpop.eup %18772  ;;  %v22551_v15 = vld [vmem:[#allocation59_spill] sm:$0xff] }
 0x730   :  { %v6189_v19 = vmul.f32 %v18773_v62, %v6188_v52  ;;  %v22564_v52 = vld [vmem:[#allocation64_spill] sm:$0xff]  ;;  %v22565_v62 = vld [vmem:[#allocation85_spill] sm:$0xff] }
 0x732   :  { %v20654_v27 = vadd.f32 %v18771_v3, %v6189_v19  ;;  %v22563_v3 = vld [vmem:[#allocation63_spill] sm:$0xff]  ;;  %v22566_v19 = vld [vmem:[#allocation65_spill] sm:$0xff] }
 0x734   :  { %v20657_v23 = vand.u32 4294901760, %v20654_v27 }
 0x736   :  { %v20661_v41 = vsub.f32 %v20654_v27, %v20657_v23 }
 0x738   :  { %v20664_v33 = vand.u32 4294901760, %v20661_v41 }
 0x73a   :  { %v6293_v8 = vsub.f32 %v20661_v41, %v20664_v33 }
 0x73c   :  { %v6294_v50 = vand.u32 4294901760, %v6293_v8  ;;  %v22567_v8 = vld [vmem:[#allocation66_spill] sm:$0xff] }
 0x73e   :  { %6295 = vmatmul.mubr.f32.vlgmr.msra.gmra.mrb[8].mxu0 %v6294_v50  ;;  %14787 = vmatmul.mubr.f32.vlgmr.msra.gmra.mrb[50].mxu1 %v6294_v50  ;;  %v22568_v50 = vld [vmem:[#allocation86_spill] sm:$0xff] }
 0x73f   :  { %17183 = vmatpush1.bf16.msra.mxu0 %v22384_v57  ;;  %17366 = vmatpush3.bf16.msra.mxu1 %v19733_v45 }
 0x740   :  { %17185 = vmatprep.subr.bf16.mxu0 %v22385_v40  ;;  %17367 = vmatprep.subr.bf16.mxu1 %v22348_v24 }
 0x741   :  { %6525 = vmatprep.mubr.f32.mxu0 %v22294_v5  ;;  %14821 = vmatprep.mubr.msk.f32.mxu1 %vm18871_vm0, %v22294_v5 }
 0x743   :  { %17187 = vmatpush1.bf16.msra.mxu0 %v22386_v51  ;;  %17369 = vmatpush3.bf16.msra.mxu1 %v19749_v32 }
 0x744   :  { %17189 = vmatprep.subr.bf16.mxu0 %v22387_v35  ;;  %17370 = vmatprep.subr.bf16.mxu1 %v22348_v24 }
 0x747   :  { %17191 = vmatpush1.bf16.msra.mxu0 %v22388_v14  ;;  %17372 = vmatpush3.bf16.msra.mxu1 %v19755_v54 }
 0x748   :  { %17193 = vmatprep.subr.bf16.mxu0 %v22389_v48  ;;  %17373 = vmatprep.subr.bf16.mxu1 %v22348_v24 }
 0x74b   :  { %17195 = vmatpush1.bf16.msra.mxu0 %v19353_v13  ;;  %17375 = vmatpush3.bf16.msra.mxu1 %v19764_v55 }
 0x74c   :  { %17197 = vmatprep.subr.bf16.mxu0 %v19395_v53  ;;  %17376 = vmatprep.subr.bf16.mxu1 %v22348_v24 }
 0x74f   :  { %17199 = vmatpush1.bf16.msra.mxu0 %v19413_v38  ;;  %17378 = vmatpush3.bf16.msra.mxu1 %v19776_v49 }
 0x750   :  { %17201 = vmatprep.subr.bf16.mxu0 %v19418_v34  ;;  %17379 = vmatprep.subr.bf16.mxu1 %v22348_v24 }
 0x753   :  { %17203 = vmatpush1.bf16.msra.mxu0 %v19448_v0  ;;  %17381 = vmatpush3.bf16.msra.mxu1 %v19782_v4 }
 0x754   :  { %17205 = vmatprep.subr.bf16.mxu0 %v19450_v59  ;;  %17382 = vmatprep.subr.bf16.mxu1 %v22348_v24 }
 0x757   :  { %17207 = vmatpush1.bf16.msra.mxu0 %v19458_v30  ;;  %17384 = vmatpush3.bf16.msra.mxu1 %v19787_v46 }
 0x758   :  { %17209 = vmatprep.subr.bf16.mxu0 %v22390_v10  ;;  %17385 = vmatprep.subr.bf16.mxu1 %v22348_v24 }
 0x75b   :  { %17211 = vmatpush1.bf16.msra.mxu0 %v22391_v61  ;;  %17387 = vmatpush3.bf16.msra.mxu1 %v22441_v58 }
 0x75c   :  { %17213 = vmatprep.subr.bf16.mxu0 %v22442_v11  ;;  %17388 = vmatprep.subr.bf16.mxu1 %v22348_v24 }
 0x75e   :  { %6527 = vmatmul.mubr.f32.vlgmr.msra.gmra.mrb[8].mxu0 %v20657_v23  ;;  %14822 = vmatmul.mubr.f32.vlgmr.msra.gmra.mrb[52].mxu1 %v20657_v23 }
 0x75f   :  { %17215 = vmatpush1.bf16.msra.mxu0 %v22443_v2  ;;  %17390 = vmatpush3.bf16.msra.mxu1 %v22444_v20 }
 0x760   :  { %17217 = vmatprep.subr.bf16.mxu0 %v22551_v15  ;;  %17391 = vmatprep.subr.bf16.mxu1 %v22348_v24 }
 0x761   :  { %6661 = vmatprep.mubr.f32.mxu0 %v22294_v5  ;;  %14856 = vmatprep.mubr.msk.f32.mxu1 %vm18871_vm0, %v22294_v5 }
 0x763   :  { %17219 = vmatpush1.bf16.msra.mxu0 %v22552_v60  ;;  %17393 = vmatpush3.bf16.msra.mxu1 %v22553_v31  ;;  %v22593_v31 = vld [vmem:[#allocation71_spill] sm:$0xff] }
 0x764   :  { %17221 = vmatprep.subr.bf16.mxu0 %v22554_v6  ;;  %17394 = vmatprep.subr.bf16.mxu1 %v22348_v24  ;;  %v22588_v6 = vld [vmem:[#allocation40_spill] sm:$0xff]  ;;  %v22594_v60 = vld [vmem:[#allocation47_spill] sm:$0xff] }
 0x767   :  { %17223 = vmatpush1.bf16.msra.mxu0 %v22555_v1  ;;  %17396 = vmatpush3.bf16.msra.mxu1 %v22556_v22  ;;  %v22585_v22 = vld [vmem:[#allocation35_spill] sm:$0xff]  ;;  %v22587_v1 = vld [vmem:[#allocation21_spill] sm:$0xff] }
 0x768   :  { %17225 = vmatprep.subr.bf16.mxu0 %v22557_v37  ;;  %17397 = vmatprep.subr.bf16.mxu1 %v22348_v24  ;;  %v22584_v37 = vld [vmem:[#allocation69_spill] sm:$0xff] }
 0x76b   :  { %17227 = vmatpush1.bf16.msra.mxu0 %v22558_v39  ;;  %17399 = vmatpush3.bf16.msra.mxu1 %v22559_v7  ;;  %v22582_v7 = vld [vmem:[#allocation30_spill] sm:$0xff]  ;;  %v22583_v39 = vld [vmem:[#allocation31_spill] sm:$0xff] }
 0x76c   :  { %17229 = vmatprep.subr.bf16.mxu0 %v22560_v47  ;;  %17400 = vmatprep.subr.bf16.mxu1 %v22348_v24  ;;  %v22569_v47 = vld [vmem:[#allocation67_spill] sm:$0xff] }
 0x76f   :  { %17231 = vmatpush1.bf16.msra.mxu0 %v22561_v63  ;;  %17402 = vmatpush3.bf16.msra.mxu1 %v22562_v43  ;;  %v22570_v43 = vld [vmem:[#allocation68_spill] sm:$0xff]  ;;  %v22581_v63 = vld [vmem:[#allocation78_spill] sm:$0xff] }
 0x770   :  { %17233 = vmatprep.subr.bf16.mxu0 %v22563_v3  ;;  %17403 = vmatprep.subr.bf16.mxu1 %v22348_v24  ;;  %v22571_v3 = vld [vmem:[#allocation87_spill] sm:$0xff] }
 0x773   :  { %17235 = vmatpush1.bf16.msra.mxu0 %v22564_v52  ;;  %17405 = vmatpush3.bf16.msra.mxu1 %v22565_v62  ;;  %v22579_v62 = vld [vmem:[#allocation27_spill] sm:$0xff]  ;;  %v22580_v52 = vld [vmem:[#allocation28_spill] sm:$0xff] }
 0x774   :  { %17237 = vmatprep.subr.bf16.mxu0 %v22566_v19  ;;  %17406 = vmatprep.subr.bf16.mxu1 %v22348_v24  ;;  %v22578_v19 = vld [vmem:[#allocation76_spill] sm:$0xff] }
 0x777   :  { %17239 = vmatpush1.bf16.msra.mxu0 %v22567_v8  ;;  %17408 = vmatpush3.bf16.msra.mxu1 %v22568_v50  ;;  %v22576_v50 = vld [vmem:[#allocation24_spill] sm:$0xff]  ;;  %v22577_v8 = vld [vmem:[#allocation25_spill] sm:$0xff] }
 0x778   :  { %17241 = vmatprep.subr.bf16.mxu0 %v22569_v47  ;;  %17409 = vmatprep.subr.bf16.mxu1 %v22348_v24  ;;  %v22575_v47 = vld [vmem:[#allocation74_spill] sm:$0xff] }
 0x77b   :  { %17243 = vmatpush1.bf16.msra.mxu0 %v22570_v43  ;;  %17411 = vmatpush3.bf16.msra.mxu1 %v22571_v3  ;;  %v22573_v3 = vld [vmem:[#allocation19_spill] sm:$0xff] }
 0x77c   :  { %17245 = vmatprep.subr.bf16.mxu0 %v22408_v17  ;;  %17412 = vmatprep.subr.bf16.mxu1 %v22348_v24  ;;  %v22574_v43 = vld [vmem:[#allocation23_spill] sm:$0xff] }
 0x77e   :  { %6664 = vmatmul.mubr.f32.vlgmr.msra.gmra.mrb[8].mxu0 %v20661_v41  ;;  %14857 = vmatmul.mubr.f32.vlgmr.msra.gmra.mrb[54].mxu1 %v20661_v41  ;;  %v22572_v41 = vld [vmem:[#allocation72_spill] sm:$0xff] }
 0x77f   :  { %17247 = vmatpush1.bf16.msra.mxu0 %v22409_v36  ;;  %17414 = vmatpush3.bf16.msra.mxu1 %v19586_v29 }
 0x780   :  { %17249 = vmatprep.subr.bf16.mxu0 %v22410_v18  ;;  %17415 = vmatprep.subr.bf16.mxu1 %v22348_v24 }
 0x781   :  { %6766 = vmatprep.mubr.f32.mxu0 %v22294_v5  ;;  %14891 = vmatprep.mubr.msk.f32.mxu1 %vm18871_vm0, %v22294_v5 }
 0x783   :  { %17251 = vmatpush1.bf16.msra.mxu0 %v22411_v9  ;;  %17417 = vmatpush3.bf16.msra.mxu1 %v19607_v16 }
 0x784   :  { %17253 = vmatprep.subr.bf16.mxu0 %v22412_v21  ;;  %17418 = vmatprep.subr.bf16.mxu1 %v22348_v24 }
 0x787   :  { %17255 = vmatpush1.bf16.msra.mxu0 %v22413_v28  ;;  %17420 = vmatpush3.bf16.msra.mxu1 %v19628_v56 }
 0x788   :  { %17257 = vmatprep.subr.bf16.mxu0 %v22414_v26  ;;  %17421 = vmatprep.subr.bf16.mxu1 %v22348_v24 }
 0x78b   :  { %17259 = vmatpush1.bf16.msra.mxu0 %v22415_v42  ;;  %17423 = vmatpush3.bf16.msra.mxu1 %v19646_v25 }
 0x78c   :  { %17261 = vmatprep.subr.bf16.mxu0 %v22416_v44  ;;  %17424 = vmatprep.subr.bf16.mxu1 %v22348_v24 }
 0x78f   :  { %17263 = vmatpush1.bf16.msra.mxu0 %v22417_v12  ;;  %17426 = vmatpush3.bf16.msra.mxu1 %v22572_v41 }
 0x790   :  { %17265 = vmatprep.subr.bf16.mxu0 %v22573_v3  ;;  %17427 = vmatprep.subr.bf16.mxu1 %v22348_v24 }
 0x793   :  { %17267 = vmatpush1.bf16.msra.mxu0 %v22574_v43  ;;  %17429 = vmatpush3.bf16.msra.mxu1 %v22575_v47 }
 0x794   :  { %17269 = vmatprep.subr.bf16.mxu0 %v22576_v50  ;;  %17430 = vmatprep.subr.bf16.mxu1 %v22348_v24 }
 0x797   :  { %17271 = vmatpush1.bf16.msra.mxu0 %v22577_v8  ;;  %17432 = vmatpush3.bf16.msra.mxu1 %v22578_v19 }
 0x798   :  { %17273 = vmatprep.subr.bf16.mxu0 %v22579_v62  ;;  %17433 = vmatprep.subr.bf16.mxu1 %v22348_v24 }
 0x79b   :  { %17275 = vmatpush1.bf16.msra.mxu0 %v22580_v52  ;;  %17435 = vmatpush3.bf16.msra.mxu1 %v22581_v63 }
 0x79c   :  { %17277 = vmatprep.subr.bf16.mxu0 %v22582_v7  ;;  %17436 = vmatprep.subr.bf16.mxu1 %v22348_v24  ;;  %v22586_v7 = vld [vmem:[#allocation36_spill] sm:$0xff] }
 0x79e   :  { %6770 = vmatmul.mubr.f32.vlgmr.msra.gmra.mrb[8].mxu0 %v20664_v33  ;;  %14892 = vmatmul.mubr.f32.vlgmr.msra.gmra.mrb[56].mxu1 %v20664_v33  ;;  %v22589_v33 = vld [vmem:[#allocation42_spill] sm:$0xff] }
 0x79f   :  { %17279 = vmatpush1.bf16.msra.mxu0 %v22583_v39  ;;  %17438 = vmatpush3.bf16.msra.mxu1 %v22584_v37  ;;  %v22590_v37 = vld [vmem:[#allocation70_spill] sm:$0xff]  ;;  %v22592_v39 = vld [vmem:[#allocation45_spill] sm:$0xff] }
 0x7a0   :  { %17281 = vmatprep.subr.bf16.mxu0 %v22585_v22  ;;  %17439 = vmatprep.subr.bf16.mxu1 %v22348_v24  ;;  %v22591_v22 = vld [vmem:[#allocation44_spill] sm:$0xff] }
 0x7a1   :  { %6936 = vmatprep.mubr.f32.mxu0 %v22294_v5  ;;  %14926 = vmatprep.mubr.msk.f32.mxu1 %vm18871_vm0, %v22294_v5 }
 0x7a3   :  { %17283 = vmatpush1.bf16.msra.mxu0 %v22586_v7  ;;  %17441 = vmatpush3.bf16.msra.mxu1 %v22587_v1  ;;  %v22595_v1 = vld [vmem:[#allocation48_spill] sm:$0xff]  ;;  %v22597_v7 = vld [vmem:[#allocation49_spill] sm:$0xff] }
 0x7a4   :  { %17285 = vmatprep.subr.bf16.mxu0 %v22588_v6  ;;  %17442 = vmatprep.subr.bf16.mxu1 %v22348_v24  ;;  %v22596_v6 = vld [vmem:[#allocation73_spill] sm:$0xff] }
 0x7a7   :  { %17287 = vmatpush1.bf16.msra.mxu0 %v22589_v33  ;;  %17444 = vmatpush3.bf16.msra.mxu1 %v22590_v37  ;;  %v22598_v37 = vld [vmem:[#allocation50_spill] sm:$0xff]  ;;  %v22600_v33 = vld [vmem:[#allocation51_spill] sm:$0xff] }
 0x7a8   :  { %17289 = vmatprep.subr.bf16.mxu0 %v22591_v22  ;;  %17445 = vmatprep.subr.bf16.mxu1 %v22348_v24  ;;  %v22599_v22 = vld [vmem:[#allocation75_spill] sm:$0xff] }
 0x7ab   :  { %17291 = vmatpush1.bf16.msra.mxu0 %v22592_v39  ;;  %17447 = vmatpush3.bf16.msra.mxu1 %v22593_v31  ;;  %v22601_v31 = vld [vmem:[#allocation52_spill] sm:$0xff]  ;;  %v22603_v39 = vld [vmem:[#allocation54_spill] sm:$0xff] }
 0x7ac   :  { %17293 = vmatprep.subr.bf16.mxu0 %v22594_v60  ;;  %17448 = vmatprep.subr.bf16.mxu1 %v22348_v24  ;;  %v22602_v60 = vld [vmem:[#allocation77_spill] sm:$0xff] }
 0x7af   :  { %17295 = vmatpush1.bf16.msra.mxu0 %v22595_v1  ;;  %17450 = vmatpush3.bf16.msra.mxu1 %v22596_v6  ;;  %v22604_v6 = vld [vmem:[#allocation56_spill] sm:$0xff] }
 0x7b0   :  { %17297 = vmatprep.subr.bf16.mxu0 %v22597_v7  ;;  %17451 = vmatprep.subr.bf16.mxu1 %v22348_v24  ;;  %v22605_v7 = vld [vmem:[#allocation79_spill] sm:$0xff] }
 0x7b3   :  { %17299 = vmatpush1.bf16.msra.mxu0 %v22598_v37  ;;  %17453 = vmatpush3.bf16.msra.mxu1 %v22599_v22 }
 0x7b4   :  { %17301 = vmatprep.subr.bf16.mxu0 %v22600_v33  ;;  %17454 = vmatprep.subr.bf16.mxu1 %v22348_v24 }
 0x7b7   :  { %17303 = vmatpush1.bf16.msra.mxu0 %v22601_v31  ;;  %17456 = vmatpush3.bf16.msra.mxu1 %v22602_v60 }
 0x7b8   :  { %17305 = vmatprep.subr.bf16.mxu0 %v22603_v39  ;;  %17457 = vmatprep.subr.bf16.mxu1 %v22348_v24 }
 0x7bb   :  { %17307 = vmatpush1.bf16.msra.mxu0 %v22604_v6  ;;  %17459 = vmatpush3.bf16.msra.mxu1 %v22605_v7 }
 0x7bc   :  { %17309 = vmatprep.subr.bf16.mxu0 %v22408_v17  ;;  %17460 = vmatprep.subr.bf16.mxu1 %v22348_v24 }
 0x7be   :  { %6938 = vmatmul.mubr.f32.vlgmr.msra.gmra.mrb[8].mxu0 %v20657_v23  ;;  %14927 = vmatmul.mubr.f32.vlgmr.msra.gmra.mrb[58].mxu1 %v20657_v23 }
 0x7bf   :  { %17311 = vmatpush1.bf16.msra.mxu0 %v22409_v36  ;;  %17462 = vmatpush3.bf16.msra.mxu1 %v19586_v29 }
 0x7c0   :  { %17313 = vmatprep.subr.bf16.mxu0 %v22410_v18  ;;  %17463 = vmatprep.subr.bf16.mxu1 %v22348_v24 }
 0x7c1   :  { %7040 = vmatprep.mubr.f32.mxu0 %v22294_v5  ;;  %14961 = vmatprep.mubr.msk.f32.mxu1 %vm18871_vm0, %v22294_v5 }
 0x7c3   :  { %17315 = vmatpush1.bf16.msra.mxu0 %v22411_v9  ;;  %17465 = vmatpush3.bf16.msra.mxu1 %v19607_v16 }
 0x7c4   :  { %17317 = vmatprep.subr.bf16.mxu0 %v22412_v21  ;;  %17466 = vmatprep.subr.bf16.mxu1 %v22348_v24 }
 0x7c7   :  { %17319 = vmatpush1.bf16.msra.mxu0 %v22413_v28  ;;  %17468 = vmatpush3.bf16.msra.mxu1 %v19628_v56 }
 0x7c8   :  { %17321 = vmatprep.subr.bf16.mxu0 %v22414_v26  ;;  %17469 = vmatprep.subr.bf16.mxu1 %v22348_v24 }
 0x7cb   :  { %17323 = vmatpush1.bf16.msra.mxu0 %v22415_v42  ;;  %17471 = vmatpush3.bf16.msra.mxu1 %v19646_v25 }
 0x7cc   :  { %17325 = vmatprep.subr.bf16.mxu0 %v22416_v44  ;;  %17472 = vmatprep.subr.bf16.mxu1 %v22348_v24 }
 0x7cf   :  { %17327 = vmatpush1.bf16.msra.mxu0 %v22417_v12  ;;  %17474 = vmatpush3.bf16.msra.mxu1 %v22572_v41 }
 0x7d0   :  { %17329 = vmatprep.subr.bf16.mxu0 %v22573_v3  ;;  %17475 = vmatprep.subr.bf16.mxu1 %v22348_v24 }
 0x7d3   :  { %17331 = vmatpush1.bf16.msra.mxu0 %v22574_v43  ;;  %17477 = vmatpush3.bf16.msra.mxu1 %v22575_v47 }
 0x7d4   :  { %17333 = vmatprep.subr.bf16.mxu0 %v22576_v50  ;;  %17478 = vmatprep.subr.bf16.mxu1 %v22348_v24 }
 0x7d7   :  { %17335 = vmatpush1.bf16.msra.mxu0 %v22577_v8  ;;  %17480 = vmatpush3.bf16.msra.mxu1 %v22578_v19 }
 0x7d8   :  { %17337 = vmatprep.subr.bf16.mxu0 %v22579_v62  ;;  %17481 = vmatprep.subr.bf16.mxu1 %v22348_v24 }
 0x7db   :  { %17339 = vmatpush1.bf16.msra.mxu0 %v22580_v52  ;;  %17483 = vmatpush3.bf16.msra.mxu1 %v22581_v63 }
 0x7dc   :  { %17485 = vmatprep.subr.bf16.mxu0 %v22408_v17  ;;  %17676 = vmatprep.subr.bf16.mxu1 %v22348_v24 }
 0x7de   :  { %7042 = vmatmul.mubr.f32.vlgmr.msra.gmra.mrb[8].mxu0 %v20657_v23  ;;  %14962 = vmatmul.mubr.f32.vlgmr.msra.gmra.mrb[60].mxu1 %v20657_v23  ;;  %v22606_v23 = vld [vmem:[#allocation32_spill] sm:$0xff] }
 0x7df   :  { %17487 = vmatpush1.bf16.msra.mxu0 %v22409_v36  ;;  %17678 = vmatpush3.bf16.msra.mxu1 %v19586_v29 }
 0x7e0   :  { %17489 = vmatprep.subr.bf16.mxu0 %v22410_v18  ;;  %17679 = vmatprep.subr.bf16.mxu1 %v22348_v24 }
 0x7e1   :  { %7813 = vmatprep.mubr.f32.mxu0 %v22294_v5  ;;  %14996 = vmatprep.mubr.msk.f32.mxu1 %vm18871_vm0, %v22294_v5 }
 0x7e3   :  { %17491 = vmatpush1.bf16.msra.mxu0 %v22411_v9  ;;  %17681 = vmatpush3.bf16.msra.mxu1 %v19607_v16 }
 0x7e4   :  { %17493 = vmatprep.subr.bf16.mxu0 %v22412_v21  ;;  %17682 = vmatprep.subr.bf16.mxu1 %v22348_v24 }
 0x7e7   :  { %17495 = vmatpush1.bf16.msra.mxu0 %v22413_v28  ;;  %17684 = vmatpush3.bf16.msra.mxu1 %v19628_v56 }
 0x7e8   :  { %17497 = vmatprep.subr.bf16.mxu0 %v22414_v26  ;;  %17685 = vmatprep.subr.bf16.mxu1 %v22348_v24 }
 0x7eb   :  { %17499 = vmatpush1.bf16.msra.mxu0 %v22415_v42  ;;  %17687 = vmatpush3.bf16.msra.mxu1 %v19646_v25 }
 0x7ec   :  { %17501 = vmatprep.subr.bf16.mxu0 %v22416_v44  ;;  %17688 = vmatprep.subr.bf16.mxu1 %v22348_v24 }
 0x7ef   :  { %17503 = vmatpush1.bf16.msra.mxu0 %v22417_v12  ;;  %17690 = vmatpush3.bf16.msra.mxu1 %v22572_v41 }
 0x7f0   :  { %17505 = vmatprep.subr.bf16.mxu0 %v22573_v3  ;;  %17691 = vmatprep.subr.bf16.mxu1 %v22348_v24 }
 0x7f3   :  { %17507 = vmatpush1.bf16.msra.mxu0 %v22574_v43  ;;  %17693 = vmatpush3.bf16.msra.mxu1 %v22575_v47 }
 0x7f4   :  { %17509 = vmatprep.subr.bf16.mxu0 %v22576_v50  ;;  %17694 = vmatprep.subr.bf16.mxu1 %v22348_v24 }
 0x7f7   :  { %17511 = vmatpush1.bf16.msra.mxu0 %v22577_v8  ;;  %17696 = vmatpush3.bf16.msra.mxu1 %v22578_v19 }
 0x7f8   :  { %17513 = vmatprep.subr.bf16.mxu0 %v22579_v62  ;;  %17697 = vmatprep.subr.bf16.mxu1 %v22348_v24 }
 0x7fb   :  { %17515 = vmatpush1.bf16.msra.mxu0 %v22580_v52  ;;  %17699 = vmatpush3.bf16.msra.mxu1 %v22581_v63 }
 0x7fc   :  { %17517 = vmatprep.subr.bf16.mxu0 %v22606_v23  ;;  %17700 = vmatprep.subr.bf16.mxu1 %v22348_v24  ;;  %v12983_v23 = vld [vmem:[%s21947_s0 + $0x18] sm:$0x3f] }
 0x811   :  { %v7135_v7 = vpop.f32.mrb[50].mxu1 }
 0x812   :  { %v14788_v6 = vpop.f32.mrb[51].mxu1 }
 0x831   :  { %v7286_v39 = vpop.f32.mrb[52].mxu1 }
 0x832   :  { %v7287_v60 = vadd.f32 %v7286_v39, %v7135_v7  ;;  %v14823_v31 = vpop.f32.mrb[53].mxu1 }
 0x851   :  { %v7390_v33 = vpop.f32.mrb[54].mxu1 }
 0x852   :  { %v7391_v22 = vadd.f32 %v7390_v33, %v7287_v60  ;;  %v14858_v37 = vpop.f32.mrb[55].mxu1  ;;  %v7697_v60 = vrot.slane %v12983_v23, 2 }
 0x871   :  { %v7479_v1 = vpop.f32.mrb[56].mxu1 }
 0x872   :  { %v7480_v62 = vadd.f32 %v7479_v1, %v7391_v22  ;;  %v14893_v19 = vpop.f32.mrb[57].mxu1 }
 0x873   :  { %v20894_v19 = vld [vmem:[%s21949_s2] ss:$0 sm:$0xff] }
 0x891   :  { %v7598_v8 = vpop.f32.mrb[58].mxu1 }
 0x892   :  { %v7599_v50 = vadd.f32 %v7598_v8, %v7480_v62  ;;  %v14928_v52 = vpop.f32.mrb[59].mxu1  ;;  %v7708_v62 = vrot.slane %v12983_v23, 4 }
 0x8b1   :  { %v7043_v63 = vpop.f32.mrb[8].mxu0  ;;  %v7685_v47 = vpop.f32.mrb[60].mxu1 }
 0x8b2   :  { %v7689_v43 = vadd.f32 %v12983_v23, %v7043_v63  ;;  %v7686_v6 = vadd.f32 %v7685_v47, %v7599_v50  ;;  %v7045_v3 = vpop.f32.mrb[9].mxu0  ;;  %v14963_v39 = vpop.f32.mrb[61].mxu1 }
 0x8b3   :  { %v7699_v37 = vadd.f32 %v7697_v60, %v7045_v3 }
 0x8b4   :  { %v12984_v31 = vmul.f32 -1.442695, %v7689_v43  ;;  %v7706_v47 = vadd.f32 %v20894_v19, %v7686_v6 }
 0x8b5   :  { %v12985_v7 = vmul.f32 -1.442695, %v7699_v37 }
 0x8b6   :  { %18774 = vpow2.f32 %v12984_v31 }
 0x8b7   :  { %18776 = vpow2.f32 %v12985_v7 }
 0x8c0   :  { %v18775_v1 = vpop.eup %18774 }
 0x8c1   :  { %v7693_v22 = vadd.f32 1.0, %v18775_v1  ;;  %v18777_v52 = vpop.eup %18776 }
 0x8c2   :  { %v7703_v50 = vadd.f32 1.0, %v18777_v52  ;;  %v22609_v52 = vld [vmem:[#allocation22_spill] sm:$0xff] }
 0x8c3   :  { %18778 = vrcp.f32 %v7693_v22  ;;  %v22608_v22 = vld [vmem:[#allocation81_spill] sm:$0xff] }
 0x8cd   :  { %v18779_v63 = vpop.eup %18778 }
 0x8ce   :  { %v7707_v8 = vmul.f32 %v18779_v63, %v7706_v47  ;;  %v22611_v47 = vld [vmem:[#allocation82_spill] sm:$0xff]  ;;  %v22612_v63 = vld [vmem:[#allocation33_spill] sm:$0xff] }
 0x8d0   :  { %v7710_v43 = vadd.f32 %v7708_v62, %v7707_v8  ;;  %v22610_v62 = vld [vmem:[#allocation29_spill] sm:$0xff]  ;;  %v22613_v8 = vld [vmem:[#allocation60_spill] sm:$0xff] }
 0x8d2   :  { %18780 = vtanh.f32 %v7710_v43  ;;  %v22614_v43 = vld [vmem:[#allocation83_spill] sm:$0xff] }
 0x8d3   :  { %18782 = vrcp.f32 %v7703_v50  ;;  %v22615_v50 = vld [vmem:[#allocation61_spill] sm:$0xff] }
 0x8dc   :  { %v18781_v3 = vpop.eup %18780 }
 0x8dd   :  { %v7712_v33 = vsub.f32 %v20654_v27, %v18781_v3  ;;  %v18783_v39 = vpop.eup %18782  ;;  %v22607_v27 = vld [vmem:[#allocation20_spill] sm:$0xff] }
 0x8df   :  { %v7713_v31 = vmul.f32 %v18783_v39, %v7712_v33  ;;  %v22617_v33 = vld [vmem:[#allocation84_spill] sm:$0xff]  ;;  %v22618_v39 = vld [vmem:[#allocation63_spill] sm:$0xff] }
 0x8e1   :  { %v20898_v60 = vadd.f32 %v18781_v3, %v7713_v31  ;;  %v22616_v3 = vld [vmem:[#allocation62_spill] sm:$0xff]  ;;  %v22619_v31 = vld [vmem:[#allocation64_spill] sm:$0xff] }
 0x8e3   :  { %v20901_v23 = vand.u32 4294901760, %v20898_v60 }
 0x8e5   :  { %v20905_v37 = vsub.f32 %v20898_v60, %v20901_v23 }
 0x8e7   :  { %v20908_v6 = vand.u32 4294901760, %v20905_v37 }
 0x8e9   :  { %v7817_v7 = vsub.f32 %v20905_v37, %v20908_v6 }
 0x8eb   :  { %v7818_v1 = vand.u32 4294901760, %v7817_v7  ;;  %v22620_v7 = vld [vmem:[#allocation85_spill] sm:$0xff] }
 0x8ed   :  { %7819 = vmatmul.mubr.f32.vlgmr.msra.gmra.mrb[10].mxu0 %v7818_v1  ;;  %14997 = vmatmul.mubr.f32.vlgmr.msra.gmra.mrb[62].mxu1 %v7818_v1  ;;  %v22621_v1 = vld [vmem:[#allocation65_spill] sm:$0xff] }
 0x8ee   :  { %17519 = vmatpush1.bf16.msra.mxu0 %v22384_v57  ;;  %17702 = vmatpush3.bf16.msra.mxu1 %v19733_v45 }
 0x8ef   :  { %17521 = vmatprep.subr.bf16.mxu0 %v22385_v40  ;;  %17703 = vmatprep.subr.bf16.mxu1 %v22348_v24 }
 0x8f0   :  { %8049 = vmatprep.mubr.f32.mxu0 %v22294_v5  ;;  %15031 = vmatprep.mubr.msk.f32.mxu1 %vm18871_vm0, %v22294_v5 }
 0x8f2   :  { %17523 = vmatpush1.bf16.msra.mxu0 %v22386_v51  ;;  %17705 = vmatpush3.bf16.msra.mxu1 %v19749_v32 }
 0x8f3   :  { %17525 = vmatprep.subr.bf16.mxu0 %v22387_v35  ;;  %17706 = vmatprep.subr.bf16.mxu1 %v22348_v24 }
 0x8f6   :  { %17527 = vmatpush1.bf16.msra.mxu0 %v22388_v14  ;;  %17708 = vmatpush3.bf16.msra.mxu1 %v19755_v54 }
 0x8f7   :  { %17529 = vmatprep.subr.bf16.mxu0 %v22389_v48  ;;  %17709 = vmatprep.subr.bf16.mxu1 %v22348_v24 }
 0x8fa   :  { %17531 = vmatpush1.bf16.msra.mxu0 %v19353_v13  ;;  %17711 = vmatpush3.bf16.msra.mxu1 %v19764_v55 }
 0x8fb   :  { %17533 = vmatprep.subr.bf16.mxu0 %v19395_v53  ;;  %17712 = vmatprep.subr.bf16.mxu1 %v22348_v24 }
 0x8fe   :  { %17535 = vmatpush1.bf16.msra.mxu0 %v19413_v38  ;;  %17714 = vmatpush3.bf16.msra.mxu1 %v19776_v49 }
 0x8ff   :  { %17537 = vmatprep.subr.bf16.mxu0 %v19418_v34  ;;  %17715 = vmatprep.subr.bf16.mxu1 %v22348_v24 }
 0x902   :  { %17539 = vmatpush1.bf16.msra.mxu0 %v19448_v0  ;;  %17717 = vmatpush3.bf16.msra.mxu1 %v19782_v4 }
 0x903   :  { %17541 = vmatprep.subr.bf16.mxu0 %v19450_v59  ;;  %17718 = vmatprep.subr.bf16.mxu1 %v22348_v24 }
 0x906   :  { %17543 = vmatpush1.bf16.msra.mxu0 %v19458_v30  ;;  %17720 = vmatpush3.bf16.msra.mxu1 %v19787_v46 }
 0x907   :  { %17545 = vmatprep.subr.bf16.mxu0 %v22390_v10  ;;  %17721 = vmatprep.subr.bf16.mxu1 %v22348_v24 }
 0x90a   :  { %17547 = vmatpush1.bf16.msra.mxu0 %v22391_v61  ;;  %17723 = vmatpush3.bf16.msra.mxu1 %v22441_v58 }
 0x90b   :  { %17549 = vmatprep.subr.bf16.mxu0 %v22442_v11  ;;  %17724 = vmatprep.subr.bf16.mxu1 %v22348_v24 }
 0x90d   :  { %8051 = vmatmul.mubr.f32.vlgmr.msra.gmra.mrb[10].mxu0 %v20901_v23  ;;  %15032 = vmatmul.mubr.f32.vlgmr.msra.gmra.mrb[64].mxu1 %v20901_v23 }
 0x90e   :  { %17551 = vmatpush1.bf16.msra.mxu0 %v22443_v2  ;;  %17726 = vmatpush3.bf16.msra.mxu1 %v22444_v20 }
 0x90f   :  { %17553 = vmatprep.subr.bf16.mxu0 %v22551_v15  ;;  %17727 = vmatprep.subr.bf16.mxu1 %v22348_v24  ;;  %v22648_v15 = vld [vmem:[#allocation47_spill] sm:$0xff] }
 0x910   :  { %8185 = vmatprep.mubr.f32.mxu0 %v22294_v5  ;;  %15066 = vmatprep.mubr.msk.f32.mxu1 %vm18871_vm0, %v22294_v5 }
 0x912   :  { %17555 = vmatpush1.bf16.msra.mxu0 %v22607_v27  ;;  %17729 = vmatpush3.bf16.msra.mxu1 %v22608_v22  ;;  %v22642_v22 = vld [vmem:[#allocation40_spill] sm:$0xff]  ;;  %v22647_v27 = vld [vmem:[#allocation71_spill] sm:$0xff] }
 0x913   :  { %17557 = vmatprep.subr.bf16.mxu0 %v22609_v52  ;;  %17730 = vmatprep.subr.bf16.mxu1 %v22348_v24  ;;  %v22641_v52 = vld [vmem:[#allocation21_spill] sm:$0xff] }
 0x916   :  { %17559 = vmatpush1.bf16.msra.mxu0 %v22610_v62  ;;  %17732 = vmatpush3.bf16.msra.mxu1 %v22611_v47  ;;  %v22638_v47 = vld [vmem:[#allocation69_spill] sm:$0xff]  ;;  %v22639_v62 = vld [vmem:[#allocation35_spill] sm:$0xff] }
 0x917   :  { %17561 = vmatprep.subr.bf16.mxu0 %v22612_v63  ;;  %17733 = vmatprep.subr.bf16.mxu1 %v22348_v24  ;;  %v22637_v63 = vld [vmem:[#allocation31_spill] sm:$0xff] }
 0x91a   :  { %17563 = vmatpush1.bf16.msra.mxu0 %v22613_v8  ;;  %17735 = vmatpush3.bf16.msra.mxu1 %v22614_v43  ;;  %v22622_v43 = vld [vmem:[#allocation66_spill] sm:$0xff]  ;;  %v22624_v8 = vld [vmem:[#allocation67_spill] sm:$0xff] }
 0x91b   :  { %17565 = vmatprep.subr.bf16.mxu0 %v22615_v50  ;;  %17736 = vmatprep.subr.bf16.mxu1 %v22348_v24  ;;  %v22623_v50 = vld [vmem:[#allocation86_spill] sm:$0xff] }
 0x91e   :  { %17567 = vmatpush1.bf16.msra.mxu0 %v22616_v3  ;;  %17738 = vmatpush3.bf16.msra.mxu1 %v22617_v33  ;;  %v22625_v33 = vld [vmem:[#allocation68_spill] sm:$0xff]  ;;  %v22636_v3 = vld [vmem:[#allocation30_spill] sm:$0xff] }
 0x91f   :  { %17569 = vmatprep.subr.bf16.mxu0 %v22618_v39  ;;  %17739 = vmatprep.subr.bf16.mxu1 %v22348_v24  ;;  %v22626_v39 = vld [vmem:[#allocation87_spill] sm:$0xff] }
 0x922   :  { %17571 = vmatpush1.bf16.msra.mxu0 %v22619_v31  ;;  %17741 = vmatpush3.bf16.msra.mxu1 %v22620_v7  ;;  %v22634_v7 = vld [vmem:[#allocation28_spill] sm:$0xff]  ;;  %v22635_v31 = vld [vmem:[#allocation78_spill] sm:$0xff] }
 0x923   :  { %17573 = vmatprep.subr.bf16.mxu0 %v22621_v1  ;;  %17742 = vmatprep.subr.bf16.mxu1 %v22348_v24  ;;  %v22633_v1 = vld [vmem:[#allocation27_spill] sm:$0xff] }
 0x926   :  { %17575 = vmatpush1.bf16.msra.mxu0 %v22622_v43  ;;  %17744 = vmatpush3.bf16.msra.mxu1 %v22623_v50  ;;  %v22631_v50 = vld [vmem:[#allocation25_spill] sm:$0xff]  ;;  %v22632_v43 = vld [vmem:[#allocation76_spill] sm:$0xff] }
 0x927   :  { %17577 = vmatprep.subr.bf16.mxu0 %v22624_v8  ;;  %17745 = vmatprep.subr.bf16.mxu1 %v22348_v24  ;;  %v22630_v8 = vld [vmem:[#allocation24_spill] sm:$0xff] }
 0x92a   :  { %17579 = vmatpush1.bf16.msra.mxu0 %v22625_v33  ;;  %17747 = vmatpush3.bf16.msra.mxu1 %v22626_v39  ;;  %v22628_v39 = vld [vmem:[#allocation23_spill] sm:$0xff]  ;;  %v22629_v33 = vld [vmem:[#allocation74_spill] sm:$0xff] }
 0x92b   :  { %17581 = vmatprep.subr.bf16.mxu0 %v22408_v17  ;;  %17748 = vmatprep.subr.bf16.mxu1 %v22348_v24 }
 0x92d   :  { %8188 = vmatmul.mubr.f32.vlgmr.msra.gmra.mrb[10].mxu0 %v20905_v37  ;;  %15067 = vmatmul.mubr.f32.vlgmr.msra.gmra.mrb[66].mxu1 %v20905_v37  ;;  %v22627_v37 = vld [vmem:[#allocation19_spill] sm:$0xff] }
 0x92e   :  { %17583 = vmatpush1.bf16.msra.mxu0 %v22409_v36  ;;  %17750 = vmatpush3.bf16.msra.mxu1 %v19586_v29 }
 0x92f   :  { %17585 = vmatprep.subr.bf16.mxu0 %v22410_v18  ;;  %17751 = vmatprep.subr.bf16.mxu1 %v22348_v24 }
 0x930   :  { %8290 = vmatprep.mubr.f32.mxu0 %v22294_v5  ;;  %15101 = vmatprep.mubr.msk.f32.mxu1 %vm18871_vm0, %v22294_v5 }
 0x932   :  { %17587 = vmatpush1.bf16.msra.mxu0 %v22411_v9  ;;  %17753 = vmatpush3.bf16.msra.mxu1 %v19607_v16 }
 0x933   :  { %17589 = vmatprep.subr.bf16.mxu0 %v22412_v21  ;;  %17754 = vmatprep.subr.bf16.mxu1 %v22348_v24 }
 0x936   :  { %17591 = vmatpush1.bf16.msra.mxu0 %v22413_v28  ;;  %17756 = vmatpush3.bf16.msra.mxu1 %v19628_v56 }
 0x937   :  { %17593 = vmatprep.subr.bf16.mxu0 %v22414_v26  ;;  %17757 = vmatprep.subr.bf16.mxu1 %v22348_v24 }
 0x93a   :  { %17595 = vmatpush1.bf16.msra.mxu0 %v22415_v42  ;;  %17759 = vmatpush3.bf16.msra.mxu1 %v19646_v25 }
 0x93b   :  { %17597 = vmatprep.subr.bf16.mxu0 %v22416_v44  ;;  %17760 = vmatprep.subr.bf16.mxu1 %v22348_v24 }
 0x93e   :  { %17599 = vmatpush1.bf16.msra.mxu0 %v22417_v12  ;;  %17762 = vmatpush3.bf16.msra.mxu1 %v22572_v41 }
 0x93f   :  { %17601 = vmatprep.subr.bf16.mxu0 %v22627_v37  ;;  %17763 = vmatprep.subr.bf16.mxu1 %v22348_v24 }
 0x942   :  { %17603 = vmatpush1.bf16.msra.mxu0 %v22628_v39  ;;  %17765 = vmatpush3.bf16.msra.mxu1 %v22629_v33 }
 0x943   :  { %17605 = vmatprep.subr.bf16.mxu0 %v22630_v8  ;;  %17766 = vmatprep.subr.bf16.mxu1 %v22348_v24 }
 0x946   :  { %17607 = vmatpush1.bf16.msra.mxu0 %v22631_v50  ;;  %17768 = vmatpush3.bf16.msra.mxu1 %v22632_v43 }
 0x947   :  { %17609 = vmatprep.subr.bf16.mxu0 %v22633_v1  ;;  %17769 = vmatprep.subr.bf16.mxu1 %v22348_v24 }
 0x94a   :  { %17611 = vmatpush1.bf16.msra.mxu0 %v22634_v7  ;;  %17771 = vmatpush3.bf16.msra.mxu1 %v22635_v31 }
 0x94b   :  { %17613 = vmatprep.subr.bf16.mxu0 %v22636_v3  ;;  %17772 = vmatprep.subr.bf16.mxu1 %v22348_v24  ;;  %v22640_v3 = vld [vmem:[#allocation36_spill] sm:$0xff] }
 0x94d   :  { %8294 = vmatmul.mubr.f32.vlgmr.msra.gmra.mrb[10].mxu0 %v20908_v6  ;;  %15102 = vmatmul.mubr.f32.vlgmr.msra.gmra.mrb[68].mxu1 %v20908_v6  ;;  %v22643_v6 = vld [vmem:[#allocation42_spill] sm:$0xff] }
 0x94e   :  { %17615 = vmatpush1.bf16.msra.mxu0 %v22637_v63  ;;  %17774 = vmatpush3.bf16.msra.mxu1 %v22638_v47  ;;  %v22644_v47 = vld [vmem:[#allocation70_spill] sm:$0xff]  ;;  %v22646_v63 = vld [vmem:[#allocation45_spill] sm:$0xff] }
 0x94f   :  { %17617 = vmatprep.subr.bf16.mxu0 %v22639_v62  ;;  %17775 = vmatprep.subr.bf16.mxu1 %v22348_v24  ;;  %v22645_v62 = vld [vmem:[#allocation44_spill] sm:$0xff] }
 0x950   :  { %8460 = vmatprep.mubr.f32.mxu0 %v22294_v5  ;;  %15136 = vmatprep.mubr.msk.f32.mxu1 %vm18871_vm0, %v22294_v5 }
 0x952   :  { %17619 = vmatpush1.bf16.msra.mxu0 %v22640_v3  ;;  %17777 = vmatpush3.bf16.msra.mxu1 %v22641_v52  ;;  %v22649_v52 = vld [vmem:[#allocation48_spill] sm:$0xff]  ;;  %v22651_v3 = vld [vmem:[#allocation49_spill] sm:$0xff] }
 0x953   :  { %17621 = vmatprep.subr.bf16.mxu0 %v22642_v22  ;;  %17778 = vmatprep.subr.bf16.mxu1 %v22348_v24  ;;  %v22650_v22 = vld [vmem:[#allocation73_spill] sm:$0xff] }
 0x956   :  { %17623 = vmatpush1.bf16.msra.mxu0 %v22643_v6  ;;  %17780 = vmatpush3.bf16.msra.mxu1 %v22644_v47  ;;  %v22652_v47 = vld [vmem:[#allocation50_spill] sm:$0xff]  ;;  %v22654_v6 = vld [vmem:[#allocation51_spill] sm:$0xff] }
 0x957   :  { %17625 = vmatprep.subr.bf16.mxu0 %v22645_v62  ;;  %17781 = vmatprep.subr.bf16.mxu1 %v22348_v24  ;;  %v22653_v62 = vld [vmem:[#allocation75_spill] sm:$0xff] }
 0x95a   :  { %17627 = vmatpush1.bf16.msra.mxu0 %v22646_v63  ;;  %17783 = vmatpush3.bf16.msra.mxu1 %v22647_v27  ;;  %v22655_v27 = vld [vmem:[#allocation52_spill] sm:$0xff]  ;;  %v22657_v63 = vld [vmem:[#allocation54_spill] sm:$0xff] }
 0x95b   :  { %17629 = vmatprep.subr.bf16.mxu0 %v22648_v15  ;;  %17784 = vmatprep.subr.bf16.mxu1 %v22348_v24  ;;  %v22656_v15 = vld [vmem:[#allocation77_spill] sm:$0xff] }
 0x95e   :  { %17631 = vmatpush1.bf16.msra.mxu0 %v22649_v52  ;;  %17786 = vmatpush3.bf16.msra.mxu1 %v22650_v22  ;;  %v22658_v22 = vld [vmem:[#allocation56_spill] sm:$0xff] }
 0x95f   :  { %17633 = vmatprep.subr.bf16.mxu0 %v22651_v3  ;;  %17787 = vmatprep.subr.bf16.mxu1 %v22348_v24  ;;  %v22659_v3 = vld [vmem:[#allocation79_spill] sm:$0xff] }
 0x962   :  { %17635 = vmatpush1.bf16.msra.mxu0 %v22652_v47  ;;  %17789 = vmatpush3.bf16.msra.mxu1 %v22653_v62 }
 0x963   :  { %17637 = vmatprep.subr.bf16.mxu0 %v22654_v6  ;;  %17790 = vmatprep.subr.bf16.mxu1 %v22348_v24 }
 0x966   :  { %17639 = vmatpush1.bf16.msra.mxu0 %v22655_v27  ;;  %17792 = vmatpush3.bf16.msra.mxu1 %v22656_v15 }
 0x967   :  { %17641 = vmatprep.subr.bf16.mxu0 %v22657_v63  ;;  %17793 = vmatprep.subr.bf16.mxu1 %v22348_v24 }
 0x96a   :  { %17643 = vmatpush1.bf16.msra.mxu0 %v22658_v22  ;;  %17795 = vmatpush3.bf16.msra.mxu1 %v22659_v3 }
 0x96b   :  { %17645 = vmatprep.subr.bf16.mxu0 %v22408_v17  ;;  %17796 = vmatprep.subr.bf16.mxu1 %v22348_v24 }
 0x96d   :  { %8462 = vmatmul.mubr.f32.vlgmr.msra.gmra.mrb[10].mxu0 %v20901_v23  ;;  %15137 = vmatmul.mubr.f32.vlgmr.msra.gmra.mrb[70].mxu1 %v20901_v23 }
 0x96e   :  { %17647 = vmatpush1.bf16.msra.mxu0 %v22409_v36  ;;  %17798 = vmatpush3.bf16.msra.mxu1 %v19586_v29 }
 0x96f   :  { %17649 = vmatprep.subr.bf16.mxu0 %v22410_v18  ;;  %17799 = vmatprep.subr.bf16.mxu1 %v22348_v24 }
 0x970   :  { %8564 = vmatprep.mubr.f32.mxu0 %v22294_v5  ;;  %15171 = vmatprep.mubr.msk.f32.mxu1 %vm18871_vm0, %v22294_v5 }
 0x972   :  { %17651 = vmatpush1.bf16.msra.mxu0 %v22411_v9  ;;  %17801 = vmatpush3.bf16.msra.mxu1 %v19607_v16 }
 0x973   :  { %17653 = vmatprep.subr.bf16.mxu0 %v22412_v21  ;;  %17802 = vmatprep.subr.bf16.mxu1 %v22348_v24 }
 0x976   :  { %17655 = vmatpush1.bf16.msra.mxu0 %v22413_v28  ;;  %17804 = vmatpush3.bf16.msra.mxu1 %v19628_v56 }
 0x977   :  { %17657 = vmatprep.subr.bf16.mxu0 %v22414_v26  ;;  %17805 = vmatprep.subr.bf16.mxu1 %v22348_v24 }
 0x97a   :  { %17659 = vmatpush1.bf16.msra.mxu0 %v22415_v42  ;;  %17807 = vmatpush3.bf16.msra.mxu1 %v19646_v25 }
 0x97b   :  { %17661 = vmatprep.subr.bf16.mxu0 %v22416_v44  ;;  %17808 = vmatprep.subr.bf16.mxu1 %v22348_v24 }
 0x97e   :  { %17663 = vmatpush1.bf16.msra.mxu0 %v22417_v12  ;;  %17810 = vmatpush3.bf16.msra.mxu1 %v22572_v41 }
 0x97f   :  { %17665 = vmatprep.subr.bf16.mxu0 %v22627_v37  ;;  %17811 = vmatprep.subr.bf16.mxu1 %v22348_v24 }
 0x982   :  { %17667 = vmatpush1.bf16.msra.mxu0 %v22628_v39  ;;  %17813 = vmatpush3.bf16.msra.mxu1 %v22629_v33 }
 0x983   :  { %17669 = vmatprep.subr.bf16.mxu0 %v22630_v8  ;;  %17814 = vmatprep.subr.bf16.mxu1 %v22348_v24 }
 0x986   :  { %17671 = vmatpush1.bf16.msra.mxu0 %v22631_v50  ;;  %17816 = vmatpush3.bf16.msra.mxu1 %v22632_v43 }
 0x987   :  { %17673 = vmatprep.subr.bf16.mxu0 %v22633_v1  ;;  %17817 = vmatprep.subr.bf16.mxu1 %v22348_v24 }
 0x98a   :  { %17675 = vmatpush1.bf16.msra.mxu0 %v22634_v7  ;;  %17819 = vmatpush3.bf16.msra.mxu1 %v22635_v31 }
 0x98b   :  { %17821 = vmatprep.subr.bf16.mxu0 %v22408_v17  ;;  %18012 = vmatprep.subr.bf16.mxu1 %v22348_v24 }
 0x98d   :  { %8566 = vmatmul.mubr.f32.vlgmr.msra.gmra.mrb[10].mxu0 %v20901_v23  ;;  %15172 = vmatmul.mubr.f32.vlgmr.msra.gmra.mrb[72].mxu1 %v20901_v23  ;;  %v22660_v23 = vld [vmem:[#allocation32_spill] sm:$0xff] }
 0x98e   :  { %17823 = vmatpush1.bf16.msra.mxu0 %v22409_v36  ;;  %18014 = vmatpush3.bf16.msra.mxu1 %v19586_v29 }
 0x98f   :  { %17825 = vmatprep.subr.bf16.mxu0 %v22410_v18  ;;  %18015 = vmatprep.subr.bf16.mxu1 %v22348_v24 }
 0x990   :  { %9337 = vmatprep.mubr.f32.mxu0 %v22294_v5  ;;  %15206 = vmatprep.mubr.msk.f32.mxu1 %vm18871_vm0, %v22294_v5 }
 0x992   :  { %17827 = vmatpush1.bf16.msra.mxu0 %v22411_v9  ;;  %18017 = vmatpush3.bf16.msra.mxu1 %v19607_v16 }
 0x993   :  { %17829 = vmatprep.subr.bf16.mxu0 %v22412_v21  ;;  %18018 = vmatprep.subr.bf16.mxu1 %v22348_v24 }
 0x996   :  { %17831 = vmatpush1.bf16.msra.mxu0 %v22413_v28  ;;  %18020 = vmatpush3.bf16.msra.mxu1 %v19628_v56 }
 0x997   :  { %17833 = vmatprep.subr.bf16.mxu0 %v22414_v26  ;;  %18021 = vmatprep.subr.bf16.mxu1 %v22348_v24 }
 0x99a   :  { %17835 = vmatpush1.bf16.msra.mxu0 %v22415_v42  ;;  %18023 = vmatpush3.bf16.msra.mxu1 %v19646_v25 }
 0x99b   :  { %17837 = vmatprep.subr.bf16.mxu0 %v22416_v44  ;;  %18024 = vmatprep.subr.bf16.mxu1 %v22348_v24 }
 0x99e   :  { %17839 = vmatpush1.bf16.msra.mxu0 %v22417_v12  ;;  %18026 = vmatpush3.bf16.msra.mxu1 %v22572_v41 }
 0x99f   :  { %17841 = vmatprep.subr.bf16.mxu0 %v22627_v37  ;;  %18027 = vmatprep.subr.bf16.mxu1 %v22348_v24 }
 0x9a2   :  { %17843 = vmatpush1.bf16.msra.mxu0 %v22628_v39  ;;  %18029 = vmatpush3.bf16.msra.mxu1 %v22629_v33 }
 0x9a3   :  { %17845 = vmatprep.subr.bf16.mxu0 %v22630_v8  ;;  %18030 = vmatprep.subr.bf16.mxu1 %v22348_v24 }
 0x9a6   :  { %17847 = vmatpush1.bf16.msra.mxu0 %v22631_v50  ;;  %18032 = vmatpush3.bf16.msra.mxu1 %v22632_v43 }
 0x9a7   :  { %17849 = vmatprep.subr.bf16.mxu0 %v22633_v1  ;;  %18033 = vmatprep.subr.bf16.mxu1 %v22348_v24 }
 0x9aa   :  { %17851 = vmatpush1.bf16.msra.mxu0 %v22634_v7  ;;  %18035 = vmatpush3.bf16.msra.mxu1 %v22635_v31 }
 0x9ab   :  { %17853 = vmatprep.subr.bf16.mxu0 %v22660_v23  ;;  %18036 = vmatprep.subr.bf16.mxu1 %v22348_v24  ;;  %v12986_v23 = vld [vmem:[%s21947_s0 + $0x1e] sm:$0x3f] }
 0x9c0   :  { %v8659_v3 = vpop.f32.mrb[62].mxu1 }
 0x9c1   :  { %v14998_v22 = vpop.f32.mrb[63].mxu1 }
 0x9e0   :  { %v8810_v63 = vpop.f32.mrb[64].mxu1 }
 0x9e1   :  { %v8811_v15 = vadd.f32 %v8810_v63, %v8659_v3  ;;  %v15033_v27 = vpop.f32.mrb[65].mxu1 }
 0xa00   :  { %v8914_v6 = vpop.f32.mrb[66].mxu1 }
 0xa01   :  { %v8915_v62 = vadd.f32 %v8914_v6, %v8811_v15  ;;  %v15068_v47 = vpop.f32.mrb[67].mxu1  ;;  %v9221_v15 = vrot.slane %v12986_v23, 2 }
 0xa20   :  { %v9003_v52 = vpop.f32.mrb[68].mxu1 }
 0xa21   :  { %v9004_v1 = vadd.f32 %v9003_v52, %v8915_v62  ;;  %v15103_v43 = vpop.f32.mrb[69].mxu1 }
 0xa40   :  { %v9122_v50 = vpop.f32.mrb[70].mxu1 }
 0xa41   :  { %v9123_v8 = vadd.f32 %v9122_v50, %v9004_v1  ;;  %v15138_v7 = vpop.f32.mrb[71].mxu1  ;;  %v9232_v50 = vrot.slane %v12986_v23, 4 }
 0xa60   :  { %v8567_v31 = vpop.f32.mrb[10].mxu0  ;;  %v9209_v33 = vpop.f32.mrb[72].mxu1 }
 0xa61   :  { %v9213_v39 = vadd.f32 %v12986_v23, %v8567_v31  ;;  %v9210_v22 = vadd.f32 %v9209_v33, %v9123_v8  ;;  %v8569_v37 = vpop.f32.mrb[11].mxu0  ;;  %v15173_v63 = vpop.f32.mrb[73].mxu1 }
 0xa62   :  { %v9223_v47 = vadd.f32 %v9221_v15, %v8569_v37  ;;  %v22662_v15 = vld [vmem:[#allocation20_spill] sm:$0xff] }
 0xa63   :  { %v12987_v27 = vmul.f32 -1.442695, %v9213_v39  ;;  %v9230_v7 = vadd.f32 %v20894_v19, %v9210_v22 }
 0xa64   :  { %v12988_v3 = vmul.f32 -1.442695, %v9223_v47  ;;  %v22663_v47 = vld [vmem:[#allocation81_spill] sm:$0xff] }
 0xa65   :  { %18784 = vpow2.f32 %v12987_v27 }
 0xa66   :  { %18786 = vpow2.f32 %v12988_v3  ;;  %v22664_v3 = vld [vmem:[#allocation22_spill] sm:$0xff] }
 0xa6f   :  { %v18785_v52 = vpop.eup %18784 }
 0xa70   :  { %v9217_v62 = vadd.f32 1.0, %v18785_v52  ;;  %v18787_v43 = vpop.eup %18786  ;;  %v22665_v52 = vld [vmem:[#allocation29_spill] sm:$0xff] }
 0xa71   :  { %v9227_v31 = vadd.f32 1.0, %v18787_v43  ;;  %v22667_v43 = vld [vmem:[#allocation33_spill] sm:$0xff] }
 0xa72   :  { %18788 = vrcp.f32 %v9217_v62  ;;  %v22666_v62 = vld [vmem:[#allocation82_spill] sm:$0xff] }
 0xa7c   :  { %v18789_v1 = vpop.eup %18788 }
 0xa7d   :  { %v9231_v6 = vmul.f32 %v18789_v1, %v9230_v7  ;;  %v22669_v7 = vld [vmem:[#allocation83_spill] sm:$0xff]  ;;  %v22670_v1 = vld [vmem:[#allocation61_spill] sm:$0xff] }
 0xa7f   :  { %v9234_v41 = vadd.f32 %v9232_v50, %v9231_v6  ;;  %v22668_v50 = vld [vmem:[#allocation60_spill] sm:$0xff]  ;;  %v22671_v6 = vld [vmem:[#allocation62_spill] sm:$0xff] }
 0xa81   :  { %18790 = vtanh.f32 %v9234_v41 }
 0xa82   :  { %18792 = vrcp.f32 %v9227_v31  ;;  %v22672_v31 = vld [vmem:[#allocation84_spill] sm:$0xff] }
 0xa8b   :  { %v18791_v8 = vpop.eup %18790 }
 0xa8c   :  { %v9236_v33 = vsub.f32 %v20898_v60, %v18791_v8  ;;  %v18793_v39 = vpop.eup %18792  ;;  %v22661_v60 = vld [vmem:[#allocation59_spill] sm:$0xff] }
 0xa8e   :  { %v9237_v37 = vmul.f32 %v18793_v39, %v9236_v33  ;;  %v22674_v33 = vld [vmem:[#allocation64_spill] sm:$0xff]  ;;  %v22675_v39 = vld [vmem:[#allocation85_spill] sm:$0xff] }
 0xa90   :  { %v21137_v63 = vadd.f32 %v18791_v8, %v9237_v37  ;;  %v22673_v8 = vld [vmem:[#allocation63_spill] sm:$0xff]  ;;  %v22676_v37 = vld [vmem:[#allocation65_spill] sm:$0xff] }
 0xa92   :  { %v21140_v27 = vand.u32 4294901760, %v21137_v63 }
 0xa94   :  { %v21144_v23 = vsub.f32 %v21137_v63, %v21140_v27 }
 0xa96   :  { %v21147_v19 = vand.u32 4294901760, %v21144_v23 }
 0xa98   :  { %v9341_v41 = vsub.f32 %v21144_v23, %v21147_v19 }
 0xa9a   :  { %v9342_v22 = vand.u32 4294901760, %v9341_v41  ;;  %v22677_v41 = vld [vmem:[#allocation66_spill] sm:$0xff] }
 0xa9c   :  { %9343 = vmatmul.mubr.f32.vlgmr.msra.gmra.mrb[12].mxu0 %v9342_v22  ;;  %15207 = vmatmul.mubr.f32.vlgmr.msra.gmra.mrb[74].mxu1 %v9342_v22  ;;  %v22678_v22 = vld [vmem:[#allocation86_spill] sm:$0xff] }
 0xa9d   :  { %17855 = vmatpush1.bf16.msra.mxu0 %v22384_v57  ;;  %18038 = vmatpush3.bf16.msra.mxu1 %v19733_v45 }
 0xa9e   :  { %17857 = vmatprep.subr.bf16.mxu0 %v22385_v40  ;;  %18039 = vmatprep.subr.bf16.mxu1 %v22348_v24 }
 0xa9f   :  { %9573 = vmatprep.mubr.f32.mxu0 %v22294_v5  ;;  %15241 = vmatprep.mubr.msk.f32.mxu1 %vm18871_vm0, %v22294_v5 }
 0xaa1   :  { %17859 = vmatpush1.bf16.msra.mxu0 %v22386_v51  ;;  %18041 = vmatpush3.bf16.msra.mxu1 %v19749_v32 }
 0xaa2   :  { %17861 = vmatprep.subr.bf16.mxu0 %v22387_v35  ;;  %18042 = vmatprep.subr.bf16.mxu1 %v22348_v24 }
 0xaa5   :  { %17863 = vmatpush1.bf16.msra.mxu0 %v22388_v14  ;;  %18044 = vmatpush3.bf16.msra.mxu1 %v19755_v54 }
 0xaa6   :  { %17865 = vmatprep.subr.bf16.mxu0 %v22389_v48  ;;  %18045 = vmatprep.subr.bf16.mxu1 %v22348_v24 }
 0xaa9   :  { %17867 = vmatpush1.bf16.msra.mxu0 %v19353_v13  ;;  %18047 = vmatpush3.bf16.msra.mxu1 %v19764_v55 }
 0xaaa   :  { %17869 = vmatprep.subr.bf16.mxu0 %v19395_v53  ;;  %18048 = vmatprep.subr.bf16.mxu1 %v22348_v24 }
 0xaad   :  { %17871 = vmatpush1.bf16.msra.mxu0 %v19413_v38  ;;  %18050 = vmatpush3.bf16.msra.mxu1 %v19776_v49 }
 0xaae   :  { %17873 = vmatprep.subr.bf16.mxu0 %v19418_v34  ;;  %18051 = vmatprep.subr.bf16.mxu1 %v22348_v24 }
 0xab1   :  { %17875 = vmatpush1.bf16.msra.mxu0 %v19448_v0  ;;  %18053 = vmatpush3.bf16.msra.mxu1 %v19782_v4 }
 0xab2   :  { %17877 = vmatprep.subr.bf16.mxu0 %v19450_v59  ;;  %18054 = vmatprep.subr.bf16.mxu1 %v22348_v24 }
 0xab5   :  { %17879 = vmatpush1.bf16.msra.mxu0 %v19458_v30  ;;  %18056 = vmatpush3.bf16.msra.mxu1 %v19787_v46 }
 0xab6   :  { %17881 = vmatprep.subr.bf16.mxu0 %v22390_v10  ;;  %18057 = vmatprep.subr.bf16.mxu1 %v22348_v24 }
 0xab9   :  { %17883 = vmatpush1.bf16.msra.mxu0 %v22391_v61  ;;  %18059 = vmatpush3.bf16.msra.mxu1 %v22441_v58 }
 0xaba   :  { %17885 = vmatprep.subr.bf16.mxu0 %v22442_v11  ;;  %18060 = vmatprep.subr.bf16.mxu1 %v22348_v24 }
 0xabc   :  { %9575 = vmatmul.mubr.f32.vlgmr.msra.gmra.mrb[12].mxu0 %v21140_v27  ;;  %15242 = vmatmul.mubr.f32.vlgmr.msra.gmra.mrb[76].mxu1 %v21140_v27 }
 0xabd   :  { %17887 = vmatpush1.bf16.msra.mxu0 %v22443_v2  ;;  %18062 = vmatpush3.bf16.msra.mxu1 %v22444_v20 }
 0xabe   :  { %17889 = vmatprep.subr.bf16.mxu0 %v22661_v60  ;;  %18063 = vmatprep.subr.bf16.mxu1 %v22348_v24 }
 0xabf   :  { %9709 = vmatprep.mubr.f32.mxu0 %v22294_v5  ;;  %15276 = vmatprep.mubr.msk.f32.mxu1 %vm18871_vm0, %v22294_v5 }
 0xac1   :  { %17891 = vmatpush1.bf16.msra.mxu0 %v22662_v15  ;;  %18065 = vmatpush3.bf16.msra.mxu1 %v22663_v47  ;;  %v22703_v47 = vld [vmem:[#allocation71_spill] sm:$0xff] }
 0xac2   :  { %17893 = vmatprep.subr.bf16.mxu0 %v22664_v3  ;;  %18066 = vmatprep.subr.bf16.mxu1 %v22348_v24  ;;  %v22698_v3 = vld [vmem:[#allocation40_spill] sm:$0xff]  ;;  %v22704_v15 = vld [vmem:[#allocation47_spill] sm:$0xff] }
 0xac5   :  { %17895 = vmatpush1.bf16.msra.mxu0 %v22665_v52  ;;  %18068 = vmatpush3.bf16.msra.mxu1 %v22666_v62  ;;  %v22695_v62 = vld [vmem:[#allocation35_spill] sm:$0xff]  ;;  %v22697_v52 = vld [vmem:[#allocation21_spill] sm:$0xff] }
 0xac6   :  { %17897 = vmatprep.subr.bf16.mxu0 %v22667_v43  ;;  %18069 = vmatprep.subr.bf16.mxu1 %v22348_v24  ;;  %v22694_v43 = vld [vmem:[#allocation69_spill] sm:$0xff] }
 0xac9   :  { %17899 = vmatpush1.bf16.msra.mxu0 %v22668_v50  ;;  %18071 = vmatpush3.bf16.msra.mxu1 %v22669_v7  ;;  %v22692_v7 = vld [vmem:[#allocation30_spill] sm:$0xff]  ;;  %v22693_v50 = vld [vmem:[#allocation31_spill] sm:$0xff] }
 0xaca   :  { %17901 = vmatprep.subr.bf16.mxu0 %v22670_v1  ;;  %18072 = vmatprep.subr.bf16.mxu1 %v22348_v24  ;;  %v22679_v1 = vld [vmem:[#allocation67_spill] sm:$0xff] }
 0xacd   :  { %17903 = vmatpush1.bf16.msra.mxu0 %v22671_v6  ;;  %18074 = vmatpush3.bf16.msra.mxu1 %v22672_v31  ;;  %v22680_v31 = vld [vmem:[#allocation68_spill] sm:$0xff]  ;;  %v22691_v6 = vld [vmem:[#allocation78_spill] sm:$0xff] }
 0xace   :  { %17905 = vmatprep.subr.bf16.mxu0 %v22673_v8  ;;  %18075 = vmatprep.subr.bf16.mxu1 %v22348_v24  ;;  %v22681_v8 = vld [vmem:[#allocation87_spill] sm:$0xff] }
 0xad1   :  { %17907 = vmatpush1.bf16.msra.mxu0 %v22674_v33  ;;  %18077 = vmatpush3.bf16.msra.mxu1 %v22675_v39  ;;  %v22689_v39 = vld [vmem:[#allocation27_spill] sm:$0xff]  ;;  %v22690_v33 = vld [vmem:[#allocation28_spill] sm:$0xff] }
 0xad2   :  { %17909 = vmatprep.subr.bf16.mxu0 %v22676_v37  ;;  %18078 = vmatprep.subr.bf16.mxu1 %v22348_v24  ;;  %v22688_v37 = vld [vmem:[#allocation76_spill] sm:$0xff] }
 0xad5   :  { %17911 = vmatpush1.bf16.msra.mxu0 %v22677_v41  ;;  %18080 = vmatpush3.bf16.msra.mxu1 %v22678_v22  ;;  %v22686_v22 = vld [vmem:[#allocation24_spill] sm:$0xff]  ;;  %v22687_v41 = vld [vmem:[#allocation25_spill] sm:$0xff] }
 0xad6   :  { %17913 = vmatprep.subr.bf16.mxu0 %v22679_v1  ;;  %18081 = vmatprep.subr.bf16.mxu1 %v22348_v24  ;;  %v22685_v1 = vld [vmem:[#allocation74_spill] sm:$0xff] }
 0xad9   :  { %17915 = vmatpush1.bf16.msra.mxu0 %v22680_v31  ;;  %18083 = vmatpush3.bf16.msra.mxu1 %v22681_v8  ;;  %v22683_v8 = vld [vmem:[#allocation19_spill] sm:$0xff] }
 0xada   :  { %17917 = vmatprep.subr.bf16.mxu0 %v22408_v17  ;;  %18084 = vmatprep.subr.bf16.mxu1 %v22348_v24  ;;  %v22684_v31 = vld [vmem:[#allocation23_spill] sm:$0xff] }
 0xadc   :  { %9712 = vmatmul.mubr.f32.vlgmr.msra.gmra.mrb[12].mxu0 %v21144_v23  ;;  %15277 = vmatmul.mubr.f32.vlgmr.msra.gmra.mrb[78].mxu1 %v21144_v23  ;;  %v22682_v23 = vld [vmem:[#allocation72_spill] sm:$0xff] }
 0xadd   :  { %17919 = vmatpush1.bf16.msra.mxu0 %v22409_v36  ;;  %18086 = vmatpush3.bf16.msra.mxu1 %v19586_v29 }
 0xade   :  { %17921 = vmatprep.subr.bf16.mxu0 %v22410_v18  ;;  %18087 = vmatprep.subr.bf16.mxu1 %v22348_v24 }
 0xadf   :  { %9814 = vmatprep.mubr.f32.mxu0 %v22294_v5  ;;  %15311 = vmatprep.mubr.msk.f32.mxu1 %vm18871_vm0, %v22294_v5 }
 0xae1   :  { %17923 = vmatpush1.bf16.msra.mxu0 %v22411_v9  ;;  %18089 = vmatpush3.bf16.msra.mxu1 %v19607_v16 }
 0xae2   :  { %17925 = vmatprep.subr.bf16.mxu0 %v22412_v21  ;;  %18090 = vmatprep.subr.bf16.mxu1 %v22348_v24 }
 0xae5   :  { %17927 = vmatpush1.bf16.msra.mxu0 %v22413_v28  ;;  %18092 = vmatpush3.bf16.msra.mxu1 %v19628_v56 }
 0xae6   :  { %17929 = vmatprep.subr.bf16.mxu0 %v22414_v26  ;;  %18093 = vmatprep.subr.bf16.mxu1 %v22348_v24 }
 0xae9   :  { %17931 = vmatpush1.bf16.msra.mxu0 %v22415_v42  ;;  %18095 = vmatpush3.bf16.msra.mxu1 %v19646_v25 }
 0xaea   :  { %17933 = vmatprep.subr.bf16.mxu0 %v22416_v44  ;;  %18096 = vmatprep.subr.bf16.mxu1 %v22348_v24 }
 0xaed   :  { %17935 = vmatpush1.bf16.msra.mxu0 %v22417_v12  ;;  %18098 = vmatpush3.bf16.msra.mxu1 %v22682_v23 }
 0xaee   :  { %17937 = vmatprep.subr.bf16.mxu0 %v22683_v8  ;;  %18099 = vmatprep.subr.bf16.mxu1 %v22348_v24 }
 0xaf1   :  { %17939 = vmatpush1.bf16.msra.mxu0 %v22684_v31  ;;  %18101 = vmatpush3.bf16.msra.mxu1 %v22685_v1 }
 0xaf2   :  { %17941 = vmatprep.subr.bf16.mxu0 %v22686_v22  ;;  %18102 = vmatprep.subr.bf16.mxu1 %v22348_v24 }
 0xaf5   :  { %17943 = vmatpush1.bf16.msra.mxu0 %v22687_v41  ;;  %18104 = vmatpush3.bf16.msra.mxu1 %v22688_v37 }
 0xaf6   :  { %17945 = vmatprep.subr.bf16.mxu0 %v22689_v39  ;;  %18105 = vmatprep.subr.bf16.mxu1 %v22348_v24 }
 0xaf9   :  { %17947 = vmatpush1.bf16.msra.mxu0 %v22690_v33  ;;  %18107 = vmatpush3.bf16.msra.mxu1 %v22691_v6 }
 0xafa   :  { %17949 = vmatprep.subr.bf16.mxu0 %v22692_v7  ;;  %18108 = vmatprep.subr.bf16.mxu1 %v22348_v24  ;;  %v22696_v7 = vld [vmem:[#allocation36_spill] sm:$0xff] }
 0xafc   :  { %9818 = vmatmul.mubr.f32.vlgmr.msra.gmra.mrb[12].mxu0 %v21147_v19  ;;  %15312 = vmatmul.mubr.f32.vlgmr.msra.gmra.mrb[80].mxu1 %v21147_v19  ;;  %v22699_v19 = vld [vmem:[#allocation42_spill] sm:$0xff] }
 0xafd   :  { %17951 = vmatpush1.bf16.msra.mxu0 %v22693_v50  ;;  %18110 = vmatpush3.bf16.msra.mxu1 %v22694_v43  ;;  %v22700_v43 = vld [vmem:[#allocation70_spill] sm:$0xff]  ;;  %v22702_v50 = vld [vmem:[#allocation45_spill] sm:$0xff] }
 0xafe   :  { %17953 = vmatprep.subr.bf16.mxu0 %v22695_v62  ;;  %18111 = vmatprep.subr.bf16.mxu1 %v22348_v24  ;;  %v22701_v62 = vld [vmem:[#allocation44_spill] sm:$0xff] }
 0xaff   :  { %9984 = vmatprep.mubr.f32.mxu0 %v22294_v5  ;;  %15346 = vmatprep.mubr.msk.f32.mxu1 %vm18871_vm0, %v22294_v5 }
 0xb01   :  { %17955 = vmatpush1.bf16.msra.mxu0 %v22696_v7  ;;  %18113 = vmatpush3.bf16.msra.mxu1 %v22697_v52  ;;  %v22705_v52 = vld [vmem:[#allocation48_spill] sm:$0xff]  ;;  %v22707_v7 = vld [vmem:[#allocation49_spill] sm:$0xff] }
 0xb02   :  { %17957 = vmatprep.subr.bf16.mxu0 %v22698_v3  ;;  %18114 = vmatprep.subr.bf16.mxu1 %v22348_v24  ;;  %v22706_v3 = vld [vmem:[#allocation73_spill] sm:$0xff] }
 0xb05   :  { %17959 = vmatpush1.bf16.msra.mxu0 %v22699_v19  ;;  %18116 = vmatpush3.bf16.msra.mxu1 %v22700_v43  ;;  %v22708_v43 = vld [vmem:[#allocation50_spill] sm:$0xff]  ;;  %v22710_v19 = vld [vmem:[#allocation51_spill] sm:$0xff] }
 0xb06   :  { %17961 = vmatprep.subr.bf16.mxu0 %v22701_v62  ;;  %18117 = vmatprep.subr.bf16.mxu1 %v22348_v24  ;;  %v22709_v62 = vld [vmem:[#allocation75_spill] sm:$0xff] }
 0xb09   :  { %17963 = vmatpush1.bf16.msra.mxu0 %v22702_v50  ;;  %18119 = vmatpush3.bf16.msra.mxu1 %v22703_v47  ;;  %v22711_v47 = vld [vmem:[#allocation52_spill] sm:$0xff]  ;;  %v22713_v50 = vld [vmem:[#allocation54_spill] sm:$0xff] }
 0xb0a   :  { %17965 = vmatprep.subr.bf16.mxu0 %v22704_v15  ;;  %18120 = vmatprep.subr.bf16.mxu1 %v22348_v24  ;;  %v22712_v15 = vld [vmem:[#allocation77_spill] sm:$0xff] }
 0xb0d   :  { %17967 = vmatpush1.bf16.msra.mxu0 %v22705_v52  ;;  %18122 = vmatpush3.bf16.msra.mxu1 %v22706_v3  ;;  %v22714_v3 = vld [vmem:[#allocation56_spill] sm:$0xff] }
 0xb0e   :  { %17969 = vmatprep.subr.bf16.mxu0 %v22707_v7  ;;  %18123 = vmatprep.subr.bf16.mxu1 %v22348_v24  ;;  %v22715_v7 = vld [vmem:[#allocation79_spill] sm:$0xff] }
 0xb11   :  { %17971 = vmatpush1.bf16.msra.mxu0 %v22708_v43  ;;  %18125 = vmatpush3.bf16.msra.mxu1 %v22709_v62 }
 0xb12   :  { %17973 = vmatprep.subr.bf16.mxu0 %v22710_v19  ;;  %18126 = vmatprep.subr.bf16.mxu1 %v22348_v24 }
 0xb15   :  { %17975 = vmatpush1.bf16.msra.mxu0 %v22711_v47  ;;  %18128 = vmatpush3.bf16.msra.mxu1 %v22712_v15 }
 0xb16   :  { %17977 = vmatprep.subr.bf16.mxu0 %v22713_v50  ;;  %18129 = vmatprep.subr.bf16.mxu1 %v22348_v24 }
 0xb19   :  { %17979 = vmatpush1.bf16.msra.mxu0 %v22714_v3  ;;  %18131 = vmatpush3.bf16.msra.mxu1 %v22715_v7 }
 0xb1a   :  { %17981 = vmatprep.subr.bf16.mxu0 %v22408_v17  ;;  %18132 = vmatprep.subr.bf16.mxu1 %v22348_v24 }
 0xb1c   :  { %9986 = vmatmul.mubr.f32.vlgmr.msra.gmra.mrb[12].mxu0 %v21140_v27  ;;  %15347 = vmatmul.mubr.f32.vlgmr.msra.gmra.mrb[82].mxu1 %v21140_v27 }
 0xb1d   :  { %17983 = vmatpush1.bf16.msra.mxu0 %v22409_v36  ;;  %18134 = vmatpush3.bf16.msra.mxu1 %v19586_v29 }
 0xb1e   :  { %17985 = vmatprep.subr.bf16.mxu0 %v22410_v18  ;;  %18135 = vmatprep.subr.bf16.mxu1 %v22348_v24 }
 0xb1f   :  { %10088 = vmatprep.mubr.f32.mxu0 %v22294_v5  ;;  %15381 = vmatprep.mubr.msk.f32.mxu1 %vm18871_vm0, %v22294_v5 }
 0xb21   :  { %17987 = vmatpush1.bf16.msra.mxu0 %v22411_v9  ;;  %18137 = vmatpush3.bf16.msra.mxu1 %v19607_v16 }
 0xb22   :  { %17989 = vmatprep.subr.bf16.mxu0 %v22412_v21  ;;  %18138 = vmatprep.subr.bf16.mxu1 %v22348_v24 }
 0xb25   :  { %17991 = vmatpush1.bf16.msra.mxu0 %v22413_v28  ;;  %18140 = vmatpush3.bf16.msra.mxu1 %v19628_v56 }
 0xb26   :  { %17993 = vmatprep.subr.bf16.mxu0 %v22414_v26  ;;  %18141 = vmatprep.subr.bf16.mxu1 %v22348_v24 }
 0xb29   :  { %17995 = vmatpush1.bf16.msra.mxu0 %v22415_v42  ;;  %18143 = vmatpush3.bf16.msra.mxu1 %v19646_v25 }
 0xb2a   :  { %17997 = vmatprep.subr.bf16.mxu0 %v22416_v44  ;;  %18144 = vmatprep.subr.bf16.mxu1 %v22348_v24 }
 0xb2d   :  { %17999 = vmatpush1.bf16.msra.mxu0 %v22417_v12  ;;  %18146 = vmatpush3.bf16.msra.mxu1 %v22682_v23 }
 0xb2e   :  { %18001 = vmatprep.subr.bf16.mxu0 %v22683_v8  ;;  %18147 = vmatprep.subr.bf16.mxu1 %v22348_v24 }
 0xb31   :  { %18003 = vmatpush1.bf16.msra.mxu0 %v22684_v31  ;;  %18149 = vmatpush3.bf16.msra.mxu1 %v22685_v1 }
 0xb32   :  { %18005 = vmatprep.subr.bf16.mxu0 %v22686_v22  ;;  %18150 = vmatprep.subr.bf16.mxu1 %v22348_v24 }
 0xb35   :  { %18007 = vmatpush1.bf16.msra.mxu0 %v22687_v41  ;;  %18152 = vmatpush3.bf16.msra.mxu1 %v22688_v37 }
 0xb36   :  { %18009 = vmatprep.subr.bf16.mxu0 %v22689_v39  ;;  %18153 = vmatprep.subr.bf16.mxu1 %v22348_v24 }
 0xb39   :  { %18011 = vmatpush1.bf16.msra.mxu0 %v22690_v33  ;;  %18155 = vmatpush3.bf16.msra.mxu1 %v22691_v6 }
 0xb3a   :  { %18157 = vmatprep.subr.bf16.mxu0 %v22408_v17  ;;  %18348 = vmatprep.subr.bf16.mxu1 %v22348_v24 }
 0xb3c   :  { %10090 = vmatmul.mubr.f32.vlgmr.msra.gmra.mrb[12].mxu0 %v21140_v27  ;;  %15382 = vmatmul.mubr.f32.vlgmr.msra.gmra.mrb[84].mxu1 %v21140_v27  ;;  %v22716_v27 = vld [vmem:[#allocation32_spill] sm:$0xff] }
 0xb3d   :  { %18159 = vmatpush1.bf16.msra.mxu0 %v22409_v36  ;;  %18350 = vmatpush3.bf16.msra.mxu1 %v19586_v29 }
 0xb3e   :  { %18161 = vmatprep.subr.bf16.mxu0 %v22410_v18  ;;  %18351 = vmatprep.subr.bf16.mxu1 %v22348_v24 }
 0xb3f   :  { %10861 = vmatprep.mubr.f32.mxu0 %v22294_v5  ;;  %15416 = vmatprep.mubr.msk.f32.mxu1 %vm18871_vm0, %v22294_v5 }
 0xb41   :  { %18163 = vmatpush1.bf16.msra.mxu0 %v22411_v9  ;;  %18353 = vmatpush3.bf16.msra.mxu1 %v19607_v16 }
 0xb42   :  { %18165 = vmatprep.subr.bf16.mxu0 %v22412_v21  ;;  %18354 = vmatprep.subr.bf16.mxu1 %v22348_v24 }
 0xb45   :  { %18167 = vmatpush1.bf16.msra.mxu0 %v22413_v28  ;;  %18356 = vmatpush3.bf16.msra.mxu1 %v19628_v56 }
 0xb46   :  { %18169 = vmatprep.subr.bf16.mxu0 %v22414_v26  ;;  %18357 = vmatprep.subr.bf16.mxu1 %v22348_v24 }
 0xb49   :  { %18171 = vmatpush1.bf16.msra.mxu0 %v22415_v42  ;;  %18359 = vmatpush3.bf16.msra.mxu1 %v19646_v25 }
 0xb4a   :  { %18173 = vmatprep.subr.bf16.mxu0 %v22416_v44  ;;  %18360 = vmatprep.subr.bf16.mxu1 %v22348_v24 }
 0xb4d   :  { %18175 = vmatpush1.bf16.msra.mxu0 %v22417_v12  ;;  %18362 = vmatpush3.bf16.msra.mxu1 %v22682_v23 }
 0xb4e   :  { %18177 = vmatprep.subr.bf16.mxu0 %v22683_v8  ;;  %18363 = vmatprep.subr.bf16.mxu1 %v22348_v24 }
 0xb51   :  { %18179 = vmatpush1.bf16.msra.mxu0 %v22684_v31  ;;  %18365 = vmatpush3.bf16.msra.mxu1 %v22685_v1 }
 0xb52   :  { %18181 = vmatprep.subr.bf16.mxu0 %v22686_v22  ;;  %18366 = vmatprep.subr.bf16.mxu1 %v22348_v24 }
 0xb55   :  { %18183 = vmatpush1.bf16.msra.mxu0 %v22687_v41  ;;  %18368 = vmatpush3.bf16.msra.mxu1 %v22688_v37 }
 0xb56   :  { %18185 = vmatprep.subr.bf16.mxu0 %v22689_v39  ;;  %18369 = vmatprep.subr.bf16.mxu1 %v22348_v24 }
 0xb59   :  { %18187 = vmatpush1.bf16.msra.mxu0 %v22690_v33  ;;  %18371 = vmatpush3.bf16.msra.mxu1 %v22691_v6 }
 0xb5a   :  { %18189 = vmatprep.subr.bf16.mxu0 %v22716_v27  ;;  %18372 = vmatprep.subr.bf16.mxu1 %v22348_v24  ;;  %v12989_v27 = vld [vmem:[%s21947_s0 + $0x24] sm:$0x3f] }
 0xb6f   :  { %v10183_v7 = vpop.f32.mrb[74].mxu1 }
 0xb70   :  { %v15208_v3 = vpop.f32.mrb[75].mxu1 }
 0xb8f   :  { %v10334_v50 = vpop.f32.mrb[76].mxu1 }
 0xb90   :  { %v10335_v15 = vadd.f32 %v10334_v50, %v10183_v7  ;;  %v15243_v47 = vpop.f32.mrb[77].mxu1 }
 0xbaf   :  { %v10438_v19 = vpop.f32.mrb[78].mxu1 }
 0xbb0   :  { %v10439_v62 = vadd.f32 %v10438_v19, %v10335_v15  ;;  %v15278_v43 = vpop.f32.mrb[79].mxu1  ;;  %v10745_v15 = vrot.slane %v12989_v27, 2 }
 0xbcf   :  { %v10527_v52 = vpop.f32.mrb[80].mxu1 }
 0xbd0   :  { %v10528_v39 = vadd.f32 %v10527_v52, %v10439_v62  ;;  %v15313_v37 = vpop.f32.mrb[81].mxu1 }
 0xbd1   :  { %v21377_v37 = vld [vmem:[%s21949_s2] ss:$0 sm:$0xff] }
 0xbef   :  { %v10646_v41 = vpop.f32.mrb[82].mxu1 }
 0xbf0   :  { %v10647_v22 = vadd.f32 %v10646_v41, %v10528_v39  ;;  %v15348_v33 = vpop.f32.mrb[83].mxu1  ;;  %v10756_v39 = vrot.slane %v12989_v27, 4 }
 0xc0f   :  { %v10091_v6 = vpop.f32.mrb[12].mxu0  ;;  %v10733_v1 = vpop.f32.mrb[84].mxu1 }
 0xc10   :  { %v10737_v31 = vadd.f32 %v12989_v27, %v10091_v6  ;;  %v10734_v3 = vadd.f32 %v10733_v1, %v10647_v22  ;;  %v10093_v8 = vpop.f32.mrb[13].mxu0  ;;  %v15383_v50 = vpop.f32.mrb[85].mxu1 }
 0xc11   :  { %v10747_v43 = vadd.f32 %v10745_v15, %v10093_v8 }
 0xc12   :  { %v12990_v47 = vmul.f32 -1.442695, %v10737_v31  ;;  %v10754_v1 = vadd.f32 %v21377_v37, %v10734_v3 }
 0xc13   :  { %v12991_v7 = vmul.f32 -1.442695, %v10747_v43 }
 0xc14   :  { %18794 = vpow2.f32 %v12990_v47 }
 0xc15   :  { %18796 = vpow2.f32 %v12991_v7 }
 0xc1e   :  { %v18795_v52 = vpop.eup %18794 }
 0xc1f   :  { %v10741_v62 = vadd.f32 1.0, %v18795_v52  ;;  %v18797_v33 = vpop.eup %18796 }
 0xc20   :  { %v10751_v22 = vadd.f32 1.0, %v18797_v33  ;;  %v22746_v33 = vld [vmem:[#allocation30_spill] sm:$0xff] }
 0xc21   :  { %18798 = vrcp.f32 %v10741_v62  ;;  %v22745_v62 = vld [vmem:[#allocation78_spill] sm:$0xff] }
 0xc2b   :  { %v18799_v6 = vpop.eup %18798 }
 0xc2c   :  { %v10755_v41 = vmul.f32 %v18799_v6, %v10754_v1  ;;  %v22748_v1 = vld [vmem:[#allocation69_spill] sm:$0xff]  ;;  %v22749_v6 = vld [vmem:[#allocation35_spill] sm:$0xff] }
 0xc2e   :  { %v10758_v31 = vadd.f32 %v10756_v39, %v10755_v41  ;;  %v22747_v39 = vld [vmem:[#allocation31_spill] sm:$0xff]  ;;  %v22750_v41 = vld [vmem:[#allocation36_spill] sm:$0xff] }
 0xc30   :  { %18800 = vtanh.f32 %v10758_v31  ;;  %v22751_v31 = vld [vmem:[#allocation21_spill] sm:$0xff] }
 0xc31   :  { %18802 = vrcp.f32 %v10751_v22  ;;  %v22752_v22 = vld [vmem:[#allocation40_spill] sm:$0xff] }
 0xc3a   :  { %v18801_v8 = vpop.eup %18800 }
 0xc3b   :  { %v10760_v19 = vsub.f32 %v21137_v63, %v18801_v8  ;;  %v18803_v50 = vpop.eup %18802  ;;  %v22743_v63 = vld [vmem:[#allocation27_spill] sm:$0xff] }
 0xc3d   :  { %v10761_v47 = vmul.f32 %v18803_v50, %v10760_v19  ;;  %v22754_v19 = vld [vmem:[#allocation70_spill] sm:$0xff]  ;;  %v22755_v50 = vld [vmem:[#allocation44_spill] sm:$0xff] }
 0xc3f   :  { %v21381_v15 = vadd.f32 %v18801_v8, %v10761_v47  ;;  %v22753_v8 = vld [vmem:[#allocation42_spill] sm:$0xff]  ;;  %v22756_v47 = vld [vmem:[#allocation45_spill] sm:$0xff] }
 0xc41   :  { %v21384_v27 = vand.u32 4294901760, %v21381_v15 }
 0xc43   :  { %v21388_v43 = vsub.f32 %v21381_v15, %v21384_v27 }
 0xc45   :  { %v21391_v3 = vand.u32 4294901760, %v21388_v43 }
 0xc47   :  { %v10865_v7 = vsub.f32 %v21388_v43, %v21391_v3 }
 0xc49   :  { %v10866_v52 = vand.u32 4294901760, %v10865_v7  ;;  %v22759_v7 = vld [vmem:[#allocation48_spill] sm:$0xff] }
 0xc4b   :  { %10867 = vmatmul.mubr.f32.vlgmr.msra.gmra.mrb[14].mxu0 %v10866_v52  ;;  %15417 = vmatmul.mubr.f32.vlgmr.msra.gmra.mrb[86].mxu1 %v10866_v52  ;;  %v22760_v52 = vld [vmem:[#allocation73_spill] sm:$0xff] }
 0xc4c   :  { %18191 = vmatpush1.bf16.msra.mxu0 %v22384_v57  ;;  %18374 = vmatpush3.bf16.msra.mxu1 %v19733_v45  ;;  %v22724_v45 = vld [vmem:[#allocation83_spill] sm:$0xff]  ;;  %v22731_v57 = vld [vmem:[#allocation65_spill] sm:$0xff] }
 0xc4d   :  { %18193 = vmatprep.subr.bf16.mxu0 %v22385_v40  ;;  %18375 = vmatprep.subr.bf16.mxu1 %v22348_v24  ;;  %v22732_v40 = vld [vmem:[#allocation66_spill] sm:$0xff] }
 0xc4e   :  { %11097 = vmatprep.mubr.f32.mxu0 %v22294_v5  ;;  %15451 = vmatprep.mubr.msk.f32.mxu1 %vm18871_vm0, %v22294_v5 }
 0xc50   :  { %18195 = vmatpush1.bf16.msra.mxu0 %v22386_v51  ;;  %18377 = vmatpush3.bf16.msra.mxu1 %v19749_v32  ;;  %v22725_v32 = vld [vmem:[#allocation61_spill] sm:$0xff]  ;;  %v22733_v51 = vld [vmem:[#allocation86_spill] sm:$0xff] }
 0xc51   :  { %18197 = vmatprep.subr.bf16.mxu0 %v22387_v35  ;;  %18378 = vmatprep.subr.bf16.mxu1 %v22348_v24  ;;  %v22734_v35 = vld [vmem:[#allocation67_spill] sm:$0xff] }
 0xc54   :  { %18199 = vmatpush1.bf16.msra.mxu0 %v22388_v14  ;;  %18380 = vmatpush3.bf16.msra.mxu1 %v19755_v54  ;;  %v22726_v54 = vld [vmem:[#allocation62_spill] sm:$0xff]  ;;  %v22735_v14 = vld [vmem:[#allocation68_spill] sm:$0xff] }
 0xc55   :  { %18201 = vmatprep.subr.bf16.mxu0 %v22389_v48  ;;  %18381 = vmatprep.subr.bf16.mxu1 %v22348_v24  ;;  %v22736_v48 = vld [vmem:[#allocation87_spill] sm:$0xff] }
 0xc58   :  { %18203 = vmatpush1.bf16.msra.mxu0 %v19353_v13  ;;  %18383 = vmatpush3.bf16.msra.mxu1 %v19764_v55  ;;  %v22718_v13 = vld [vmem:[#allocation81_spill] sm:$0xff]  ;;  %v22727_v55 = vld [vmem:[#allocation84_spill] sm:$0xff] }
 0xc59   :  { %18205 = vmatprep.subr.bf16.mxu0 %v19395_v53  ;;  %18384 = vmatprep.subr.bf16.mxu1 %v22348_v24  ;;  %v22719_v53 = vld [vmem:[#allocation22_spill] sm:$0xff] }
 0xc5c   :  { %18207 = vmatpush1.bf16.msra.mxu0 %v19413_v38  ;;  %18386 = vmatpush3.bf16.msra.mxu1 %v19776_v49  ;;  %v22720_v38 = vld [vmem:[#allocation29_spill] sm:$0xff]  ;;  %v22728_v49 = vld [vmem:[#allocation63_spill] sm:$0xff] }
 0xc5d   :  { %18209 = vmatprep.subr.bf16.mxu0 %v19418_v34  ;;  %18387 = vmatprep.subr.bf16.mxu1 %v22348_v24  ;;  %v22717_v34 = vld [vmem:[#allocation20_spill] sm:$0xff] }
 0xc60   :  { %18211 = vmatpush1.bf16.msra.mxu0 %v19448_v0  ;;  %18389 = vmatpush3.bf16.msra.mxu1 %v19782_v4  ;;  %v22721_v0 = vld [vmem:[#allocation82_spill] sm:$0xff]  ;;  %v22729_v4 = vld [vmem:[#allocation64_spill] sm:$0xff] }
 0xc61   :  { %18213 = vmatprep.subr.bf16.mxu0 %v19450_v59  ;;  %18390 = vmatprep.subr.bf16.mxu1 %v22348_v24  ;;  %v22722_v59 = vld [vmem:[#allocation33_spill] sm:$0xff] }
 0xc64   :  { %18215 = vmatpush1.bf16.msra.mxu0 %v19458_v30  ;;  %18392 = vmatpush3.bf16.msra.mxu1 %v19787_v46  ;;  %v22723_v30 = vld [vmem:[#allocation60_spill] sm:$0xff]  ;;  %v22730_v46 = vld [vmem:[#allocation85_spill] sm:$0xff] }
 0xc65   :  { %18217 = vmatprep.subr.bf16.mxu0 %v22390_v10  ;;  %18393 = vmatprep.subr.bf16.mxu1 %v22348_v24  ;;  %v22737_v10 = vld [vmem:[#allocation19_spill] sm:$0xff] }
 0xc68   :  { %18219 = vmatpush1.bf16.msra.mxu0 %v22391_v61  ;;  %18395 = vmatpush3.bf16.msra.mxu1 %v22441_v58  ;;  %v22738_v61 = vld [vmem:[#allocation23_spill] sm:$0xff]  ;;  %v22739_v58 = vld [vmem:[#allocation74_spill] sm:$0xff] }
 0xc69   :  { %18221 = vmatprep.subr.bf16.mxu0 %v22442_v11  ;;  %18396 = vmatprep.subr.bf16.mxu1 %v22348_v24  ;;  %v22740_v11 = vld [vmem:[#allocation24_spill] sm:$0xff] }
 0xc6b   :  { %11099 = vmatmul.mubr.f32.vlgmr.msra.gmra.mrb[14].mxu0 %v21384_v27  ;;  %15452 = vmatmul.mubr.f32.vlgmr.msra.gmra.mrb[88].mxu1 %v21384_v27 }
 0xc6c   :  { %18223 = vmatpush1.bf16.msra.mxu0 %v22443_v2  ;;  %18398 = vmatpush3.bf16.msra.mxu1 %v22444_v20  ;;  %v22741_v2 = vld [vmem:[#allocation25_spill] sm:$0xff]  ;;  %v22742_v20 = vld [vmem:[#allocation76_spill] sm:$0xff] }
 0xc6d   :  { %18225 = vmatprep.subr.bf16.mxu0 %v22661_v60  ;;  %18399 = vmatprep.subr.bf16.mxu1 %v22348_v24  ;;  %v22744_v60 = vld [vmem:[#allocation28_spill] sm:$0xff] }
 0xc6e   :  { %11233 = vmatprep.mubr.f32.mxu0 %v22294_v5  ;;  %15486 = vmatprep.mubr.msk.f32.mxu1 %vm18871_vm0, %v22294_v5 }
 0xc70   :  { %18227 = vmatpush1.bf16.msra.mxu0 %v22717_v34  ;;  %18401 = vmatpush3.bf16.msra.mxu1 %v22718_v13  ;;  %v22761_v34 = vld [vmem:[#allocation49_spill] sm:$0xff]  ;;  %v22762_v13 = vld [vmem:[#allocation50_spill] sm:$0xff] }
 0xc71   :  { %18229 = vmatprep.subr.bf16.mxu0 %v22719_v53  ;;  %18402 = vmatprep.subr.bf16.mxu1 %v22348_v24  ;;  %v22763_v53 = vld [vmem:[#allocation75_spill] sm:$0xff] }
 0xc74   :  { %18231 = vmatpush1.bf16.msra.mxu0 %v22720_v38  ;;  %18404 = vmatpush3.bf16.msra.mxu1 %v22721_v0  ;;  %v22764_v38 = vld [vmem:[#allocation51_spill] sm:$0xff]  ;;  %v22765_v0 = vld [vmem:[#allocation52_spill] sm:$0xff] }
 0xc75   :  { %18233 = vmatprep.subr.bf16.mxu0 %v22722_v59  ;;  %18405 = vmatprep.subr.bf16.mxu1 %v22348_v24  ;;  %v22766_v59 = vld [vmem:[#allocation77_spill] sm:$0xff] }
 0xc78   :  { %18235 = vmatpush1.bf16.msra.mxu0 %v22723_v30  ;;  %18407 = vmatpush3.bf16.msra.mxu1 %v22724_v45  ;;  %v22767_v30 = vld [vmem:[#allocation54_spill] sm:$0xff]  ;;  %v22768_v45 = vld [vmem:[#allocation56_spill] sm:$0xff] }
 0xc79   :  { %18237 = vmatprep.subr.bf16.mxu0 %v22725_v32  ;;  %18408 = vmatprep.subr.bf16.mxu1 %v22348_v24  ;;  %v22769_v32 = vld [vmem:[#allocation79_spill] sm:$0xff] }
 0xc7c   :  { %18239 = vmatpush1.bf16.msra.mxu0 %v22726_v54  ;;  %18410 = vmatpush3.bf16.msra.mxu1 %v22727_v55  ;;  %v12296_v54 = vld [vmem:[%s21950_s3 + $0x28] sm:$0xff] }
 0xc7d   :  { %18241 = vmatprep.subr.bf16.mxu0 %v22728_v49  ;;  %18411 = vmatprep.subr.bf16.mxu1 %v22348_v24 }
 0xc80   :  { %18243 = vmatpush1.bf16.msra.mxu0 %v22729_v4  ;;  %18413 = vmatpush3.bf16.msra.mxu1 %v22730_v46  ;;  %v12330_v4 = vand.u32 4294901760, %v12296_v54 }
 0xc81   :  { %18245 = vmatprep.subr.bf16.mxu0 %v22731_v57  ;;  %18414 = vmatprep.subr.bf16.mxu1 %v22348_v24 }
 0xc84   :  { %18247 = vmatpush1.bf16.msra.mxu0 %v22732_v40  ;;  %18416 = vmatpush3.bf16.msra.mxu1 %v22733_v51  ;;  %v12297_v51 = vld [vmem:[%s21950_s3 + $0x30] sm:$0xff] }
 0xc85   :  { %18249 = vmatprep.subr.bf16.mxu0 %v22734_v35  ;;  %18417 = vmatprep.subr.bf16.mxu1 %v22348_v24  ;;  %v12298_v35 = vld [vmem:[%s21950_s3 + $0x38] sm:$0xff] }
 0xc88   :  { %18251 = vmatpush1.bf16.msra.mxu0 %v22735_v14  ;;  %18419 = vmatpush3.bf16.msra.mxu1 %v22736_v48  ;;  %v12333_v14 = vand.u32 4294901760, %v12297_v51  ;;  %v12336_v48 = vand.u32 4294901760, %v12298_v35 }
 0xc89   :  { %18253 = vmatprep.subr.bf16.mxu0 %v22408_v17  ;;  %18420 = vmatprep.subr.bf16.mxu1 %v22348_v24 }
 0xc8b   :  { %11236 = vmatmul.mubr.f32.vlgmr.msra.gmra.mrb[14].mxu0 %v21388_v43  ;;  %15487 = vmatmul.mubr.f32.vlgmr.msra.gmra.mrb[90].mxu1 %v21388_v43  ;;  %v22757_v43 = vld [vmem:[#allocation71_spill] sm:$0xff] }
 0xc8c   :  { %18255 = vmatpush1.bf16.msra.mxu0 %v22409_v36  ;;  %18422 = vmatpush3.bf16.msra.mxu1 %v19586_v29 }
 0xc8d   :  { %18257 = vmatprep.subr.bf16.mxu0 %v22410_v18  ;;  %18423 = vmatprep.subr.bf16.mxu1 %v22348_v24 }
 0xc8e   :  { %11338 = vmatprep.mubr.f32.mxu0 %v22294_v5  ;;  %15521 = vmatprep.mubr.msk.f32.mxu1 %vm18871_vm0, %v22294_v5 }
 0xc90   :  { %18259 = vmatpush1.bf16.msra.mxu0 %v22411_v9  ;;  %18425 = vmatpush3.bf16.msra.mxu1 %v19607_v16 }
 0xc91   :  { %18261 = vmatprep.subr.bf16.mxu0 %v22412_v21  ;;  %18426 = vmatprep.subr.bf16.mxu1 %v22348_v24 }
 0xc94   :  { %18263 = vmatpush1.bf16.msra.mxu0 %v22413_v28  ;;  %18428 = vmatpush3.bf16.msra.mxu1 %v19628_v56 }
 0xc95   :  { %18265 = vmatprep.subr.bf16.mxu0 %v22414_v26  ;;  %18429 = vmatprep.subr.bf16.mxu1 %v22348_v24 }
 0xc98   :  { %18267 = vmatpush1.bf16.msra.mxu0 %v22415_v42  ;;  %18431 = vmatpush3.bf16.msra.mxu1 %v19646_v25 }
 0xc99   :  { %18269 = vmatprep.subr.bf16.mxu0 %v22416_v44  ;;  %18432 = vmatprep.subr.bf16.mxu1 %v22348_v24 }
 0xc9c   :  { %18271 = vmatpush1.bf16.msra.mxu0 %v22417_v12  ;;  %18434 = vmatpush3.bf16.msra.mxu1 %v22682_v23 }
 0xc9d   :  { %18273 = vmatprep.subr.bf16.mxu0 %v22737_v10  ;;  %18435 = vmatprep.subr.bf16.mxu1 %v22348_v24 }
 0xca0   :  { %18275 = vmatpush1.bf16.msra.mxu0 %v22738_v61  ;;  %18437 = vmatpush3.bf16.msra.mxu1 %v22739_v58 }
 0xca1   :  { %18277 = vmatprep.subr.bf16.mxu0 %v22740_v11  ;;  %18438 = vmatprep.subr.bf16.mxu1 %v22348_v24 }
 0xca4   :  { %18279 = vmatpush1.bf16.msra.mxu0 %v22741_v2  ;;  %18440 = vmatpush3.bf16.msra.mxu1 %v22742_v20 }
 0xca5   :  { %18281 = vmatprep.subr.bf16.mxu0 %v22743_v63  ;;  %18441 = vmatprep.subr.bf16.mxu1 %v22348_v24 }
 0xca8   :  { %18283 = vmatpush1.bf16.msra.mxu0 %v22744_v60  ;;  %18443 = vmatpush3.bf16.msra.mxu1 %v22745_v62 }
 0xca9   :  { %18285 = vmatprep.subr.bf16.mxu0 %v22746_v33  ;;  %18444 = vmatprep.subr.bf16.mxu1 %v22348_v24 }
 0xcab   :  { %11342 = vmatmul.mubr.f32.vlgmr.msra.gmra.mrb[14].mxu0 %v21391_v3  ;;  %15522 = vmatmul.mubr.f32.vlgmr.msra.gmra.mrb[92].mxu1 %v21391_v3  ;;  %v22758_v3 = vld [vmem:[#allocation47_spill] sm:$0xff] }
 0xcac   :  { %18287 = vmatpush1.bf16.msra.mxu0 %v22747_v39  ;;  %18446 = vmatpush3.bf16.msra.mxu1 %v22748_v1 }
 0xcad   :  { %18289 = vmatprep.subr.bf16.mxu0 %v22749_v6  ;;  %18447 = vmatprep.subr.bf16.mxu1 %v22348_v24 }
 0xcae   :  { %11508 = vmatprep.mubr.f32.mxu0 %v22294_v5  ;;  %15556 = vmatprep.mubr.msk.f32.mxu1 %vm18871_vm0, %v22294_v5 }
 0xcb0   :  { %18291 = vmatpush1.bf16.msra.mxu0 %v22750_v41  ;;  %18449 = vmatpush3.bf16.msra.mxu1 %v22751_v31  ;;  %v12303_v31 = vld [vmem:[%s21950_s3 + $0x60] sm:$0xff] }
 0xcb1   :  { %18293 = vmatprep.subr.bf16.mxu0 %v22752_v22  ;;  %18450 = vmatprep.subr.bf16.mxu1 %v22348_v24  ;;  %v12304_v22 = vld [vmem:[%s21950_s3 + $0x68] sm:$0xff] }
 0xcb4   :  { %18295 = vmatpush1.bf16.msra.mxu0 %v22753_v8  ;;  %18452 = vmatpush3.bf16.msra.mxu1 %v22754_v19  ;;  %v12305_v8 = vld [vmem:[%s21950_s3 + $0x70] sm:$0xff] }
 0xcb5   :  { %18297 = vmatprep.subr.bf16.mxu0 %v22755_v50  ;;  %18453 = vmatprep.subr.bf16.mxu1 %v22348_v24  ;;  %v21658_v50 = vsub.f32 %v12296_v54, %v12330_v4 }
 0xcb8   :  { %18299 = vmatpush1.bf16.msra.mxu0 %v22756_v47  ;;  %18455 = vmatpush3.bf16.msra.mxu1 %v22757_v43  ;;  %v21660_v47 = vsub.f32 %v12297_v51, %v12333_v14  ;;  %v21662_v43 = vsub.f32 %v12298_v35, %v12336_v48 }
 0xcb9   :  { %18301 = vmatprep.subr.bf16.mxu0 %v22758_v3  ;;  %18456 = vmatprep.subr.bf16.mxu1 %v22348_v24  ;;  %v12306_v3 = vld [vmem:[%s21950_s3 + $0x78] sm:$0xff] }
 0xcbc   :  { %18303 = vmatpush1.bf16.msra.mxu0 %v22759_v7  ;;  %18458 = vmatpush3.bf16.msra.mxu1 %v22760_v52 }
 0xcbd   :  { %18305 = vmatprep.subr.bf16.mxu0 %v22761_v34  ;;  %18459 = vmatprep.subr.bf16.mxu1 %v22348_v24 }
 0xcc0   :  { %18307 = vmatpush1.bf16.msra.mxu0 %v22762_v13  ;;  %18461 = vmatpush3.bf16.msra.mxu1 %v22763_v53 }
 0xcc1   :  { %18309 = vmatprep.subr.bf16.mxu0 %v22764_v38  ;;  %18462 = vmatprep.subr.bf16.mxu1 %v22348_v24  ;;  %v12351_v38 = vand.u32 4294901760, %v12303_v31 }
 0xcc4   :  { %18311 = vmatpush1.bf16.msra.mxu0 %v22765_v0  ;;  %18464 = vmatpush3.bf16.msra.mxu1 %v22766_v59  ;;  %v12354_v0 = vand.u32 4294901760, %v12304_v22  ;;  %v12357_v59 = vand.u32 4294901760, %v12305_v8 }
 0xcc5   :  { %18313 = vmatprep.subr.bf16.mxu0 %v22767_v30  ;;  %18465 = vmatprep.subr.bf16.mxu1 %v22348_v24  ;;  %v12360_v30 = vand.u32 4294901760, %v12306_v3 }
 0xcc8   :  { %18315 = vmatpush1.bf16.msra.mxu0 %v22768_v45  ;;  %18467 = vmatpush3.bf16.msra.mxu1 %v22769_v32  ;;  %v21679_v45 = vpack.c.bf16 %v12354_v0, %v12351_v38  ;;  %v21681_v32 = vsub.f32 %v12303_v31, %v12351_v38 }
 0xcc9   :  { %18317 = vmatprep.subr.bf16.mxu0 %v22408_v17  ;;  %18468 = vmatprep.subr.bf16.mxu1 %v22348_v24  ;;  %v12293_v17 = vld [vmem:[%s21950_s3 + $0x10] sm:$0xff] }
 0xccb   :  { %11510 = vmatmul.mubr.f32.vlgmr.msra.gmra.mrb[14].mxu0 %v21384_v27  ;;  %15557 = vmatmul.mubr.f32.vlgmr.msra.gmra.mrb[94].mxu1 %v21384_v27 }
 0xccc   :  { %18319 = vmatpush1.bf16.msra.mxu0 %v22409_v36  ;;  %18470 = vmatpush3.bf16.msra.mxu1 %v19586_v29  ;;  %v12294_v36 = vld [vmem:[%s21950_s3 + $0x18] sm:$0xff] }
 0xccd   :  { %18321 = vmatprep.subr.bf16.mxu0 %v22410_v18  ;;  %18471 = vmatprep.subr.bf16.mxu1 %v22348_v24 }
 0xcce   :  { %11612 = vmatprep.mubr.f32.mxu0 %v22294_v5  ;;  %15591 = vmatprep.mubr.msk.f32.mxu1 %vm18871_vm0, %v22294_v5 }
 0xcd0   :  { %18323 = vmatpush1.bf16.msra.mxu0 %v22411_v9  ;;  %18473 = vmatpush3.bf16.msra.mxu1 %v19607_v16 }
 0xcd1   :  { %18325 = vmatprep.subr.bf16.mxu0 %v22412_v21  ;;  %18474 = vmatprep.subr.bf16.mxu1 %v22348_v24  ;;  %v12292_v21 = vld [vmem:[%s21950_s3 + $0x8] sm:$0xff] }
 0xcd2   :  { %v12318_v18 = vand.u32 4294901760, %v12292_v21 }
 0xcd4   :  { %18327 = vmatpush1.bf16.msra.mxu0 %v22413_v28  ;;  %18476 = vmatpush3.bf16.msra.mxu1 %v19628_v56  ;;  %v12324_v28 = vand.u32 4294901760, %v12294_v36  ;;  %v21641_v1 = vsub.f32 %v12292_v21, %v12318_v18 }
 0xcd5   :  { %18329 = vmatprep.subr.bf16.mxu0 %v22414_v26  ;;  %18477 = vmatprep.subr.bf16.mxu1 %v22348_v24  ;;  %v12321_v26 = vand.u32 4294901760, %v12293_v17 }
 0xcd6   :  { %v21645_v41 = vsub.f32 %v12294_v36, %v12324_v28 }
 0xcd7   :  { %v21643_v6 = vsub.f32 %v12293_v17, %v12321_v26 }
 0xcd8   :  { %18331 = vmatpush1.bf16.msra.mxu0 %v22415_v42  ;;  %18479 = vmatpush3.bf16.msra.mxu1 %v19646_v25  ;;  %v12291_v42 = vld [vmem:[%s21950_s3] sm:$0xff] }
 0xcd9   :  { %18333 = vmatprep.subr.bf16.mxu0 %v22416_v44  ;;  %18480 = vmatprep.subr.bf16.mxu1 %v22348_v24  ;;  %v12315_v44 = vand.u32 4294901760, %v12291_v42  ;;  %v22234_v36 = vand.u32 4294901760, %v21643_v6 }
 0xcdb   :  { %v21587_v9 = vpack.c.bf16 %v12318_v18, %v12315_v44  ;;  %v21639_v39 = vsub.f32 %v12291_v42, %v12315_v44  ;;  %v21692_v42 = vpack.c.bf16 %v12360_v30, %v12357_v59 }
 0xcdc   :  { %18335 = vmatpush1.bf16.msra.mxu0 %v22417_v12  ;;  %18482 = vmatpush3.bf16.msra.mxu1 %v22682_v23  ;;  %v21597_v23 = vpack.c.bf16 %v12324_v28, %v12321_v26  ;;  %v22233_v26 = vand.u32 4294901760, %v21645_v41 }
 0xcdd   :  { %18337 = vmatprep.subr.bf16.mxu0 %v22737_v10  ;;  %18483 = vmatprep.subr.bf16.mxu1 %v22348_v24  ;;  %v21619_v10 = vpack.c.bf16 %v12336_v48, %v12333_v14 }
 0xcde   :  { %v12430_v54 = vsub.f32 %v21645_v41, %v22233_v26 }
 0xce0   :  { %18339 = vmatpush1.bf16.msra.mxu0 %v22738_v61  ;;  %18485 = vmatpush3.bf16.msra.mxu1 %v22739_v58  ;;  %v12299_v61 = vld [vmem:[%s21950_s3 + $0x40] sm:$0xff]  ;;  %v12300_v58 = vld [vmem:[%s21950_s3 + $0x48] sm:$0xff] }
 0xce1   :  { %18341 = vmatprep.subr.bf16.mxu0 %v22740_v11  ;;  %18486 = vmatprep.subr.bf16.mxu1 %v22348_v24  ;;  %v12339_v11 = vand.u32 4294901760, %v12299_v61 }
 0xce3   :  { %v21667_v7 = vsub.f32 %v12299_v61, %v12339_v11 }
 0xce4   :  { %18343 = vmatpush1.bf16.msra.mxu0 %v22741_v2  ;;  %18488 = vmatpush3.bf16.msra.mxu1 %v22742_v20  ;;  %v12342_v2 = vand.u32 4294901760, %v12300_v58 }
 0xce5   :  { %18345 = vmatprep.subr.bf16.mxu0 %v22743_v63  ;;  %18489 = vmatprep.subr.bf16.mxu1 %v22348_v24  ;;  %v12301_v63 = vld [vmem:[%s21950_s3 + $0x50] sm:$0xff] }
 0xce6   :  { %v21629_v20 = vpack.c.bf16 %v12342_v2, %v12339_v11  ;;  %v21669_v52 = vsub.f32 %v12300_v58, %v12342_v2 }
 0xce8   :  { %18347 = vmatpush1.bf16.msra.mxu0 %v22744_v60  ;;  %18491 = vmatpush3.bf16.msra.mxu1 %v22745_v62  ;;  %v12302_v60 = vld [vmem:[%s21950_s3 + $0x58] sm:$0xff]  ;;  %v12345_v62 = vand.u32 4294901760, %v12301_v63 }
 0xce9   :  { %18492 = vmatprep.subr.bf16.mxu0 %v22348_v24  ;;  %v12348_v33 = vand.u32 4294901760, %v12302_v60 }
 0xcea   :  { %v21673_v13 = vsub.f32 %v12301_v63, %v12345_v62  ;;  %v22230_v63 = vand.u32 4294901760, %v21660_v47 }
 0xceb   :  { %11614 = vmatmul.mubr.f32.vlgmr.msra.gmra.mrb[14].mxu0 %v21384_v27  ;;  %15592 = vmatmul.mubr.f32.vlgmr.msra.gmra.mrb[96].mxu1 %v21384_v27  ;;  %v12295_v27 = vld [vmem:[%s21950_s3 + $0x20] sm:$0xff]  ;;  %v21671_v34 = vpack.c.bf16 %v12348_v33, %v12345_v62  ;;  %v21675_v53 = vsub.f32 %v12302_v60, %v12348_v33  ;;  %v22229_v60 = vand.u32 4294901760, %v21662_v43 }
 0xcec   :  { %15626 = vmatprep.mubr.msk.f32.mxu0 %vm18871_vm0, %v22294_v5  ;;  %18494 = vmatpush3.bf16.msra.mxu0 %v21587_v9  ;;  %v12327_v49 = vand.u32 4294901760, %v12295_v27  ;;  %v12451_v33 = vsub.f32 %v21660_v47, %v22230_v63 }
 0xced   :  { %18495 = vmatprep.subr.bf16.mxu0 %v22348_v24  ;;  %v12458_v31 = vsub.f32 %v21662_v43, %v22229_v60 }
 0xcee   :  { %v21609_v40 = vpack.c.bf16 %v12330_v4, %v12327_v49  ;;  %v21656_v19 = vsub.f32 %v12295_v27, %v12327_v49  ;;  %v12423_v27 = vsub.f32 %v21643_v6, %v22234_v36  ;;  %v12431_v49 = vand.u32 4294901760, %v12430_v54 }
 0xcf0   :  { %18497 = vmatpush3.bf16.msra.mxu0 %v21597_v23  ;;  %v22232_v4 = vand.u32 4294901760, %v21656_v19 }
 0xcf1   :  { %18498 = vmatprep.subr.bf16.mxu0 %v22348_v24 }
 0xcf2   :  { %v12437_v35 = vsub.f32 %v21656_v19, %v22232_v4 }
 0xcf4   :  { %18500 = vmatpush3.bf16.msra.mxu0 %v21609_v40  ;;  %v12438_v11 = vand.u32 4294901760, %v12437_v35  ;;  %v22224_v35 = vand.u32 4294901760, %v21681_v32 }
 0xcf5   :  { %18501 = vmatprep.subr.bf16.mxu0 %v22348_v24 }
 0xcf8   :  { %18503 = vmatpush3.bf16.msra.mxu0 %v21619_v10 }
 0xcf9   :  { %18504 = vmatprep.subr.bf16.mxu0 %v22348_v24 }
 0xcfc   :  { %18506 = vmatpush3.bf16.msra.mxu0 %v21629_v20 }
 0xcfd   :  { %18507 = vmatprep.subr.bf16.mxu0 %v22348_v24 }
 0xd00   :  { %18509 = vmatpush3.bf16.msra.mxu0 %v21671_v34 }
 0xd01   :  { %18510 = vmatprep.subr.bf16.mxu0 %v22348_v24 }
 0xd04   :  { %18512 = vmatpush3.bf16.msra.mxu0 %v21679_v45 }
 0xd05   :  { %18513 = vmatprep.subr.bf16.mxu0 %v22348_v24 }
 0xd08   :  { %18515 = vmatpush3.bf16.msra.mxu0 %v21692_v42 }
 0xd09   :  { %18516 = vmatprep.subr.bf16.mxu0 %v22348_v24 }
 0xd1e   :  { %v11707_v16 = vpop.f32.mrb[86].mxu1 }
 0xd1f   :  { %v15418_v25 = vpop.f32.mrb[87].mxu1 }
 0xd20   :  { %v21685_v25 = vsub.f32 %v12305_v8, %v12357_v59  ;;  %v22227_v8 = vand.u32 4294901760, %v21669_v52 }
 0xd3e   :  { %v11858_v29 = vpop.f32.mrb[88].mxu1 }
 0xd3f   :  { %v11859_v56 = vadd.f32 %v11858_v29, %v11707_v16  ;;  %v15453_v12 = vpop.f32.mrb[89].mxu1  ;;  %v21683_v16 = vsub.f32 %v12304_v22, %v12354_v0  ;;  %v21687_v29 = vsub.f32 %v12306_v3, %v12360_v30  ;;  %v12452_v22 = vand.u32 4294901760, %v12451_v33 }
 0xd40   :  { %v22235_v12 = vand.u32 4294901760, %v21641_v1  ;;  %v12459_v3 = vand.u32 4294901760, %v12458_v31  ;;  %v12472_v0 = vsub.f32 %v21669_v52, %v22227_v8  ;;  %v22222_v31 = vand.u32 4294901760, %v21685_v25 }
 0xd42   :  { %v12416_v44 = vsub.f32 %v21641_v1, %v22235_v12  ;;  %v21742_v59 = vpack.c.bf16 %v12459_v3, %v12452_v22  ;;  %v22221_v22 = vand.u32 4294901760, %v21687_v29 }
 0xd44   :  { %v12417_v17 = vand.u32 4294901760, %v12416_v44  ;;  %v22226_v44 = vand.u32 4294901760, %v21673_v13 }
 0xd5e   :  { %v11962_v55 = vpop.f32.mrb[90].mxu1 }
 0xd5f   :  { %v21606_v46 = vadd.f32 %v11962_v55, %v11859_v56  ;;  %v15488_v57 = vpop.f32.mrb[91].mxu1  ;;  %v22236_v56 = vand.u32 4294901760, %v21639_v39  ;;  %v12424_v55 = vand.u32 4294901760, %v12423_v27  ;;  %v12479_v27 = vsub.f32 %v21673_v13, %v22226_v44 }
 0xd60   :  { %v22231_v57 = vand.u32 4294901760, %v21658_v50 }
 0xd61   :  { %v12409_v21 = vsub.f32 %v21639_v39, %v22236_v56  ;;  %v21715_v51 = vpack.c.bf16 %v12431_v49, %v12424_v55  ;;  %v12480_v55 = vand.u32 4294901760, %v12479_v27 }
 0xd62   :  { %v12444_v14 = vsub.f32 %v21658_v50, %v22231_v57 }
 0xd63   :  { %v12410_v18 = vand.u32 4294901760, %v12409_v21  ;;  %v12473_v21 = vand.u32 4294901760, %v12472_v0  ;;  %v12514_v0 = vsub.f32 %v21687_v29, %v22221_v22 }
 0xd64   :  { %v12445_v2 = vand.u32 4294901760, %v12444_v14  ;;  %v22223_v14 = vand.u32 4294901760, %v21683_v16 }
 0xd65   :  { %v21704_v28 = vpack.c.bf16 %v12417_v17, %v12410_v18  ;;  %v22225_v18 = vand.u32 4294901760, %v21675_v53 }
 0xd66   :  { %v21726_v62 = vpack.c.bf16 %v12445_v2, %v12438_v11  ;;  %v12500_v11 = vsub.f32 %v21683_v16, %v22223_v14 }
 0xd67   :  { %v12486_v54 = vsub.f32 %v21675_v53, %v22225_v18 }
 0xd68   :  { %v12501_v33 = vand.u32 4294901760, %v12500_v11 }
 0xd69   :  { %v12487_v49 = vand.u32 4294901760, %v12486_v54  ;;  %v18541_v54 = vpack.c.bf16 %v21641_v1, %v21639_v39 }
 0xd7e   :  { %v12051_v48 = vpop.f32.mrb[92].mxu1 }
 0xd7f   :  { %v12052_v61 = vadd.f32 %v12051_v48, %v21606_v46  ;;  %v15523_v58 = vpop.f32.mrb[93].mxu1  ;;  %v22228_v46 = vand.u32 4294901760, %v21667_v7  ;;  %v21756_v48 = vpack.c.bf16 %v12487_v49, %v12480_v55  ;;  %v18544_v55 = vpack.c.bf16 %v21645_v41, %v21643_v6 }
 0xd80   :  { %v12493_v58 = vsub.f32 %v21681_v32, %v22224_v35 }
 0xd81   :  { %v12465_v38 = vsub.f32 %v21667_v7, %v22228_v46 }
 0xd82   :  { %v12494_v2 = vand.u32 4294901760, %v12493_v58 }
 0xd83   :  { %v12466_v30 = vand.u32 4294901760, %v12465_v38  ;;  %v12507_v38 = vsub.f32 %v21685_v25, %v22222_v31 }
 0xd84   :  { %v21766_v3 = vpack.c.bf16 %v12501_v33, %v12494_v2  ;;  %v18547_v2 = vpack.c.bf16 %v21658_v50, %v21656_v19  ;;  %v18550_v33 = vpack.c.bf16 %v21662_v43, %v21660_v47 }
 0xd85   :  { %v21746_v17 = vpack.c.bf16 %v12473_v21, %v12466_v30  ;;  %v12508_v30 = vand.u32 4294901760, %v12507_v38  ;;  %v12515_v21 = vand.u32 4294901760, %v12514_v0  ;;  %v18553_v38 = vpack.c.bf16 %v21669_v52, %v21667_v7 }
 0xd86   :  { %v18556_v0 = vpack.c.bf16 %v21675_v53, %v21673_v13 }
 0xd87   :  { %v21774_v27 = vpack.c.bf16 %v12515_v21, %v12508_v30  ;;  %v18559_v30 = vpack.c.bf16 %v21683_v16, %v21681_v32  ;;  %v18562_v21 = vpack.c.bf16 %v21687_v29, %v21685_v25 }
 0xd9e   :  { %v12170_v49 = vpop.f32.mrb[94].mxu1 }
 0xd9f   :  { %v12171_v58 = vadd.f32 %v12170_v49, %v12052_v61  ;;  %v15558_v11 = vpop.f32.mrb[95].mxu1  ;;  %v12992_v61 = vld [vmem:[%s21947_s0 + $0x2a] sm:$0x3f] }
 0xda0   :  { %v12269_v44 = vrot.slane %v12992_v61, 2  ;;  %v12280_v4 = vrot.slane %v12992_v61, 4 }
 0xdbe   :  { %v11615_v49 = vpop.f32.mrb[14].mxu0  ;;  %v12257_v11 = vpop.f32.mrb[96].mxu1 }
 0xdbf   :  { %v12261_v22 = vadd.f32 %v12992_v61, %v11615_v49  ;;  %v12258_v31 = vadd.f32 %v12257_v11, %v12171_v58  ;;  %v11617_v14 = vpop.f32.mrb[15].mxu0  ;;  %v15593_v35 = vpop.f32.mrb[97].mxu1 }
 0xdc0   :  { %v12271_v8 = vadd.f32 %v12269_v44, %v11617_v14 }
 0xdc1   :  { %v12993_v18 = vmul.f32 -1.442695, %v12261_v22  ;;  %v12278_v26 = vadd.f32 %v21377_v37, %v12258_v31 }
 0xdc2   :  { %v12994_v46 = vmul.f32 -1.442695, %v12271_v8 }
 0xdc3   :  { %18804 = vpow2.f32 %v12993_v18 }
 0xdc4   :  { %18806 = vpow2.f32 %v12994_v46 }
 0xdcd   :  { %v18805_v60 = vpop.eup %18804 }
 0xdce   :  { %v12265_v63 = vadd.f32 1.0, %v18805_v60  ;;  %v18807_v57 = vpop.eup %18806 }
 0xdcf   :  { %v12275_v49 = vadd.f32 1.0, %v18807_v57  ;;  %v22776_v57 = vand.u32 4294901760, %v21660_v47  ;;  %v22782_v47 = vand.u32 4294901760, %v21681_v32 }
 0xdd0   :  { %18808 = vrcp.f32 %v12265_v63 }
 0xdda   :  { %v18809_v36 = vpop.eup %18808 }
 0xddb   :  { %v12279_v12 = vmul.f32 %v18809_v36, %v12278_v26  ;;  %v22772_v36 = vand.u32 4294901760, %v21643_v6  ;;  %v22773_v26 = vand.u32 4294901760, %v21645_v41  ;;  %v22777_v6 = vand.u32 4294901760, %v21662_v43 }
 0xddc   :  { %v22783_v43 = vand.u32 4294901760, %v21683_v16 }
 0xddd   :  { %v12282_v56 = vadd.f32 %v12280_v4, %v12279_v12  ;;  %v18598_v41 = vpack.c.bf16 %v22777_v6, %v22776_v57 }
 0xddf   :  { %18810 = vtanh.f32 %v12282_v56  ;;  %v22771_v56 = vand.u32 4294901760, %v21641_v1  ;;  %v22775_v1 = vand.u32 4294901760, %v21658_v50  ;;  %v22781_v50 = vand.u32 4294901760, %v21675_v53 }
 0xde0   :  { %18812 = vrcp.f32 %v12275_v49 }
 0xde9   :  { %v18811_v35 = vpop.eup %18810 }
 0xdea   :  { %v12284_v18 = vsub.f32 %v21381_v15, %v18811_v35  ;;  %v18813_v22 = vpop.eup %18812  ;;  %v22770_v15 = vand.u32 4294901760, %v21639_v39  ;;  %v22774_v39 = vand.u32 4294901760, %v21656_v19  ;;  %v22780_v19 = vand.u32 4294901760, %v21673_v13 }
 0xdec   :  { %v12285_v44 = vmul.f32 %v18813_v22, %v12284_v18  ;;  %v18589_v12 = vpack.c.bf16 %v22771_v56, %v22770_v15  ;;  %v18595_v4 = vpack.c.bf16 %v22775_v1, %v22774_v39 }
 0xdee   :  { %v12286_v8 = vadd.f32 %v18811_v35, %v12285_v44 }
 0xdf0   :  { %12287 = vst [vmem:[#allocation2] sm:$0x3] %v12286_v8  ;;  %v21797_v60 = vand.u32 4294901760, %v12286_v8 }
 0xdf2   :  { %v12396_v63 = vsub.f32 %v12286_v8, %v21797_v60 }
 0xdf4   :  { %v12397_v46 = vand.u32 4294901760, %v12396_v63 }
 0xdf6   :  { %v12398_v14 = vsub.f32 %v12396_v63, %v12397_v46 }
 0xdf8   :  { %v12399_v37 = vand.u32 4294901760, %v12398_v14 }
 0xdfa   :  { %15627 = vmatmul.mubr.f32.vlgmr.msra.gmra.mrb[16].mxu0 %v12399_v37 }
 0xdfb   :  { %18518 = vmatpush3.bf16.msra.mxu0 %v21704_v28  ;;  %15661 = vmatprep.mubr.msk.f32.mxu0 %vm18871_vm0, %v22294_v5  ;;  %v18592_v28 = vpack.c.bf16 %v22773_v26, %v22772_v36 }
 0xdfc   :  { %18519 = vmatprep.subr.bf16.mxu0 %v22348_v24 }
 0xdff   :  { %18521 = vmatpush3.bf16.msra.mxu0 %v21715_v51  ;;  %v22778_v51 = vand.u32 4294901760, %v21667_v7  ;;  %v22784_v7 = vand.u32 4294901760, %v21685_v25 }
 0xe00   :  { %18522 = vmatprep.subr.bf16.mxu0 %v22348_v24 }
 0xe03   :  { %18524 = vmatpush3.bf16.msra.mxu0 %v21726_v62  ;;  %v22779_v62 = vand.u32 4294901760, %v21669_v52  ;;  %v22785_v52 = vand.u32 4294901760, %v21687_v29 }
 0xe04   :  { %18525 = vmatprep.subr.bf16.mxu0 %v22348_v24 }
 0xe05   :  { %v18610_v31 = vpack.c.bf16 %v22785_v52, %v22784_v7 }
 0xe07   :  { %18527 = vmatpush3.bf16.msra.mxu0 %v21742_v59  ;;  %v18601_v59 = vpack.c.bf16 %v22779_v62, %v22778_v51 }
 0xe08   :  { %18528 = vmatprep.subr.bf16.mxu0 %v22348_v24 }
 0xe0b   :  { %18530 = vmatpush3.bf16.msra.mxu0 %v21746_v17  ;;  %v18604_v17 = vpack.c.bf16 %v22781_v50, %v22780_v19 }
 0xe0c   :  { %18531 = vmatprep.subr.bf16.mxu0 %v22348_v24 }
 0xe0f   :  { %18533 = vmatpush3.bf16.msra.mxu0 %v21756_v48  ;;  %v18607_v48 = vpack.c.bf16 %v22783_v43, %v22782_v47 }
 0xe10   :  { %18534 = vmatprep.subr.bf16.mxu0 %v22348_v24 }
 0xe13   :  { %18536 = vmatpush3.bf16.msra.mxu0 %v21766_v3 }
 0xe14   :  { %18537 = vmatprep.subr.bf16.mxu0 %v22348_v24 }
 0xe17   :  { %18539 = vmatpush3.bf16.msra.mxu0 %v21774_v27 }
 0xe18   :  { %18540 = vmatprep.subr.bf16.mxu0 %v22348_v24 }
 0xe1a   :  { %15662 = vmatmul.mubr.f32.vlgmr.msra.gmra.mrb[16].mxu0 %v21797_v60 }
 0xe1b   :  { %18542 = vmatpush3.bf16.msra.mxu0 %v18541_v54  ;;  %15696 = vmatprep.mubr.msk.f32.mxu0 %vm18871_vm0, %v22294_v5 }
 0xe1c   :  { %18543 = vmatprep.subr.bf16.mxu0 %v22348_v24 }
 0xe1f   :  { %18545 = vmatpush3.bf16.msra.mxu0 %v18544_v55 }
 0xe20   :  { %18546 = vmatprep.subr.bf16.mxu0 %v22348_v24 }
 0xe23   :  { %18548 = vmatpush3.bf16.msra.mxu0 %v18547_v2 }
 0xe24   :  { %18549 = vmatprep.subr.bf16.mxu0 %v22348_v24 }
 0xe27   :  { %18551 = vmatpush3.bf16.msra.mxu0 %v18550_v33 }
 0xe28   :  { %18552 = vmatprep.subr.bf16.mxu0 %v22348_v24 }
 0xe2b   :  { %18554 = vmatpush3.bf16.msra.mxu0 %v18553_v38 }
 0xe2c   :  { %18555 = vmatprep.subr.bf16.mxu0 %v22348_v24 }
 0xe2f   :  { %18557 = vmatpush3.bf16.msra.mxu0 %v18556_v0 }
 0xe30   :  { %18558 = vmatprep.subr.bf16.mxu0 %v22348_v24 }
 0xe33   :  { %18560 = vmatpush3.bf16.msra.mxu0 %v18559_v30 }
 0xe34   :  { %18561 = vmatprep.subr.bf16.mxu0 %v22348_v24 }
 0xe37   :  { %18563 = vmatpush3.bf16.msra.mxu0 %v18562_v21 }
 0xe38   :  { %18564 = vmatprep.subr.bf16.mxu0 %v22348_v24 }
 0xe3a   :  { %15697 = vmatmul.mubr.f32.vlgmr.msra.gmra.mrb[16].mxu0 %v12396_v63 }
 0xe3b   :  { %18566 = vmatpush3.bf16.msra.mxu0 %v21587_v9  ;;  %15731 = vmatprep.mubr.msk.f32.mxu0 %vm18871_vm0, %v22294_v5 }
 0xe3c   :  { %18567 = vmatprep.subr.bf16.mxu0 %v22348_v24 }
 0xe3f   :  { %18569 = vmatpush3.bf16.msra.mxu0 %v21597_v23 }
 0xe40   :  { %18570 = vmatprep.subr.bf16.mxu0 %v22348_v24 }
 0xe43   :  { %18572 = vmatpush3.bf16.msra.mxu0 %v21609_v40 }
 0xe44   :  { %18573 = vmatprep.subr.bf16.mxu0 %v22348_v24 }
 0xe47   :  { %18575 = vmatpush3.bf16.msra.mxu0 %v21619_v10 }
 0xe48   :  { %18576 = vmatprep.subr.bf16.mxu0 %v22348_v24 }
 0xe4b   :  { %18578 = vmatpush3.bf16.msra.mxu0 %v21629_v20 }
 0xe4c   :  { %18579 = vmatprep.subr.bf16.mxu0 %v22348_v24 }
 0xe4f   :  { %18581 = vmatpush3.bf16.msra.mxu0 %v21671_v34 }
 0xe50   :  { %18582 = vmatprep.subr.bf16.mxu0 %v22348_v24 }
 0xe53   :  { %18584 = vmatpush3.bf16.msra.mxu0 %v21679_v45 }
 0xe54   :  { %18585 = vmatprep.subr.bf16.mxu0 %v22348_v24 }
 0xe57   :  { %18587 = vmatpush3.bf16.msra.mxu0 %v21692_v42 }
 0xe58   :  { %18588 = vmatprep.subr.bf16.mxu0 %v22348_v24 }
 0xe5a   :  { %15732 = vmatmul.mubr.f32.vlgmr.msra.gmra.mrb[16].mxu0 %v12397_v46 }
 0xe5b   :  { %18590 = vmatpush3.bf16.msra.mxu0 %v18589_v12  ;;  %15766 = vmatprep.mubr.msk.f32.mxu0 %vm18871_vm0, %v22294_v5 }
 0xe5c   :  { %18591 = vmatprep.subr.bf16.mxu0 %v22348_v24 }
 0xe5f   :  { %18593 = vmatpush3.bf16.msra.mxu0 %v18592_v28 }
 0xe60   :  { %18594 = vmatprep.subr.bf16.mxu0 %v22348_v24 }
 0xe63   :  { %18596 = vmatpush3.bf16.msra.mxu0 %v18595_v4 }
 0xe64   :  { %18597 = vmatprep.subr.bf16.mxu0 %v22348_v24 }
 0xe67   :  { %18599 = vmatpush3.bf16.msra.mxu0 %v18598_v41 }
 0xe68   :  { %18600 = vmatprep.subr.bf16.mxu0 %v22348_v24 }
 0xe6b   :  { %18602 = vmatpush3.bf16.msra.mxu0 %v18601_v59 }
 0xe6c   :  { %18603 = vmatprep.subr.bf16.mxu0 %v22348_v24 }
 0xe6f   :  { %18605 = vmatpush3.bf16.msra.mxu0 %v18604_v17 }
 0xe70   :  { %18606 = vmatprep.subr.bf16.mxu0 %v22348_v24 }
 0xe73   :  { %18608 = vmatpush3.bf16.msra.mxu0 %v18607_v48 }
 0xe74   :  { %18609 = vmatprep.subr.bf16.mxu0 %v22348_v24 }
 0xe77   :  { %18611 = vmatpush3.bf16.msra.mxu0 %v18610_v31 }
 0xe78   :  { %18612 = vmatprep.subr.bf16.mxu0 %v22348_v24 }
 0xe7a   :  { %15767 = vmatmul.mubr.f32.vlgmr.msra.gmra.mrb[16].mxu0 %v21797_v60 }
 0xe7b   :  { %18614 = vmatpush3.bf16.msra.mxu0 %v21587_v9  ;;  %15801 = vmatprep.mubr.msk.f32.mxu0 %vm18871_vm0, %v22294_v5  ;;  %v12995_v5 = vld [vmem:[%s21951_s4] ss:$0 sm:$0xff] }
 0xe7c   :  { %18615 = vmatprep.subr.bf16.mxu0 %v22348_v24 }
 0xe7f   :  { %18617 = vmatpush3.bf16.msra.mxu0 %v21597_v23 }
 0xe80   :  { %18618 = vmatprep.subr.bf16.mxu0 %v22348_v24 }
 0xe83   :  { %18620 = vmatpush3.bf16.msra.mxu0 %v21609_v40 }
 0xe84   :  { %18621 = vmatprep.subr.bf16.mxu0 %v22348_v24 }
 0xe87   :  { %18623 = vmatpush3.bf16.msra.mxu0 %v21619_v10 }
 0xe88   :  { %18624 = vmatprep.subr.bf16.mxu0 %v22348_v24 }
 0xe8b   :  { %18626 = vmatpush3.bf16.msra.mxu0 %v21629_v20 }
 0xe8c   :  { %18627 = vmatprep.subr.bf16.mxu0 %v22348_v24 }
 0xe8f   :  { %18629 = vmatpush3.bf16.msra.mxu0 %v21671_v34 }
 0xe90   :  { %18630 = vmatprep.subr.bf16.mxu0 %v22348_v24 }
 0xe93   :  { %18632 = vmatpush3.bf16.msra.mxu0 %v21679_v45 }
 0xe94   :  { %18633 = vmatprep.subr.bf16.mxu0 %v22348_v24 }
 0xe97   :  { %18635 = vmatpush3.bf16.msra.mxu0 %v21692_v42 }
 0xe9a   :  { %15802 = vmatmul.mubr.f32.vlgmr.msra.gmra.mrb[16].mxu0 %v21797_v60 }
 0xf6d   :  { %v12951_v9 = vpop.f32.mrb[16].mxu0 }
 0xf6e   :  { %v18638_v23 = vadd.f32 %v12995_v5, %v12951_v9  ;;  %v15803_v40 = vpop.f32.mrb[17].mxu0 }
 0xf70   :  { %12955 = vst [vmem:[#allocation6] sm:$0x3] %v18638_v23 }
 0xf71   :  { %18851 = shalt.err (!%p18848_p12)
}
 0xf72   :  { %s18852_s13 = scalar_lea.hbm %s21952_s5, 32 }
 0xf73   :  { %p18853_p13 = scmp.ne.s32.totalorder %s21952_s5, %s18852_s13  ;;  %p18856_p0 = scmp.lt.u32.totalorder %s18852_s13, %s21952_s5 }
 0xf75   :  { %p18858_p1 = pnand %p18856_p0, %p18853_p13 }
 0xf77   :  { %18861 = shalt.err (!%p18858_p1)
}
 0xf78   :  { %12965 = dma.vmem_to_hbm [thread:$0]  %s12963_s9, 32, %s21952_s5, [#allocation5]  }
 0xf79   :  { %18864 = dma.done.wait [#allocation5], 32  }
 0xf7a   :  { %18865 = vsyncadd [#allocation5], 4294967264 }
 0xf7b   :  { %12969 = vsyncpa [#allocation4], 1 }
 0xf7c   :  { %12970 = vsyncpa [#allocation5], 1 }

</bundles_post_ra>
